<compile_context>
chip_gen: v7x
topology: tpu7x:2x2x1
jax: 0.10.0
libtpu: 0.0.40
codegen_flags: <defaults>
</compile_context>

<pallas_src>
import functools
import math

import jax
import jax.numpy as jnp
from jax import lax
from jax.experimental import pallas as pl
from jax.experimental.pallas import tpu as pltpu

_SQRT2_INV = 0.7071067811865476
_BN_EPS = 1e-5

# MXU operand dtype for off-critical-path matmuls. Accumulation is always f32.
_MM_DTYPE = jnp.bfloat16


def _gelu(x):
    # exact GELU (torch F.gelu / nn.GELU default, approximate='none')
    return 0.5 * x * (1.0 + lax.erf(x * _SQRT2_INV))


def _mm(a, b):
    # MXU matmul with low-precision operands, f32 accumulation.
    return jnp.dot(a.astype(_MM_DTYPE), b.astype(_MM_DTYPE),
                   preferred_element_type=jnp.float32)


# ----------------------------------------------------------------------------
# Fused whole-model kernel.
#
# Ref order:
#   ids(TB,1) tok(Vp,E) pos(T,E)
#   per layer: w_ih_f_gm(F,8H)  w_ih_b_gm(F,8H)  w_hh_blk(2H,8H)  b_cat(1,8H)
#   head: key_m(2H,2H) query(1,2H) w1(2H,H) b1(1,H) gamma beta rmean rvar(1,H)
#         w2(H,Cp) b2(1,Cp)
#   out: (B, Cp)
#   scratch: gates_sc(TB,8H) f32, hs_sc(TB,2H) f32
#
# Gate-major combined layout (H-wide blocks): [i_f i_b f_f f_b g_f g_b o_f o_b].
# h / c carry layout: [fwd | bwd] (B, 2H).
# ----------------------------------------------------------------------------
def _fused_kernel(*refs, num_layers, T, B, H, eps):
    gates_sc = refs[-2]          # (T*B, 8H) per-step gate inputs (fwd+bwd pre-summed)
    hs_sc = refs[-1]             # (T*B, 2H) bidirectional hidden states, time-aligned
    o_ref = refs[-3]
    ids_ref, tok_ref, pos_ref = refs[:3]
    lw = refs[3:3 + 4 * num_layers]
    (key_ref, q_ref, w1_ref, b1_ref, gam_ref, beta_ref, rm_ref, rv_ref,
     w2_ref, b2_ref) = refs[3 + 4 * num_layers:3 + 4 * num_layers + 10]

    TB = T * B
    D = 2 * H          # bidirectional hidden width
    G = 8 * H          # combined gate width (both directions)
    V = tok_ref.shape[0]
    E = tok_ref.shape[1]

    # ---- embedding: one-hot @ table on the MXU + in-kernel positional add --
    # TODO(synk): EmbeddingLayer.FullEmbedding internals not shown; implemented
    # as learned token embedding + learned positional embedding (dropout = id).
    ids = ids_ref[...]                                        # (TB, 1) int32
    onehot = (lax.broadcasted_iota(jnp.int32, (TB, V), 1) == ids
              ).astype(jnp.float32)                           # (TB, V), V lane-dense
    emb = _mm(onehot, tok_ref[...])                           # (TB, E)
    x_flat = (emb.reshape(T, B, E)
              + pos_ref[...].reshape(T, 1, E)).reshape(TB, E)

    # ---- stacked bidirectional LSTM (fused fwd+bwd, unrolled, scratch-backed)
    for layer in range(num_layers):
        wf_ref, wb_ref, whh_ref, b_ref = lw[4 * layer:4 * layer + 4]
        whh = whh_ref[...]                                    # (2H, 8H) f32 (critical path)

        # Whole-sequence input projections, off the recurrent critical path.
        # Bias folded in once. The time-reversed fwd+bwd sum is hoisted into
        # VMEM scratch so neither projection is live across the recurrence.
        gx_f = _mm(x_flat, wf_ref[...]) + b_ref[...]          # (TB, G)
        gx_b = _mm(x_flat, wb_ref[...])                       # (TB, G)
        gx_f3 = gx_f.reshape(T, B, G)
        gx_b3 = gx_b.reshape(T, B, G)
        for t in range(T):
            gates_sc[pl.ds(t * B, B), :] = gx_f3[t] + gx_b3[T - 1 - t]

        h = jnp.zeros((B, D), jnp.float32)                    # [h_fwd | h_bwd]
        c = jnp.zeros((B, D), jnp.float32)
        for t in range(T):                                    # static unroll (T small)
            gates = (gates_sc[pl.ds(t * B, B), :]
                     + jnp.dot(h, whh, preferred_element_type=jnp.float32))
            sg = jax.nn.sigmoid(gates)                        # full 8H width
            th = jnp.tanh(gates[:, 2 * D:])                   # only g|o half (128-lane aligned)
            i = sg[:, 0 * D:1 * D]
            f = sg[:, 1 * D:2 * D]
            g = th[:, 0:D]
            o = sg[:, 3 * D:4 * D]
            c = f * c + i * g
            h = o * jnp.tanh(c)
            # Scratch-backed writes re-align bwd outputs to their true time
            # index (bwd step t corresponds to time T-1-t); no concats.
            hs_sc[pl.ds(t * B, B), 0:H] = h[:, :H]
            hs_sc[pl.ds((T - 1 - t) * B, B), H:D] = h[:, H:]

        x_flat = hs_sc[...]                                   # (TB, 2H) next-layer / head input

    # ---- attention pooling + decoder head -----------------------------------
    out_flat = x_flat                                         # (TB, D), row = t*B + b
    key = jnp.tanh(_mm(out_flat, key_ref[...]))               # (TB, D)
    key3 = key.reshape(T, B, D)
    s3 = jnp.sum(key3 * q_ref[...], axis=-1, keepdims=True)   # (T, B, 1)
    m = jnp.max(s3, axis=0, keepdims=True)                    # softmax over time
    e = jnp.exp(s3 - m)
    denom = jnp.sum(e, axis=0)                                # (B, 1)
    pooled = (jnp.sum(out_flat.reshape(T, B, D) * e, axis=0)
              * pl.reciprocal(denom, approx=True))            # (B, D)
    pooled = _gelu(pooled)

    # decoder: Linear(2H->H) -> BN1d (eval stats) -> GELU -> Dropout(id) -> Linear(H->Cp)
    h1 = _mm(pooled, w1_ref[...]) + b1_ref[...]
    bn = ((h1 - rm_ref[...]) * lax.rsqrt(rv_ref[...] + eps)
          * gam_ref[...] + beta_ref[...])
    act = _gelu(bn)
    o_ref[...] = _mm(act, w2_ref[...]) + b2_ref[...]


# ----------------------------------------------------------------------------
# Host-side weight packing into the fused gate-major layout.
# ----------------------------------------------------------------------------
def _gate_major_pad(w, direction, H):
    """(F, 4H) in [i,f,g,o] order -> (F, 8H) gate-major
    [i_f i_b f_f f_b g_f g_b o_f o_b], with the other direction's columns zero."""
    F = w.shape[0]
    z = jnp.zeros((F, H), w.dtype)
    cols = []
    for k in range(4):
        blk = w[:, k * H:(k + 1) * H]
        cols += ([blk, z] if direction == 0 else [z, blk])
    return jnp.concatenate(cols, axis=1)


def prepare_params(params, hidden_size):
    H = hidden_size
    V, E = params['tok_emb'].shape
    Vp = ((V + 127) // 128) * 128                 # lane-dense one-hot / embedding K dim
    tok_p = jnp.zeros((Vp, E), jnp.float32).at[:V].set(params['tok_emb'])

    C = params['w2'].shape[1]
    Cp = ((C + 127) // 128) * 128                 # lane-dense logits output
    w2_p = jnp.zeros((params['w2'].shape[0], Cp), jnp.float32).at[:, :C].set(params['w2'])
    b2_p = jnp.zeros((1, Cp), jnp.float32).at[:, :C].set(params['b2'])

    layers = []
    for lp in params['lstm']:
        wf = _gate_major_pad(lp['w_ih_f'], 0, H)
        wb = _gate_major_pad(lp['w_ih_b'], 1, H)
        whh = jnp.concatenate([_gate_major_pad(lp['w_hh_f'], 0, H),
                               _gate_major_pad(lp['w_hh_b'], 1, H)], axis=0)
        b = _gate_major_pad(lp['b_f'], 0, H) + _gate_major_pad(lp['b_b'], 1, H)
        layers.append((wf, wb, whh, b))

    return {
        'tok_emb': tok_p,
        'pos_emb': params['pos_emb'],
        'layers': layers,
        'key_matrix': params['key_matrix'],
        'query': params['query'],            # (1, 2H)
        'w1': params['w1'], 'b1': params['b1'],
        'bn_gamma': params['bn_gamma'], 'bn_beta': params['bn_beta'],
        'bn_rmean': params['bn_rmean'], 'bn_rvar': params['bn_rvar'],
        'w2': w2_p, 'b2': b2_p,
    }


# ----------------------------------------------------------------------------
# Forward wrapper: pad batch to 8 sublanes, build time-major flat ids, launch
# the single fused kernel.
# ----------------------------------------------------------------------------
def taxon_forward(x_tokens, packed, *, num_layers, hidden_size, num_class):
    B, T = x_tokens.shape
    H = hidden_size
    Bp = ((B + 7) // 8) * 8                  # sublane-aligned batch
    Cp = packed['w2'].shape[1]               # padded (lane-dense) class dim

    ids = jnp.zeros((Bp, T), jnp.int32).at[:B].set(x_tokens.astype(jnp.int32))
    ids_tm = jnp.transpose(ids, (1, 0)).reshape(T * Bp, 1)     # row = t*Bp + b
    pos = packed['pos_emb'][:T]                                # (T, E); broadcast in kernel

    inputs = [ids_tm, packed['tok_emb'], pos]
    for layer in packed['layers']:
        inputs.extend(layer)
    inputs.extend([packed['key_matrix'], packed['query'],
                   packed['w1'], packed['b1'],
                   packed['bn_gamma'], packed['bn_beta'],
                   packed['bn_rmean'], packed['bn_rvar'],
                   packed['w2'], packed['b2']])

    vmem = pl.BlockSpec(memory_space=pltpu.MemorySpace.VMEM)
    kernel = functools.partial(_fused_kernel, num_layers=num_layers,
                               T=T, B=Bp, H=H, eps=_BN_EPS)
    # TODO(synk): on v7x (2 TCs/chip) add a parallel grid axis over batch once the
    # batch grows; at this size a single gridless call on one TC is correct/fastest.
    logits_p = pl.pallas_call(
        kernel,
        out_shape=jax.ShapeDtypeStruct((Bp, Cp), jnp.float32),
        in_specs=[vmem] * len(inputs),
        out_specs=vmem,
        scratch_shapes=[pltpu.VMEM((T * Bp, 8 * H), jnp.float32),
                        pltpu.VMEM((T * Bp, 2 * H), jnp.float32)],
    )(*inputs)
    return logits_p[:B, :num_class]


# ----------------------------------------------------------------------------
# Deterministic parameter initialization (shapes follow the torch module).
# ----------------------------------------------------------------------------
def init_params(key, vocab_size, E, H, max_len, num_layers, num_class):
    keys = iter(jax.random.split(key, 8 + 6 * num_layers + 16))
    u = lambda k, shape, b: jax.random.uniform(k, shape, jnp.float32, -b, b)

    params = {
        'tok_emb': jax.random.normal(next(keys), (vocab_size, E), jnp.float32),
        'pos_emb': 0.02 * jax.random.normal(next(keys), (max_len, E), jnp.float32),
    }

    stdv = 1.0 / math.sqrt(H)
    lstm = []
    for layer in range(num_layers):
        in_size = E if layer == 0 else 2 * H
        lp = {}
        for d in ('f', 'b'):
            lp[f'w_ih_{d}'] = u(next(keys), (in_size, 4 * H), stdv)
            lp[f'w_hh_{d}'] = u(next(keys), (H, 4 * H), stdv)
            lp[f'b_{d}'] = u(next(keys), (1, 4 * H), 2 * stdv)   # b_ih + b_hh combined
        lstm.append(lp)
    params['lstm'] = lstm

    params['key_matrix'] = u(next(keys), (2 * H, 2 * H), 0.1)
    params['query'] = u(next(keys), (1, 2 * H), 0.1)             # (2H,) as row vector

    b1 = 1.0 / math.sqrt(2 * H)
    params['w1'] = u(next(keys), (2 * H, H), b1)
    params['b1'] = u(next(keys), (1, H), b1)
    params['bn_gamma'] = jnp.ones((1, H), jnp.float32)
    params['bn_beta'] = jnp.zeros((1, H), jnp.float32)
    params['bn_rmean'] = jnp.zeros((1, H), jnp.float32)
    params['bn_rvar'] = jnp.ones((1, H), jnp.float32)
    b2 = 1.0 / math.sqrt(H)
    params['w2'] = u(next(keys), (H, num_class), b2)
    params['b2'] = u(next(keys), (1, num_class), b2)
    return params


if __name__ == "__main__":
    vocab_size = 50
    embedding_size = 32
    hidden_size = 32
    max_len = 16
    num_layers = 2
    num_class = 8
    batch, seq_len = 2, 8

    root = jax.random.PRNGKey(0)
    k_params, k_tokens = jax.random.split(root)
    params = init_params(k_params, vocab_size, embedding_size, hidden_size,
                         max_len, num_layers, num_class)
    packed = prepare_params(params, hidden_size)
    x = jax.random.randint(k_tokens, (batch, seq_len), 0, vocab_size, jnp.int32)

    fwd = jax.jit(functools.partial(taxon_forward,
                                    num_layers=num_layers,
                                    hidden_size=hidden_size,
                                    num_class=num_class))
    logits = fwd(x, packed)
    jax.block_until_ready(logits)
    assert logits.shape == (batch, num_class)
    assert bool(jnp.all(jnp.isfinite(logits)))
    print("KERNEL_OK")
</pallas_src>

<mosaic_0001>
module attributes {stable_mosaic.version = 11 : i64} {
  func.func @_fused_kernel(%arg0: memref<64x1xi32, #tpu.memory_space<vmem>>, %arg1: memref<128x32xf32, #tpu.memory_space<vmem>>, %arg2: memref<8x32xf32, #tpu.memory_space<vmem>>, %arg3: memref<32x256xf32, #tpu.memory_space<vmem>>, %arg4: memref<32x256xf32, #tpu.memory_space<vmem>>, %arg5: memref<64x256xf32, #tpu.memory_space<vmem>>, %arg6: memref<1x256xf32, #tpu.memory_space<vmem>>, %arg7: memref<64x256xf32, #tpu.memory_space<vmem>>, %arg8: memref<64x256xf32, #tpu.memory_space<vmem>>, %arg9: memref<64x256xf32, #tpu.memory_space<vmem>>, %arg10: memref<1x256xf32, #tpu.memory_space<vmem>>, %arg11: memref<64x64xf32, #tpu.memory_space<vmem>>, %arg12: memref<1x64xf32, #tpu.memory_space<vmem>>, %arg13: memref<64x32xf32, #tpu.memory_space<vmem>>, %arg14: memref<1x32xf32, #tpu.memory_space<vmem>>, %arg15: memref<1x32xf32, #tpu.memory_space<vmem>>, %arg16: memref<1x32xf32, #tpu.memory_space<vmem>>, %arg17: memref<1x32xf32, #tpu.memory_space<vmem>>, %arg18: memref<1x32xf32, #tpu.memory_space<vmem>>, %arg19: memref<32x128xf32, #tpu.memory_space<vmem>>, %arg20: memref<1x128xf32, #tpu.memory_space<vmem>>, %arg21: memref<8x128xf32, #tpu.memory_space<vmem>>, %arg22: memref<64x256xf32, #tpu.memory_space<vmem>>, %arg23: memref<64x64xf32, #tpu.memory_space<vmem>>) attributes {dimension_semantics = [], scalar_prefetch = 0 : i64, scratch_operands = 2 : i64, tpu.core_type = #tpu.core_type<tc>} {
    %c0 = arith.constant 0 : index
    %c0_0 = arith.constant 0 : index
    %0 = vector.load %arg0[%c0, %c0_0] : memref<64x1xi32, #tpu.memory_space<vmem>>, vector<64x1xi32>
    %1 = tpu.iota {dimensions = array<i32: 1>} : vector<64x128xi32>
    %2 = vector.broadcast %0 : vector<64x1xi32> to vector<64x128xi32>
    %3 = arith.cmpi eq, %1, %2 : vector<64x128xi32>
    %4 = arith.extui %3 : vector<64x128xi1> to vector<64x128xi32>
    %5 = arith.sitofp %4 : vector<64x128xi32> to vector<64x128xf32>
    %c0_1 = arith.constant 0 : index
    %c0_2 = arith.constant 0 : index
    %6 = vector.load %arg1[%c0_1, %c0_2] : memref<128x32xf32, #tpu.memory_space<vmem>>, vector<128x32xf32>
    %7 = arith.truncf %5 : vector<64x128xf32> to vector<64x128xbf16>
    %8 = arith.truncf %6 : vector<128x32xf32> to vector<128x32xbf16>
    %cst = arith.constant dense<0.000000e+00> : vector<64x32xf32>
    %9 = tpu.matmul %7, %8, %cst {dimension_numbers = #tpu.dot_dimension_numbers<[1], [0], [0], [1], [0, 0, 1, 1], [], []>} : vector<64x128xbf16>, vector<128x32xbf16>, vector<64x32xf32> -> vector<64x32xf32>
    %10 = vector.shape_cast %9 : vector<64x32xf32> to vector<8x8x32xf32>
    %c0_3 = arith.constant 0 : index
    %c0_4 = arith.constant 0 : index
    %11 = vector.load %arg2[%c0_3, %c0_4] : memref<8x32xf32, #tpu.memory_space<vmem>>, vector<8x32xf32>
    %12 = vector.shape_cast %11 : vector<8x32xf32> to vector<8x1x32xf32>
    %13 = vector.broadcast %12 : vector<8x1x32xf32> to vector<8x8x32xf32>
    %14 = arith.addf %10, %13 : vector<8x8x32xf32>
    %15 = vector.shape_cast %14 : vector<8x8x32xf32> to vector<64x32xf32>
    %c0_5 = arith.constant 0 : index
    %c0_6 = arith.constant 0 : index
    %16 = vector.load %arg5[%c0_5, %c0_6] : memref<64x256xf32, #tpu.memory_space<vmem>>, vector<64x256xf32>
    %c0_7 = arith.constant 0 : index
    %c0_8 = arith.constant 0 : index
    %17 = vector.load %arg3[%c0_7, %c0_8] : memref<32x256xf32, #tpu.memory_space<vmem>>, vector<32x256xf32>
    %18 = arith.truncf %15 : vector<64x32xf32> to vector<64x32xbf16>
    %19 = arith.truncf %17 : vector<32x256xf32> to vector<32x256xbf16>
    %cst_9 = arith.constant dense<0.000000e+00> : vector<64x256xf32>
    %20 = tpu.matmul %18, %19, %cst_9 {dimension_numbers = #tpu.dot_dimension_numbers<[1], [0], [0], [1], [0, 0, 1, 1], [], []>} : vector<64x32xbf16>, vector<32x256xbf16>, vector<64x256xf32> -> vector<64x256xf32>
    %c0_10 = arith.constant 0 : index
    %c0_11 = arith.constant 0 : index
    %21 = vector.load %arg6[%c0_10, %c0_11] : memref<1x256xf32, #tpu.memory_space<vmem>>, vector<1x256xf32>
    %22 = vector.broadcast %21 : vector<1x256xf32> to vector<64x256xf32>
    %23 = arith.addf %20, %22 : vector<64x256xf32>
    %c0_12 = arith.constant 0 : index
    %c0_13 = arith.constant 0 : index
    %24 = vector.load %arg4[%c0_12, %c0_13] : memref<32x256xf32, #tpu.memory_space<vmem>>, vector<32x256xf32>
    %25 = arith.truncf %15 : vector<64x32xf32> to vector<64x32xbf16>
    %26 = arith.truncf %24 : vector<32x256xf32> to vector<32x256xbf16>
    %cst_14 = arith.constant dense<0.000000e+00> : vector<64x256xf32>
    %27 = tpu.matmul %25, %26, %cst_14 {dimension_numbers = #tpu.dot_dimension_numbers<[1], [0], [0], [1], [0, 0, 1, 1], [], []>} : vector<64x32xbf16>, vector<32x256xbf16>, vector<64x256xf32> -> vector<64x256xf32>
    %28 = vector.shape_cast %23 : vector<64x256xf32> to vector<8x8x256xf32>
    %29 = vector.shape_cast %27 : vector<64x256xf32> to vector<8x8x256xf32>
    %30 = vector.extract_strided_slice %28 {offsets = [0, 0, 0], sizes = [1, 8, 256], strides = [1, 1, 1]} : vector<8x8x256xf32> to vector<1x8x256xf32>
    %31 = vector.shape_cast %30 : vector<1x8x256xf32> to vector<8x256xf32>
    %32 = vector.extract_strided_slice %29 {offsets = [7, 0, 0], sizes = [1, 8, 256], strides = [1, 1, 1]} : vector<8x8x256xf32> to vector<1x8x256xf32>
    %33 = vector.shape_cast %32 : vector<1x8x256xf32> to vector<8x256xf32>
    %34 = arith.addf %31, %33 : vector<8x256xf32>
    %c0_15 = arith.constant 0 : index
    %c0_16 = arith.constant 0 : index
    %35 = vector.load %arg22[%c0_15, %c0_16] : memref<64x256xf32, #tpu.memory_space<vmem>>, vector<8x256xf32>
    tpu.vector_store %arg22[%c0_15, %c0_16], %34 {strides = array<i32>} : memref<64x256xf32, #tpu.memory_space<vmem>>, vector<8x256xf32>,
    %36 = vector.extract_strided_slice %28 {offsets = [1, 0, 0], sizes = [1, 8, 256], strides = [1, 1, 1]} : vector<8x8x256xf32> to vector<1x8x256xf32>
    %37 = vector.shape_cast %36 : vector<1x8x256xf32> to vector<8x256xf32>
    %38 = vector.extract_strided_slice %29 {offsets = [6, 0, 0], sizes = [1, 8, 256], strides = [1, 1, 1]} : vector<8x8x256xf32> to vector<1x8x256xf32>
    %39 = vector.shape_cast %38 : vector<1x8x256xf32> to vector<8x256xf32>
    %40 = arith.addf %37, %39 : vector<8x256xf32>
    %c8 = arith.constant 8 : index
    %c0_17 = arith.constant 0 : index
    %41 = vector.load %arg22[%c8, %c0_17] : memref<64x256xf32, #tpu.memory_space<vmem>>, vector<8x256xf32>
    tpu.vector_store %arg22[%c8, %c0_17], %40 {strides = array<i32>} : memref<64x256xf32, #tpu.memory_space<vmem>>, vector<8x256xf32>,
    %42 = vector.extract_strided_slice %28 {offsets = [2, 0, 0], sizes = [1, 8, 256], strides = [1, 1, 1]} : vector<8x8x256xf32> to vector<1x8x256xf32>
    %43 = vector.shape_cast %42 : vector<1x8x256xf32> to vector<8x256xf32>
    %44 = vector.extract_strided_slice %29 {offsets = [5, 0, 0], sizes = [1, 8, 256], strides = [1, 1, 1]} : vector<8x8x256xf32> to vector<1x8x256xf32>
    %45 = vector.shape_cast %44 : vector<1x8x256xf32> to vector<8x256xf32>
    %46 = arith.addf %43, %45 : vector<8x256xf32>
    %c16 = arith.constant 16 : index
    %c0_18 = arith.constant 0 : index
    %47 = vector.load %arg22[%c16, %c0_18] : memref<64x256xf32, #tpu.memory_space<vmem>>, vector<8x256xf32>
    tpu.vector_store %arg22[%c16, %c0_18], %46 {strides = array<i32>} : memref<64x256xf32, #tpu.memory_space<vmem>>, vector<8x256xf32>,
    %48 = vector.extract_strided_slice %28 {offsets = [3, 0, 0], sizes = [1, 8, 256], strides = [1, 1, 1]} : vector<8x8x256xf32> to vector<1x8x256xf32>
    %49 = vector.shape_cast %48 : vector<1x8x256xf32> to vector<8x256xf32>
    %50 = vector.extract_strided_slice %29 {offsets = [4, 0, 0], sizes = [1, 8, 256], strides = [1, 1, 1]} : vector<8x8x256xf32> to vector<1x8x256xf32>
    %51 = vector.shape_cast %50 : vector<1x8x256xf32> to vector<8x256xf32>
    %52 = arith.addf %49, %51 : vector<8x256xf32>
    %c24 = arith.constant 24 : index
    %c0_19 = arith.constant 0 : index
    %53 = vector.load %arg22[%c24, %c0_19] : memref<64x256xf32, #tpu.memory_space<vmem>>, vector<8x256xf32>
    tpu.vector_store %arg22[%c24, %c0_19], %52 {strides = array<i32>} : memref<64x256xf32, #tpu.memory_space<vmem>>, vector<8x256xf32>,
    %54 = vector.extract_strided_slice %28 {offsets = [4, 0, 0], sizes = [1, 8, 256], strides = [1, 1, 1]} : vector<8x8x256xf32> to vector<1x8x256xf32>
    %55 = vector.shape_cast %54 : vector<1x8x256xf32> to vector<8x256xf32>
    %56 = vector.extract_strided_slice %29 {offsets = [3, 0, 0], sizes = [1, 8, 256], strides = [1, 1, 1]} : vector<8x8x256xf32> to vector<1x8x256xf32>
    %57 = vector.shape_cast %56 : vector<1x8x256xf32> to vector<8x256xf32>
    %58 = arith.addf %55, %57 : vector<8x256xf32>
    %c32 = arith.constant 32 : index
    %c0_20 = arith.constant 0 : index
    %59 = vector.load %arg22[%c32, %c0_20] : memref<64x256xf32, #tpu.memory_space<vmem>>, vector<8x256xf32>
    tpu.vector_store %arg22[%c32, %c0_20], %58 {strides = array<i32>} : memref<64x256xf32, #tpu.memory_space<vmem>>, vector<8x256xf32>,
    %60 = vector.extract_strided_slice %28 {offsets = [5, 0, 0], sizes = [1, 8, 256], strides = [1, 1, 1]} : vector<8x8x256xf32> to vector<1x8x256xf32>
    %61 = vector.shape_cast %60 : vector<1x8x256xf32> to vector<8x256xf32>
    %62 = vector.extract_strided_slice %29 {offsets = [2, 0, 0], sizes = [1, 8, 256], strides = [1, 1, 1]} : vector<8x8x256xf32> to vector<1x8x256xf32>
    %63 = vector.shape_cast %62 : vector<1x8x256xf32> to vector<8x256xf32>
    %64 = arith.addf %61, %63 : vector<8x256xf32>
    %c40 = arith.constant 40 : index
    %c0_21 = arith.constant 0 : index
    %65 = vector.load %arg22[%c40, %c0_21] : memref<64x256xf32, #tpu.memory_space<vmem>>, vector<8x256xf32>
    tpu.vector_store %arg22[%c40, %c0_21], %64 {strides = array<i32>} : memref<64x256xf32, #tpu.memory_space<vmem>>, vector<8x256xf32>,
    %66 = vector.extract_strided_slice %28 {offsets = [6, 0, 0], sizes = [1, 8, 256], strides = [1, 1, 1]} : vector<8x8x256xf32> to vector<1x8x256xf32>
    %67 = vector.shape_cast %66 : vector<1x8x256xf32> to vector<8x256xf32>
    %68 = vector.extract_strided_slice %29 {offsets = [1, 0, 0], sizes = [1, 8, 256], strides = [1, 1, 1]} : vector<8x8x256xf32> to vector<1x8x256xf32>
    %69 = vector.shape_cast %68 : vector<1x8x256xf32> to vector<8x256xf32>
    %70 = arith.addf %67, %69 : vector<8x256xf32>
    %c48 = arith.constant 48 : index
    %c0_22 = arith.constant 0 : index
    %71 = vector.load %arg22[%c48, %c0_22] : memref<64x256xf32, #tpu.memory_space<vmem>>, vector<8x256xf32>
    tpu.vector_store %arg22[%c48, %c0_22], %70 {strides = array<i32>} : memref<64x256xf32, #tpu.memory_space<vmem>>, vector<8x256xf32>,
    %72 = vector.extract_strided_slice %28 {offsets = [7, 0, 0], sizes = [1, 8, 256], strides = [1, 1, 1]} : vector<8x8x256xf32> to vector<1x8x256xf32>
    %73 = vector.shape_cast %72 : vector<1x8x256xf32> to vector<8x256xf32>
    %74 = vector.extract_strided_slice %29 {offsets = [0, 0, 0], sizes = [1, 8, 256], strides = [1, 1, 1]} : vector<8x8x256xf32> to vector<1x8x256xf32>
    %75 = vector.shape_cast %74 : vector<1x8x256xf32> to vector<8x256xf32>
    %76 = arith.addf %73, %75 : vector<8x256xf32>
    %c56 = arith.constant 56 : index
    %c0_23 = arith.constant 0 : index
    %77 = vector.load %arg22[%c56, %c0_23] : memref<64x256xf32, #tpu.memory_space<vmem>>, vector<8x256xf32>
    tpu.vector_store %arg22[%c56, %c0_23], %76 {strides = array<i32>} : memref<64x256xf32, #tpu.memory_space<vmem>>, vector<8x256xf32>,
    %cst_24 = arith.constant 0.000000e+00 : f32
    %78 = vector.broadcast %cst_24 : f32 to vector<8x64xf32>
    %cst_25 = arith.constant 0.000000e+00 : f32
    %79 = vector.broadcast %cst_25 : f32 to vector<8x64xf32>
    %c0_26 = arith.constant 0 : index
    %c0_27 = arith.constant 0 : index
    %80 = vector.load %arg22[%c0_26, %c0_27] : memref<64x256xf32, #tpu.memory_space<vmem>>, vector<8x256xf32>
    %cst_28 = arith.constant dense<0.000000e+00> : vector<8x256xf32>
    %81 = tpu.matmul %78, %16, %cst_28 {dimension_numbers = #tpu.dot_dimension_numbers<[1], [0], [0], [1], [0, 0, 1, 1], [], []>} : vector<8x64xf32>, vector<64x256xf32>, vector<8x256xf32> -> vector<8x256xf32>
    %82 = arith.addf %80, %81 : vector<8x256xf32>
    %83 = arith.negf %82 : vector<8x256xf32>
    %84 = math.exp %83 : vector<8x256xf32>
    %cst_29 = arith.constant 1.000000e+00 : f32
    %85 = vector.broadcast %cst_29 : f32 to vector<8x256xf32>
    %86 = arith.addf %85, %84 : vector<8x256xf32>
    %87 = arith.divf %85, %86 : vector<8x256xf32>
    %88 = vector.extract_strided_slice %82 {offsets = [0, 128], sizes = [8, 128], strides = [1, 1]} : vector<8x256xf32> to vector<8x128xf32>
    %89 = math.tanh %88 : vector<8x128xf32>
    %90 = vector.extract_strided_slice %87 {offsets = [0, 0], sizes = [8, 64], strides = [1, 1]} : vector<8x256xf32> to vector<8x64xf32>
    %91 = vector.extract_strided_slice %87 {offsets = [0, 64], sizes = [8, 64], strides = [1, 1]} : vector<8x256xf32> to vector<8x64xf32>
    %92 = vector.extract_strided_slice %89 {offsets = [0, 0], sizes = [8, 64], strides = [1, 1]} : vector<8x128xf32> to vector<8x64xf32>
    %93 = vector.extract_strided_slice %87 {offsets = [0, 192], sizes = [8, 64], strides = [1, 1]} : vector<8x256xf32> to vector<8x64xf32>
    %94 = arith.mulf %91, %79 : vector<8x64xf32>
    %95 = arith.mulf %90, %92 : vector<8x64xf32>
    %96 = arith.addf %94, %95 : vector<8x64xf32>
    %97 = math.tanh %96 : vector<8x64xf32>
    %98 = arith.mulf %93, %97 : vector<8x64xf32>
    %99 = vector.extract_strided_slice %98 {offsets = [0, 0], sizes = [8, 32], strides = [1, 1]} : vector<8x64xf32> to vector<8x32xf32>
    %c0_30 = arith.constant 0 : index
    %c0_31 = arith.constant 0 : index
    %100 = vector.load %arg23[%c0_30, %c0_31] : memref<64x64xf32, #tpu.memory_space<vmem>>, vector<8x32xf32>
    tpu.vector_store %arg23[%c0_30, %c0_31], %99 {strides = array<i32>} : memref<64x64xf32, #tpu.memory_space<vmem>>, vector<8x32xf32>,
    %101 = vector.extract_strided_slice %98 {offsets = [0, 32], sizes = [8, 32], strides = [1, 1]} : vector<8x64xf32> to vector<8x32xf32>
    %c56_32 = arith.constant 56 : index
    %c32_33 = arith.constant 32 : index
    %102 = vector.load %arg23[%c56_32, %c32_33] : memref<64x64xf32, #tpu.memory_space<vmem>>, vector<8x32xf32>
    tpu.vector_store %arg23[%c56_32, %c32_33], %101 {strides = array<i32>} : memref<64x64xf32, #tpu.memory_space<vmem>>, vector<8x32xf32>,
    %c8_34 = arith.constant 8 : index
    %c0_35 = arith.constant 0 : index
    %103 = vector.load %arg22[%c8_34, %c0_35] : memref<64x256xf32, #tpu.memory_space<vmem>>, vector<8x256xf32>
    %cst_36 = arith.constant dense<0.000000e+00> : vector<8x256xf32>
    %104 = tpu.matmul %98, %16, %cst_36 {dimension_numbers = #tpu.dot_dimension_numbers<[1], [0], [0], [1], [0, 0, 1, 1], [], []>} : vector<8x64xf32>, vector<64x256xf32>, vector<8x256xf32> -> vector<8x256xf32>
    %105 = arith.addf %103, %104 : vector<8x256xf32>
    %106 = arith.negf %105 : vector<8x256xf32>
    %107 = math.exp %106 : vector<8x256xf32>
    %cst_37 = arith.constant 1.000000e+00 : f32
    %108 = vector.broadcast %cst_37 : f32 to vector<8x256xf32>
    %109 = arith.addf %108, %107 : vector<8x256xf32>
    %110 = arith.divf %108, %109 : vector<8x256xf32>
    %111 = vector.extract_strided_slice %105 {offsets = [0, 128], sizes = [8, 128], strides = [1, 1]} : vector<8x256xf32> to vector<8x128xf32>
    %112 = math.tanh %111 : vector<8x128xf32>
    %113 = vector.extract_strided_slice %110 {offsets = [0, 0], sizes = [8, 64], strides = [1, 1]} : vector<8x256xf32> to vector<8x64xf32>
    %114 = vector.extract_strided_slice %110 {offsets = [0, 64], sizes = [8, 64], strides = [1, 1]} : vector<8x256xf32> to vector<8x64xf32>
    %115 = vector.extract_strided_slice %112 {offsets = [0, 0], sizes = [8, 64], strides = [1, 1]} : vector<8x128xf32> to vector<8x64xf32>
    %116 = vector.extract_strided_slice %110 {offsets = [0, 192], sizes = [8, 64], strides = [1, 1]} : vector<8x256xf32> to vector<8x64xf32>
    %117 = arith.mulf %114, %96 : vector<8x64xf32>
    %118 = arith.mulf %113, %115 : vector<8x64xf32>
    %119 = arith.addf %117, %118 : vector<8x64xf32>
    %120 = math.tanh %119 : vector<8x64xf32>
    %121 = arith.mulf %116, %120 : vector<8x64xf32>
    %122 = vector.extract_strided_slice %121 {offsets = [0, 0], sizes = [8, 32], strides = [1, 1]} : vector<8x64xf32> to vector<8x32xf32>
    %c8_38 = arith.constant 8 : index
    %c0_39 = arith.constant 0 : index
    %123 = vector.load %arg23[%c8_38, %c0_39] : memref<64x64xf32, #tpu.memory_space<vmem>>, vector<8x32xf32>
    tpu.vector_store %arg23[%c8_38, %c0_39], %122 {strides = array<i32>} : memref<64x64xf32, #tpu.memory_space<vmem>>, vector<8x32xf32>,
    %124 = vector.extract_strided_slice %121 {offsets = [0, 32], sizes = [8, 32], strides = [1, 1]} : vector<8x64xf32> to vector<8x32xf32>
    %c48_40 = arith.constant 48 : index
    %c32_41 = arith.constant 32 : index
    %125 = vector.load %arg23[%c48_40, %c32_41] : memref<64x64xf32, #tpu.memory_space<vmem>>, vector<8x32xf32>
    tpu.vector_store %arg23[%c48_40, %c32_41], %124 {strides = array<i32>} : memref<64x64xf32, #tpu.memory_space<vmem>>, vector<8x32xf32>,
    %c16_42 = arith.constant 16 : index
    %c0_43 = arith.constant 0 : index
    %126 = vector.load %arg22[%c16_42, %c0_43] : memref<64x256xf32, #tpu.memory_space<vmem>>, vector<8x256xf32>
    %cst_44 = arith.constant dense<0.000000e+00> : vector<8x256xf32>
    %127 = tpu.matmul %121, %16, %cst_44 {dimension_numbers = #tpu.dot_dimension_numbers<[1], [0], [0], [1], [0, 0, 1, 1], [], []>} : vector<8x64xf32>, vector<64x256xf32>, vector<8x256xf32> -> vector<8x256xf32>
    %128 = arith.addf %126, %127 : vector<8x256xf32>
    %129 = arith.negf %128 : vector<8x256xf32>
    %130 = math.exp %129 : vector<8x256xf32>
    %cst_45 = arith.constant 1.000000e+00 : f32
    %131 = vector.broadcast %cst_45 : f32 to vector<8x256xf32>
    %132 = arith.addf %131, %130 : vector<8x256xf32>
    %133 = arith.divf %131, %132 : vector<8x256xf32>
    %134 = vector.extract_strided_slice %128 {offsets = [0, 128], sizes = [8, 128], strides = [1, 1]} : vector<8x256xf32> to vector<8x128xf32>
    %135 = math.tanh %134 : vector<8x128xf32>
    %136 = vector.extract_strided_slice %133 {offsets = [0, 0], sizes = [8, 64], strides = [1, 1]} : vector<8x256xf32> to vector<8x64xf32>
    %137 = vector.extract_strided_slice %133 {offsets = [0, 64], sizes = [8, 64], strides = [1, 1]} : vector<8x256xf32> to vector<8x64xf32>
    %138 = vector.extract_strided_slice %135 {offsets = [0, 0], sizes = [8, 64], strides = [1, 1]} : vector<8x128xf32> to vector<8x64xf32>
    %139 = vector.extract_strided_slice %133 {offsets = [0, 192], sizes = [8, 64], strides = [1, 1]} : vector<8x256xf32> to vector<8x64xf32>
    %140 = arith.mulf %137, %119 : vector<8x64xf32>
    %141 = arith.mulf %136, %138 : vector<8x64xf32>
    %142 = arith.addf %140, %141 : vector<8x64xf32>
    %143 = math.tanh %142 : vector<8x64xf32>
    %144 = arith.mulf %139, %143 : vector<8x64xf32>
    %145 = vector.extract_strided_slice %144 {offsets = [0, 0], sizes = [8, 32], strides = [1, 1]} : vector<8x64xf32> to vector<8x32xf32>
    %c16_46 = arith.constant 16 : index
    %c0_47 = arith.constant 0 : index
    %146 = vector.load %arg23[%c16_46, %c0_47] : memref<64x64xf32, #tpu.memory_space<vmem>>, vector<8x32xf32>
    tpu.vector_store %arg23[%c16_46, %c0_47], %145 {strides = array<i32>} : memref<64x64xf32, #tpu.memory_space<vmem>>, vector<8x32xf32>,
    %147 = vector.extract_strided_slice %144 {offsets = [0, 32], sizes = [8, 32], strides = [1, 1]} : vector<8x64xf32> to vector<8x32xf32>
    %c40_48 = arith.constant 40 : index
    %c32_49 = arith.constant 32 : index
    %148 = vector.load %arg23[%c40_48, %c32_49] : memref<64x64xf32, #tpu.memory_space<vmem>>, vector<8x32xf32>
    tpu.vector_store %arg23[%c40_48, %c32_49], %147 {strides = array<i32>} : memref<64x64xf32, #tpu.memory_space<vmem>>, vector<8x32xf32>,
    %c24_50 = arith.constant 24 : index
    %c0_51 = arith.constant 0 : index
    %149 = vector.load %arg22[%c24_50, %c0_51] : memref<64x256xf32, #tpu.memory_space<vmem>>, vector<8x256xf32>
    %cst_52 = arith.constant dense<0.000000e+00> : vector<8x256xf32>
    %150 = tpu.matmul %144, %16, %cst_52 {dimension_numbers = #tpu.dot_dimension_numbers<[1], [0], [0], [1], [0, 0, 1, 1], [], []>} : vector<8x64xf32>, vector<64x256xf32>, vector<8x256xf32> -> vector<8x256xf32>
    %151 = arith.addf %149, %150 : vector<8x256xf32>
    %152 = arith.negf %151 : vector<8x256xf32>
    %153 = math.exp %152 : vector<8x256xf32>
    %cst_53 = arith.constant 1.000000e+00 : f32
    %154 = vector.broadcast %cst_53 : f32 to vector<8x256xf32>
    %155 = arith.addf %154, %153 : vector<8x256xf32>
    %156 = arith.divf %154, %155 : vector<8x256xf32>
    %157 = vector.extract_strided_slice %151 {offsets = [0, 128], sizes = [8, 128], strides = [1, 1]} : vector<8x256xf32> to vector<8x128xf32>
    %158 = math.tanh %157 : vector<8x128xf32>
    %159 = vector.extract_strided_slice %156 {offsets = [0, 0], sizes = [8, 64], strides = [1, 1]} : vector<8x256xf32> to vector<8x64xf32>
    %160 = vector.extract_strided_slice %156 {offsets = [0, 64], sizes = [8, 64], strides = [1, 1]} : vector<8x256xf32> to vector<8x64xf32>
    %161 = vector.extract_strided_slice %158 {offsets = [0, 0], sizes = [8, 64], strides = [1, 1]} : vector<8x128xf32> to vector<8x64xf32>
    %162 = vector.extract_strided_slice %156 {offsets = [0, 192], sizes = [8, 64], strides = [1, 1]} : vector<8x256xf32> to vector<8x64xf32>
    %163 = arith.mulf %160, %142 : vector<8x64xf32>
    %164 = arith.mulf %159, %161 : vector<8x64xf32>
    %165 = arith.addf %163, %164 : vector<8x64xf32>
    %166 = math.tanh %165 : vector<8x64xf32>
    %167 = arith.mulf %162, %166 : vector<8x64xf32>
    %168 = vector.extract_strided_slice %167 {offsets = [0, 0], sizes = [8, 32], strides = [1, 1]} : vector<8x64xf32> to vector<8x32xf32>
    %c24_54 = arith.constant 24 : index
    %c0_55 = arith.constant 0 : index
    %169 = vector.load %arg23[%c24_54, %c0_55] : memref<64x64xf32, #tpu.memory_space<vmem>>, vector<8x32xf32>
    tpu.vector_store %arg23[%c24_54, %c0_55], %168 {strides = array<i32>} : memref<64x64xf32, #tpu.memory_space<vmem>>, vector<8x32xf32>,
    %170 = vector.extract_strided_slice %167 {offsets = [0, 32], sizes = [8, 32], strides = [1, 1]} : vector<8x64xf32> to vector<8x32xf32>
    %c32_56 = arith.constant 32 : index
    %c32_57 = arith.constant 32 : index
    %171 = vector.load %arg23[%c32_56, %c32_57] : memref<64x64xf32, #tpu.memory_space<vmem>>, vector<8x32xf32>
    tpu.vector_store %arg23[%c32_56, %c32_57], %170 {strides = array<i32>} : memref<64x64xf32, #tpu.memory_space<vmem>>, vector<8x32xf32>,
    %c32_58 = arith.constant 32 : index
    %c0_59 = arith.constant 0 : index
    %172 = vector.load %arg22[%c32_58, %c0_59] : memref<64x256xf32, #tpu.memory_space<vmem>>, vector<8x256xf32>
    %cst_60 = arith.constant dense<0.000000e+00> : vector<8x256xf32>
    %173 = tpu.matmul %167, %16, %cst_60 {dimension_numbers = #tpu.dot_dimension_numbers<[1], [0], [0], [1], [0, 0, 1, 1], [], []>} : vector<8x64xf32>, vector<64x256xf32>, vector<8x256xf32> -> vector<8x256xf32>
    %174 = arith.addf %172, %173 : vector<8x256xf32>
    %175 = arith.negf %174 : vector<8x256xf32>
    %176 = math.exp %175 : vector<8x256xf32>
    %cst_61 = arith.constant 1.000000e+00 : f32
    %177 = vector.broadcast %cst_61 : f32 to vector<8x256xf32>
    %178 = arith.addf %177, %176 : vector<8x256xf32>
    %179 = arith.divf %177, %178 : vector<8x256xf32>
    %180 = vector.extract_strided_slice %174 {offsets = [0, 128], sizes = [8, 128], strides = [1, 1]} : vector<8x256xf32> to vector<8x128xf32>
    %181 = math.tanh %180 : vector<8x128xf32>
    %182 = vector.extract_strided_slice %179 {offsets = [0, 0], sizes = [8, 64], strides = [1, 1]} : vector<8x256xf32> to vector<8x64xf32>
    %183 = vector.extract_strided_slice %179 {offsets = [0, 64], sizes = [8, 64], strides = [1, 1]} : vector<8x256xf32> to vector<8x64xf32>
    %184 = vector.extract_strided_slice %181 {offsets = [0, 0], sizes = [8, 64], strides = [1, 1]} : vector<8x128xf32> to vector<8x64xf32>
    %185 = vector.extract_strided_slice %179 {offsets = [0, 192], sizes = [8, 64], strides = [1, 1]} : vector<8x256xf32> to vector<8x64xf32>
    %186 = arith.mulf %183, %165 : vector<8x64xf32>
    %187 = arith.mulf %182, %184 : vector<8x64xf32>
    %188 = arith.addf %186, %187 : vector<8x64xf32>
    %189 = math.tanh %188 : vector<8x64xf32>
    %190 = arith.mulf %185, %189 : vector<8x64xf32>
    %191 = vector.extract_strided_slice %190 {offsets = [0, 0], sizes = [8, 32], strides = [1, 1]} : vector<8x64xf32> to vector<8x32xf32>
    %c32_62 = arith.constant 32 : index
    %c0_63 = arith.constant 0 : index
    %192 = vector.load %arg23[%c32_62, %c0_63] : memref<64x64xf32, #tpu.memory_space<vmem>>, vector<8x32xf32>
    tpu.vector_store %arg23[%c32_62, %c0_63], %191 {strides = array<i32>} : memref<64x64xf32, #tpu.memory_space<vmem>>, vector<8x32xf32>,
    %193 = vector.extract_strided_slice %190 {offsets = [0, 32], sizes = [8, 32], strides = [1, 1]} : vector<8x64xf32> to vector<8x32xf32>
    %c24_64 = arith.constant 24 : index
    %c32_65 = arith.constant 32 : index
    %194 = vector.load %arg23[%c24_64, %c32_65] : memref<64x64xf32, #tpu.memory_space<vmem>>, vector<8x32xf32>
    tpu.vector_store %arg23[%c24_64, %c32_65], %193 {strides = array<i32>} : memref<64x64xf32, #tpu.memory_space<vmem>>, vector<8x32xf32>,
    %c40_66 = arith.constant 40 : index
    %c0_67 = arith.constant 0 : index
    %195 = vector.load %arg22[%c40_66, %c0_67] : memref<64x256xf32, #tpu.memory_space<vmem>>, vector<8x256xf32>
    %cst_68 = arith.constant dense<0.000000e+00> : vector<8x256xf32>
    %196 = tpu.matmul %190, %16, %cst_68 {dimension_numbers = #tpu.dot_dimension_numbers<[1], [0], [0], [1], [0, 0, 1, 1], [], []>} : vector<8x64xf32>, vector<64x256xf32>, vector<8x256xf32> -> vector<8x256xf32>
    %197 = arith.addf %195, %196 : vector<8x256xf32>
    %198 = arith.negf %197 : vector<8x256xf32>
    %199 = math.exp %198 : vector<8x256xf32>
    %cst_69 = arith.constant 1.000000e+00 : f32
    %200 = vector.broadcast %cst_69 : f32 to vector<8x256xf32>
    %201 = arith.addf %200, %199 : vector<8x256xf32>
    %202 = arith.divf %200, %201 : vector<8x256xf32>
    %203 = vector.extract_strided_slice %197 {offsets = [0, 128], sizes = [8, 128], strides = [1, 1]} : vector<8x256xf32> to vector<8x128xf32>
    %204 = math.tanh %203 : vector<8x128xf32>
    %205 = vector.extract_strided_slice %202 {offsets = [0, 0], sizes = [8, 64], strides = [1, 1]} : vector<8x256xf32> to vector<8x64xf32>
    %206 = vector.extract_strided_slice %202 {offsets = [0, 64], sizes = [8, 64], strides = [1, 1]} : vector<8x256xf32> to vector<8x64xf32>
    %207 = vector.extract_strided_slice %204 {offsets = [0, 0], sizes = [8, 64], strides = [1, 1]} : vector<8x128xf32> to vector<8x64xf32>
    %208 = vector.extract_strided_slice %202 {offsets = [0, 192], sizes = [8, 64], strides = [1, 1]} : vector<8x256xf32> to vector<8x64xf32>
    %209 = arith.mulf %206, %188 : vector<8x64xf32>
    %210 = arith.mulf %205, %207 : vector<8x64xf32>
    %211 = arith.addf %209, %210 : vector<8x64xf32>
    %212 = math.tanh %211 : vector<8x64xf32>
    %213 = arith.mulf %208, %212 : vector<8x64xf32>
    %214 = vector.extract_strided_slice %213 {offsets = [0, 0], sizes = [8, 32], strides = [1, 1]} : vector<8x64xf32> to vector<8x32xf32>
    %c40_70 = arith.constant 40 : index
    %c0_71 = arith.constant 0 : index
    %215 = vector.load %arg23[%c40_70, %c0_71] : memref<64x64xf32, #tpu.memory_space<vmem>>, vector<8x32xf32>
    tpu.vector_store %arg23[%c40_70, %c0_71], %214 {strides = array<i32>} : memref<64x64xf32, #tpu.memory_space<vmem>>, vector<8x32xf32>,
    %216 = vector.extract_strided_slice %213 {offsets = [0, 32], sizes = [8, 32], strides = [1, 1]} : vector<8x64xf32> to vector<8x32xf32>
    %c16_72 = arith.constant 16 : index
    %c32_73 = arith.constant 32 : index
    %217 = vector.load %arg23[%c16_72, %c32_73] : memref<64x64xf32, #tpu.memory_space<vmem>>, vector<8x32xf32>
    tpu.vector_store %arg23[%c16_72, %c32_73], %216 {strides = array<i32>} : memref<64x64xf32, #tpu.memory_space<vmem>>, vector<8x32xf32>,
    %c48_74 = arith.constant 48 : index
    %c0_75 = arith.constant 0 : index
    %218 = vector.load %arg22[%c48_74, %c0_75] : memref<64x256xf32, #tpu.memory_space<vmem>>, vector<8x256xf32>
    %cst_76 = arith.constant dense<0.000000e+00> : vector<8x256xf32>
    %219 = tpu.matmul %213, %16, %cst_76 {dimension_numbers = #tpu.dot_dimension_numbers<[1], [0], [0], [1], [0, 0, 1, 1], [], []>} : vector<8x64xf32>, vector<64x256xf32>, vector<8x256xf32> -> vector<8x256xf32>
    %220 = arith.addf %218, %219 : vector<8x256xf32>
    %221 = arith.negf %220 : vector<8x256xf32>
    %222 = math.exp %221 : vector<8x256xf32>
    %cst_77 = arith.constant 1.000000e+00 : f32
    %223 = vector.broadcast %cst_77 : f32 to vector<8x256xf32>
    %224 = arith.addf %223, %222 : vector<8x256xf32>
    %225 = arith.divf %223, %224 : vector<8x256xf32>
    %226 = vector.extract_strided_slice %220 {offsets = [0, 128], sizes = [8, 128], strides = [1, 1]} : vector<8x256xf32> to vector<8x128xf32>
    %227 = math.tanh %226 : vector<8x128xf32>
    %228 = vector.extract_strided_slice %225 {offsets = [0, 0], sizes = [8, 64], strides = [1, 1]} : vector<8x256xf32> to vector<8x64xf32>
    %229 = vector.extract_strided_slice %225 {offsets = [0, 64], sizes = [8, 64], strides = [1, 1]} : vector<8x256xf32> to vector<8x64xf32>
    %230 = vector.extract_strided_slice %227 {offsets = [0, 0], sizes = [8, 64], strides = [1, 1]} : vector<8x128xf32> to vector<8x64xf32>
    %231 = vector.extract_strided_slice %225 {offsets = [0, 192], sizes = [8, 64], strides = [1, 1]} : vector<8x256xf32> to vector<8x64xf32>
    %232 = arith.mulf %229, %211 : vector<8x64xf32>
    %233 = arith.mulf %228, %230 : vector<8x64xf32>
    %234 = arith.addf %232, %233 : vector<8x64xf32>
    %235 = math.tanh %234 : vector<8x64xf32>
    %236 = arith.mulf %231, %235 : vector<8x64xf32>
    %237 = vector.extract_strided_slice %236 {offsets = [0, 0], sizes = [8, 32], strides = [1, 1]} : vector<8x64xf32> to vector<8x32xf32>
    %c48_78 = arith.constant 48 : index
    %c0_79 = arith.constant 0 : index
    %238 = vector.load %arg23[%c48_78, %c0_79] : memref<64x64xf32, #tpu.memory_space<vmem>>, vector<8x32xf32>
    tpu.vector_store %arg23[%c48_78, %c0_79], %237 {strides = array<i32>} : memref<64x64xf32, #tpu.memory_space<vmem>>, vector<8x32xf32>,
    %239 = vector.extract_strided_slice %236 {offsets = [0, 32], sizes = [8, 32], strides = [1, 1]} : vector<8x64xf32> to vector<8x32xf32>
    %c8_80 = arith.constant 8 : index
    %c32_81 = arith.constant 32 : index
    %240 = vector.load %arg23[%c8_80, %c32_81] : memref<64x64xf32, #tpu.memory_space<vmem>>, vector<8x32xf32>
    tpu.vector_store %arg23[%c8_80, %c32_81], %239 {strides = array<i32>} : memref<64x64xf32, #tpu.memory_space<vmem>>, vector<8x32xf32>,
    %c56_82 = arith.constant 56 : index
    %c0_83 = arith.constant 0 : index
    %241 = vector.load %arg22[%c56_82, %c0_83] : memref<64x256xf32, #tpu.memory_space<vmem>>, vector<8x256xf32>
    %cst_84 = arith.constant dense<0.000000e+00> : vector<8x256xf32>
    %242 = tpu.matmul %236, %16, %cst_84 {dimension_numbers = #tpu.dot_dimension_numbers<[1], [0], [0], [1], [0, 0, 1, 1], [], []>} : vector<8x64xf32>, vector<64x256xf32>, vector<8x256xf32> -> vector<8x256xf32>
    %243 = arith.addf %241, %242 : vector<8x256xf32>
    %244 = arith.negf %243 : vector<8x256xf32>
    %245 = math.exp %244 : vector<8x256xf32>
    %cst_85 = arith.constant 1.000000e+00 : f32
    %246 = vector.broadcast %cst_85 : f32 to vector<8x256xf32>
    %247 = arith.addf %246, %245 : vector<8x256xf32>
    %248 = arith.divf %246, %247 : vector<8x256xf32>
    %249 = vector.extract_strided_slice %243 {offsets = [0, 128], sizes = [8, 128], strides = [1, 1]} : vector<8x256xf32> to vector<8x128xf32>
    %250 = math.tanh %249 : vector<8x128xf32>
    %251 = vector.extract_strided_slice %248 {offsets = [0, 0], sizes = [8, 64], strides = [1, 1]} : vector<8x256xf32> to vector<8x64xf32>
    %252 = vector.extract_strided_slice %248 {offsets = [0, 64], sizes = [8, 64], strides = [1, 1]} : vector<8x256xf32> to vector<8x64xf32>
    %253 = vector.extract_strided_slice %250 {offsets = [0, 0], sizes = [8, 64], strides = [1, 1]} : vector<8x128xf32> to vector<8x64xf32>
    %254 = vector.extract_strided_slice %248 {offsets = [0, 192], sizes = [8, 64], strides = [1, 1]} : vector<8x256xf32> to vector<8x64xf32>
    %255 = arith.mulf %252, %234 : vector<8x64xf32>
    %256 = arith.mulf %251, %253 : vector<8x64xf32>
    %257 = arith.addf %255, %256 : vector<8x64xf32>
    %258 = math.tanh %257 : vector<8x64xf32>
    %259 = arith.mulf %254, %258 : vector<8x64xf32>
    %260 = vector.extract_strided_slice %259 {offsets = [0, 0], sizes = [8, 32], strides = [1, 1]} : vector<8x64xf32> to vector<8x32xf32>
    %c56_86 = arith.constant 56 : index
    %c0_87 = arith.constant 0 : index
    %261 = vector.load %arg23[%c56_86, %c0_87] : memref<64x64xf32, #tpu.memory_space<vmem>>, vector<8x32xf32>
    tpu.vector_store %arg23[%c56_86, %c0_87], %260 {strides = array<i32>} : memref<64x64xf32, #tpu.memory_space<vmem>>, vector<8x32xf32>,
    %262 = vector.extract_strided_slice %259 {offsets = [0, 32], sizes = [8, 32], strides = [1, 1]} : vector<8x64xf32> to vector<8x32xf32>
    %c0_88 = arith.constant 0 : index
    %c32_89 = arith.constant 32 : index
    %263 = vector.load %arg23[%c0_88, %c32_89] : memref<64x64xf32, #tpu.memory_space<vmem>>, vector<8x32xf32>
    tpu.vector_store %arg23[%c0_88, %c32_89], %262 {strides = array<i32>} : memref<64x64xf32, #tpu.memory_space<vmem>>, vector<8x32xf32>,
    %c0_90 = arith.constant 0 : index
    %c0_91 = arith.constant 0 : index
    %264 = vector.load %arg23[%c0_90, %c0_91] : memref<64x64xf32, #tpu.memory_space<vmem>>, vector<64x64xf32>
    %c0_92 = arith.constant 0 : index
    %c0_93 = arith.constant 0 : index
    %265 = vector.load %arg9[%c0_92, %c0_93] : memref<64x256xf32, #tpu.memory_space<vmem>>, vector<64x256xf32>
    %c0_94 = arith.constant 0 : index
    %c0_95 = arith.constant 0 : index
    %266 = vector.load %arg7[%c0_94, %c0_95] : memref<64x256xf32, #tpu.memory_space<vmem>>, vector<64x256xf32>
    %267 = arith.truncf %264 : vector<64x64xf32> to vector<64x64xbf16>
    %268 = arith.truncf %266 : vector<64x256xf32> to vector<64x256xbf16>
    %cst_96 = arith.constant dense<0.000000e+00> : vector<64x256xf32>
    %269 = tpu.matmul %267, %268, %cst_96 {dimension_numbers = #tpu.dot_dimension_numbers<[1], [0], [0], [1], [0, 0, 1, 1], [], []>} : vector<64x64xbf16>, vector<64x256xbf16>, vector<64x256xf32> -> vector<64x256xf32>
    %c0_97 = arith.constant 0 : index
    %c0_98 = arith.constant 0 : index
    %270 = vector.load %arg10[%c0_97, %c0_98] : memref<1x256xf32, #tpu.memory_space<vmem>>, vector<1x256xf32>
    %271 = vector.broadcast %270 : vector<1x256xf32> to vector<64x256xf32>
    %272 = arith.addf %269, %271 : vector<64x256xf32>
    %c0_99 = arith.constant 0 : index
    %c0_100 = arith.constant 0 : index
    %273 = vector.load %arg8[%c0_99, %c0_100] : memref<64x256xf32, #tpu.memory_space<vmem>>, vector<64x256xf32>
    %274 = arith.truncf %264 : vector<64x64xf32> to vector<64x64xbf16>
    %275 = arith.truncf %273 : vector<64x256xf32> to vector<64x256xbf16>
    %cst_101 = arith.constant dense<0.000000e+00> : vector<64x256xf32>
    %276 = tpu.matmul %274, %275, %cst_101 {dimension_numbers = #tpu.dot_dimension_numbers<[1], [0], [0], [1], [0, 0, 1, 1], [], []>} : vector<64x64xbf16>, vector<64x256xbf16>, vector<64x256xf32> -> vector<64x256xf32>
    %277 = vector.shape_cast %272 : vector<64x256xf32> to vector<8x8x256xf32>
    %278 = vector.shape_cast %276 : vector<64x256xf32> to vector<8x8x256xf32>
    %279 = vector.extract_strided_slice %277 {offsets = [0, 0, 0], sizes = [1, 8, 256], strides = [1, 1, 1]} : vector<8x8x256xf32> to vector<1x8x256xf32>
    %280 = vector.shape_cast %279 : vector<1x8x256xf32> to vector<8x256xf32>
    %281 = vector.extract_strided_slice %278 {offsets = [7, 0, 0], sizes = [1, 8, 256], strides = [1, 1, 1]} : vector<8x8x256xf32> to vector<1x8x256xf32>
    %282 = vector.shape_cast %281 : vector<1x8x256xf32> to vector<8x256xf32>
    %283 = arith.addf %280, %282 : vector<8x256xf32>
    %c0_102 = arith.constant 0 : index
    %c0_103 = arith.constant 0 : index
    %284 = vector.load %arg22[%c0_102, %c0_103] : memref<64x256xf32, #tpu.memory_space<vmem>>, vector<8x256xf32>
    tpu.vector_store %arg22[%c0_102, %c0_103], %283 {strides = array<i32>} : memref<64x256xf32, #tpu.memory_space<vmem>>, vector<8x256xf32>,
    %285 = vector.extract_strided_slice %277 {offsets = [1, 0, 0], sizes = [1, 8, 256], strides = [1, 1, 1]} : vector<8x8x256xf32> to vector<1x8x256xf32>
    %286 = vector.shape_cast %285 : vector<1x8x256xf32> to vector<8x256xf32>
    %287 = vector.extract_strided_slice %278 {offsets = [6, 0, 0], sizes = [1, 8, 256], strides = [1, 1, 1]} : vector<8x8x256xf32> to vector<1x8x256xf32>
    %288 = vector.shape_cast %287 : vector<1x8x256xf32> to vector<8x256xf32>
    %289 = arith.addf %286, %288 : vector<8x256xf32>
    %c8_104 = arith.constant 8 : index
    %c0_105 = arith.constant 0 : index
    %290 = vector.load %arg22[%c8_104, %c0_105] : memref<64x256xf32, #tpu.memory_space<vmem>>, vector<8x256xf32>
    tpu.vector_store %arg22[%c8_104, %c0_105], %289 {strides = array<i32>} : memref<64x256xf32, #tpu.memory_space<vmem>>, vector<8x256xf32>,
    %291 = vector.extract_strided_slice %277 {offsets = [2, 0, 0], sizes = [1, 8, 256], strides = [1, 1, 1]} : vector<8x8x256xf32> to vector<1x8x256xf32>
    %292 = vector.shape_cast %291 : vector<1x8x256xf32> to vector<8x256xf32>
    %293 = vector.extract_strided_slice %278 {offsets = [5, 0, 0], sizes = [1, 8, 256], strides = [1, 1, 1]} : vector<8x8x256xf32> to vector<1x8x256xf32>
    %294 = vector.shape_cast %293 : vector<1x8x256xf32> to vector<8x256xf32>
    %295 = arith.addf %292, %294 : vector<8x256xf32>
    %c16_106 = arith.constant 16 : index
    %c0_107 = arith.constant 0 : index
    %296 = vector.load %arg22[%c16_106, %c0_107] : memref<64x256xf32, #tpu.memory_space<vmem>>, vector<8x256xf32>
    tpu.vector_store %arg22[%c16_106, %c0_107], %295 {strides = array<i32>} : memref<64x256xf32, #tpu.memory_space<vmem>>, vector<8x256xf32>,
    %297 = vector.extract_strided_slice %277 {offsets = [3, 0, 0], sizes = [1, 8, 256], strides = [1, 1, 1]} : vector<8x8x256xf32> to vector<1x8x256xf32>
    %298 = vector.shape_cast %297 : vector<1x8x256xf32> to vector<8x256xf32>
    %299 = vector.extract_strided_slice %278 {offsets = [4, 0, 0], sizes = [1, 8, 256], strides = [1, 1, 1]} : vector<8x8x256xf32> to vector<1x8x256xf32>
    %300 = vector.shape_cast %299 : vector<1x8x256xf32> to vector<8x256xf32>
    %301 = arith.addf %298, %300 : vector<8x256xf32>
    %c24_108 = arith.constant 24 : index
    %c0_109 = arith.constant 0 : index
    %302 = vector.load %arg22[%c24_108, %c0_109] : memref<64x256xf32, #tpu.memory_space<vmem>>, vector<8x256xf32>
    tpu.vector_store %arg22[%c24_108, %c0_109], %301 {strides = array<i32>} : memref<64x256xf32, #tpu.memory_space<vmem>>, vector<8x256xf32>,
    %303 = vector.extract_strided_slice %277 {offsets = [4, 0, 0], sizes = [1, 8, 256], strides = [1, 1, 1]} : vector<8x8x256xf32> to vector<1x8x256xf32>
    %304 = vector.shape_cast %303 : vector<1x8x256xf32> to vector<8x256xf32>
    %305 = vector.extract_strided_slice %278 {offsets = [3, 0, 0], sizes = [1, 8, 256], strides = [1, 1, 1]} : vector<8x8x256xf32> to vector<1x8x256xf32>
    %306 = vector.shape_cast %305 : vector<1x8x256xf32> to vector<8x256xf32>
    %307 = arith.addf %304, %306 : vector<8x256xf32>
    %c32_110 = arith.constant 32 : index
    %c0_111 = arith.constant 0 : index
    %308 = vector.load %arg22[%c32_110, %c0_111] : memref<64x256xf32, #tpu.memory_space<vmem>>, vector<8x256xf32>
    tpu.vector_store %arg22[%c32_110, %c0_111], %307 {strides = array<i32>} : memref<64x256xf32, #tpu.memory_space<vmem>>, vector<8x256xf32>,
    %309 = vector.extract_strided_slice %277 {offsets = [5, 0, 0], sizes = [1, 8, 256], strides = [1, 1, 1]} : vector<8x8x256xf32> to vector<1x8x256xf32>
    %310 = vector.shape_cast %309 : vector<1x8x256xf32> to vector<8x256xf32>
    %311 = vector.extract_strided_slice %278 {offsets = [2, 0, 0], sizes = [1, 8, 256], strides = [1, 1, 1]} : vector<8x8x256xf32> to vector<1x8x256xf32>
    %312 = vector.shape_cast %311 : vector<1x8x256xf32> to vector<8x256xf32>
    %313 = arith.addf %310, %312 : vector<8x256xf32>
    %c40_112 = arith.constant 40 : index
    %c0_113 = arith.constant 0 : index
    %314 = vector.load %arg22[%c40_112, %c0_113] : memref<64x256xf32, #tpu.memory_space<vmem>>, vector<8x256xf32>
    tpu.vector_store %arg22[%c40_112, %c0_113], %313 {strides = array<i32>} : memref<64x256xf32, #tpu.memory_space<vmem>>, vector<8x256xf32>,
    %315 = vector.extract_strided_slice %277 {offsets = [6, 0, 0], sizes = [1, 8, 256], strides = [1, 1, 1]} : vector<8x8x256xf32> to vector<1x8x256xf32>
    %316 = vector.shape_cast %315 : vector<1x8x256xf32> to vector<8x256xf32>
    %317 = vector.extract_strided_slice %278 {offsets = [1, 0, 0], sizes = [1, 8, 256], strides = [1, 1, 1]} : vector<8x8x256xf32> to vector<1x8x256xf32>
    %318 = vector.shape_cast %317 : vector<1x8x256xf32> to vector<8x256xf32>
    %319 = arith.addf %316, %318 : vector<8x256xf32>
    %c48_114 = arith.constant 48 : index
    %c0_115 = arith.constant 0 : index
    %320 = vector.load %arg22[%c48_114, %c0_115] : memref<64x256xf32, #tpu.memory_space<vmem>>, vector<8x256xf32>
    tpu.vector_store %arg22[%c48_114, %c0_115], %319 {strides = array<i32>} : memref<64x256xf32, #tpu.memory_space<vmem>>, vector<8x256xf32>,
    %321 = vector.extract_strided_slice %277 {offsets = [7, 0, 0], sizes = [1, 8, 256], strides = [1, 1, 1]} : vector<8x8x256xf32> to vector<1x8x256xf32>
    %322 = vector.shape_cast %321 : vector<1x8x256xf32> to vector<8x256xf32>
    %323 = vector.extract_strided_slice %278 {offsets = [0, 0, 0], sizes = [1, 8, 256], strides = [1, 1, 1]} : vector<8x8x256xf32> to vector<1x8x256xf32>
    %324 = vector.shape_cast %323 : vector<1x8x256xf32> to vector<8x256xf32>
    %325 = arith.addf %322, %324 : vector<8x256xf32>
    %c56_116 = arith.constant 56 : index
    %c0_117 = arith.constant 0 : index
    %326 = vector.load %arg22[%c56_116, %c0_117] : memref<64x256xf32, #tpu.memory_space<vmem>>, vector<8x256xf32>
    tpu.vector_store %arg22[%c56_116, %c0_117], %325 {strides = array<i32>} : memref<64x256xf32, #tpu.memory_space<vmem>>, vector<8x256xf32>,
    %cst_118 = arith.constant 0.000000e+00 : f32
    %327 = vector.broadcast %cst_118 : f32 to vector<8x64xf32>
    %cst_119 = arith.constant 0.000000e+00 : f32
    %328 = vector.broadcast %cst_119 : f32 to vector<8x64xf32>
    %c0_120 = arith.constant 0 : index
    %c0_121 = arith.constant 0 : index
    %329 = vector.load %arg22[%c0_120, %c0_121] : memref<64x256xf32, #tpu.memory_space<vmem>>, vector<8x256xf32>
    %cst_122 = arith.constant dense<0.000000e+00> : vector<8x256xf32>
    %330 = tpu.matmul %327, %265, %cst_122 {dimension_numbers = #tpu.dot_dimension_numbers<[1], [0], [0], [1], [0, 0, 1, 1], [], []>} : vector<8x64xf32>, vector<64x256xf32>, vector<8x256xf32> -> vector<8x256xf32>
    %331 = arith.addf %329, %330 : vector<8x256xf32>
    %332 = arith.negf %331 : vector<8x256xf32>
    %333 = math.exp %332 : vector<8x256xf32>
    %cst_123 = arith.constant 1.000000e+00 : f32
    %334 = vector.broadcast %cst_123 : f32 to vector<8x256xf32>
    %335 = arith.addf %334, %333 : vector<8x256xf32>
    %336 = arith.divf %334, %335 : vector<8x256xf32>
    %337 = vector.extract_strided_slice %331 {offsets = [0, 128], sizes = [8, 128], strides = [1, 1]} : vector<8x256xf32> to vector<8x128xf32>
    %338 = math.tanh %337 : vector<8x128xf32>
    %339 = vector.extract_strided_slice %336 {offsets = [0, 0], sizes = [8, 64], strides = [1, 1]} : vector<8x256xf32> to vector<8x64xf32>
    %340 = vector.extract_strided_slice %336 {offsets = [0, 64], sizes = [8, 64], strides = [1, 1]} : vector<8x256xf32> to vector<8x64xf32>
    %341 = vector.extract_strided_slice %338 {offsets = [0, 0], sizes = [8, 64], strides = [1, 1]} : vector<8x128xf32> to vector<8x64xf32>
    %342 = vector.extract_strided_slice %336 {offsets = [0, 192], sizes = [8, 64], strides = [1, 1]} : vector<8x256xf32> to vector<8x64xf32>
    %343 = arith.mulf %340, %328 : vector<8x64xf32>
    %344 = arith.mulf %339, %341 : vector<8x64xf32>
    %345 = arith.addf %343, %344 : vector<8x64xf32>
    %346 = math.tanh %345 : vector<8x64xf32>
    %347 = arith.mulf %342, %346 : vector<8x64xf32>
    %348 = vector.extract_strided_slice %347 {offsets = [0, 0], sizes = [8, 32], strides = [1, 1]} : vector<8x64xf32> to vector<8x32xf32>
    %c0_124 = arith.constant 0 : index
    %c0_125 = arith.constant 0 : index
    %349 = vector.load %arg23[%c0_124, %c0_125] : memref<64x64xf32, #tpu.memory_space<vmem>>, vector<8x32xf32>
    tpu.vector_store %arg23[%c0_124, %c0_125], %348 {strides = array<i32>} : memref<64x64xf32, #tpu.memory_space<vmem>>, vector<8x32xf32>,
    %350 = vector.extract_strided_slice %347 {offsets = [0, 32], sizes = [8, 32], strides = [1, 1]} : vector<8x64xf32> to vector<8x32xf32>
    %c56_126 = arith.constant 56 : index
    %c32_127 = arith.constant 32 : index
    %351 = vector.load %arg23[%c56_126, %c32_127] : memref<64x64xf32, #tpu.memory_space<vmem>>, vector<8x32xf32>
    tpu.vector_store %arg23[%c56_126, %c32_127], %350 {strides = array<i32>} : memref<64x64xf32, #tpu.memory_space<vmem>>, vector<8x32xf32>,
    %c8_128 = arith.constant 8 : index
    %c0_129 = arith.constant 0 : index
    %352 = vector.load %arg22[%c8_128, %c0_129] : memref<64x256xf32, #tpu.memory_space<vmem>>, vector<8x256xf32>
    %cst_130 = arith.constant dense<0.000000e+00> : vector<8x256xf32>
    %353 = tpu.matmul %347, %265, %cst_130 {dimension_numbers = #tpu.dot_dimension_numbers<[1], [0], [0], [1], [0, 0, 1, 1], [], []>} : vector<8x64xf32>, vector<64x256xf32>, vector<8x256xf32> -> vector<8x256xf32>
    %354 = arith.addf %352, %353 : vector<8x256xf32>
    %355 = arith.negf %354 : vector<8x256xf32>
    %356 = math.exp %355 : vector<8x256xf32>
    %cst_131 = arith.constant 1.000000e+00 : f32
    %357 = vector.broadcast %cst_131 : f32 to vector<8x256xf32>
    %358 = arith.addf %357, %356 : vector<8x256xf32>
    %359 = arith.divf %357, %358 : vector<8x256xf32>
    %360 = vector.extract_strided_slice %354 {offsets = [0, 128], sizes = [8, 128], strides = [1, 1]} : vector<8x256xf32> to vector<8x128xf32>
    %361 = math.tanh %360 : vector<8x128xf32>
    %362 = vector.extract_strided_slice %359 {offsets = [0, 0], sizes = [8, 64], strides = [1, 1]} : vector<8x256xf32> to vector<8x64xf32>
    %363 = vector.extract_strided_slice %359 {offsets = [0, 64], sizes = [8, 64], strides = [1, 1]} : vector<8x256xf32> to vector<8x64xf32>
    %364 = vector.extract_strided_slice %361 {offsets = [0, 0], sizes = [8, 64], strides = [1, 1]} : vector<8x128xf32> to vector<8x64xf32>
    %365 = vector.extract_strided_slice %359 {offsets = [0, 192], sizes = [8, 64], strides = [1, 1]} : vector<8x256xf32> to vector<8x64xf32>
    %366 = arith.mulf %363, %345 : vector<8x64xf32>
    %367 = arith.mulf %362, %364 : vector<8x64xf32>
    %368 = arith.addf %366, %367 : vector<8x64xf32>
    %369 = math.tanh %368 : vector<8x64xf32>
    %370 = arith.mulf %365, %369 : vector<8x64xf32>
    %371 = vector.extract_strided_slice %370 {offsets = [0, 0], sizes = [8, 32], strides = [1, 1]} : vector<8x64xf32> to vector<8x32xf32>
    %c8_132 = arith.constant 8 : index
    %c0_133 = arith.constant 0 : index
    %372 = vector.load %arg23[%c8_132, %c0_133] : memref<64x64xf32, #tpu.memory_space<vmem>>, vector<8x32xf32>
    tpu.vector_store %arg23[%c8_132, %c0_133], %371 {strides = array<i32>} : memref<64x64xf32, #tpu.memory_space<vmem>>, vector<8x32xf32>,
    %373 = vector.extract_strided_slice %370 {offsets = [0, 32], sizes = [8, 32], strides = [1, 1]} : vector<8x64xf32> to vector<8x32xf32>
    %c48_134 = arith.constant 48 : index
    %c32_135 = arith.constant 32 : index
    %374 = vector.load %arg23[%c48_134, %c32_135] : memref<64x64xf32, #tpu.memory_space<vmem>>, vector<8x32xf32>
    tpu.vector_store %arg23[%c48_134, %c32_135], %373 {strides = array<i32>} : memref<64x64xf32, #tpu.memory_space<vmem>>, vector<8x32xf32>,
    %c16_136 = arith.constant 16 : index
    %c0_137 = arith.constant 0 : index
    %375 = vector.load %arg22[%c16_136, %c0_137] : memref<64x256xf32, #tpu.memory_space<vmem>>, vector<8x256xf32>
    %cst_138 = arith.constant dense<0.000000e+00> : vector<8x256xf32>
    %376 = tpu.matmul %370, %265, %cst_138 {dimension_numbers = #tpu.dot_dimension_numbers<[1], [0], [0], [1], [0, 0, 1, 1], [], []>} : vector<8x64xf32>, vector<64x256xf32>, vector<8x256xf32> -> vector<8x256xf32>
    %377 = arith.addf %375, %376 : vector<8x256xf32>
    %378 = arith.negf %377 : vector<8x256xf32>
    %379 = math.exp %378 : vector<8x256xf32>
    %cst_139 = arith.constant 1.000000e+00 : f32
    %380 = vector.broadcast %cst_139 : f32 to vector<8x256xf32>
    %381 = arith.addf %380, %379 : vector<8x256xf32>
    %382 = arith.divf %380, %381 : vector<8x256xf32>
    %383 = vector.extract_strided_slice %377 {offsets = [0, 128], sizes = [8, 128], strides = [1, 1]} : vector<8x256xf32> to vector<8x128xf32>
    %384 = math.tanh %383 : vector<8x128xf32>
    %385 = vector.extract_strided_slice %382 {offsets = [0, 0], sizes = [8, 64], strides = [1, 1]} : vector<8x256xf32> to vector<8x64xf32>
    %386 = vector.extract_strided_slice %382 {offsets = [0, 64], sizes = [8, 64], strides = [1, 1]} : vector<8x256xf32> to vector<8x64xf32>
    %387 = vector.extract_strided_slice %384 {offsets = [0, 0], sizes = [8, 64], strides = [1, 1]} : vector<8x128xf32> to vector<8x64xf32>
    %388 = vector.extract_strided_slice %382 {offsets = [0, 192], sizes = [8, 64], strides = [1, 1]} : vector<8x256xf32> to vector<8x64xf32>
    %389 = arith.mulf %386, %368 : vector<8x64xf32>
    %390 = arith.mulf %385, %387 : vector<8x64xf32>
    %391 = arith.addf %389, %390 : vector<8x64xf32>
    %392 = math.tanh %391 : vector<8x64xf32>
    %393 = arith.mulf %388, %392 : vector<8x64xf32>
    %394 = vector.extract_strided_slice %393 {offsets = [0, 0], sizes = [8, 32], strides = [1, 1]} : vector<8x64xf32> to vector<8x32xf32>
    %c16_140 = arith.constant 16 : index
    %c0_141 = arith.constant 0 : index
    %395 = vector.load %arg23[%c16_140, %c0_141] : memref<64x64xf32, #tpu.memory_space<vmem>>, vector<8x32xf32>
    tpu.vector_store %arg23[%c16_140, %c0_141], %394 {strides = array<i32>} : memref<64x64xf32, #tpu.memory_space<vmem>>, vector<8x32xf32>,
    %396 = vector.extract_strided_slice %393 {offsets = [0, 32], sizes = [8, 32], strides = [1, 1]} : vector<8x64xf32> to vector<8x32xf32>
    %c40_142 = arith.constant 40 : index
    %c32_143 = arith.constant 32 : index
    %397 = vector.load %arg23[%c40_142, %c32_143] : memref<64x64xf32, #tpu.memory_space<vmem>>, vector<8x32xf32>
    tpu.vector_store %arg23[%c40_142, %c32_143], %396 {strides = array<i32>} : memref<64x64xf32, #tpu.memory_space<vmem>>, vector<8x32xf32>,
    %c24_144 = arith.constant 24 : index
    %c0_145 = arith.constant 0 : index
    %398 = vector.load %arg22[%c24_144, %c0_145] : memref<64x256xf32, #tpu.memory_space<vmem>>, vector<8x256xf32>
    %cst_146 = arith.constant dense<0.000000e+00> : vector<8x256xf32>
    %399 = tpu.matmul %393, %265, %cst_146 {dimension_numbers = #tpu.dot_dimension_numbers<[1], [0], [0], [1], [0, 0, 1, 1], [], []>} : vector<8x64xf32>, vector<64x256xf32>, vector<8x256xf32> -> vector<8x256xf32>
    %400 = arith.addf %398, %399 : vector<8x256xf32>
    %401 = arith.negf %400 : vector<8x256xf32>
    %402 = math.exp %401 : vector<8x256xf32>
    %cst_147 = arith.constant 1.000000e+00 : f32
    %403 = vector.broadcast %cst_147 : f32 to vector<8x256xf32>
    %404 = arith.addf %403, %402 : vector<8x256xf32>
    %405 = arith.divf %403, %404 : vector<8x256xf32>
    %406 = vector.extract_strided_slice %400 {offsets = [0, 128], sizes = [8, 128], strides = [1, 1]} : vector<8x256xf32> to vector<8x128xf32>
    %407 = math.tanh %406 : vector<8x128xf32>
    %408 = vector.extract_strided_slice %405 {offsets = [0, 0], sizes = [8, 64], strides = [1, 1]} : vector<8x256xf32> to vector<8x64xf32>
    %409 = vector.extract_strided_slice %405 {offsets = [0, 64], sizes = [8, 64], strides = [1, 1]} : vector<8x256xf32> to vector<8x64xf32>
    %410 = vector.extract_strided_slice %407 {offsets = [0, 0], sizes = [8, 64], strides = [1, 1]} : vector<8x128xf32> to vector<8x64xf32>
    %411 = vector.extract_strided_slice %405 {offsets = [0, 192], sizes = [8, 64], strides = [1, 1]} : vector<8x256xf32> to vector<8x64xf32>
    %412 = arith.mulf %409, %391 : vector<8x64xf32>
    %413 = arith.mulf %408, %410 : vector<8x64xf32>
    %414 = arith.addf %412, %413 : vector<8x64xf32>
    %415 = math.tanh %414 : vector<8x64xf32>
    %416 = arith.mulf %411, %415 : vector<8x64xf32>
    %417 = vector.extract_strided_slice %416 {offsets = [0, 0], sizes = [8, 32], strides = [1, 1]} : vector<8x64xf32> to vector<8x32xf32>
    %c24_148 = arith.constant 24 : index
    %c0_149 = arith.constant 0 : index
    %418 = vector.load %arg23[%c24_148, %c0_149] : memref<64x64xf32, #tpu.memory_space<vmem>>, vector<8x32xf32>
    tpu.vector_store %arg23[%c24_148, %c0_149], %417 {strides = array<i32>} : memref<64x64xf32, #tpu.memory_space<vmem>>, vector<8x32xf32>,
    %419 = vector.extract_strided_slice %416 {offsets = [0, 32], sizes = [8, 32], strides = [1, 1]} : vector<8x64xf32> to vector<8x32xf32>
    %c32_150 = arith.constant 32 : index
    %c32_151 = arith.constant 32 : index
    %420 = vector.load %arg23[%c32_150, %c32_151] : memref<64x64xf32, #tpu.memory_space<vmem>>, vector<8x32xf32>
    tpu.vector_store %arg23[%c32_150, %c32_151], %419 {strides = array<i32>} : memref<64x64xf32, #tpu.memory_space<vmem>>, vector<8x32xf32>,
    %c32_152 = arith.constant 32 : index
    %c0_153 = arith.constant 0 : index
    %421 = vector.load %arg22[%c32_152, %c0_153] : memref<64x256xf32, #tpu.memory_space<vmem>>, vector<8x256xf32>
    %cst_154 = arith.constant dense<0.000000e+00> : vector<8x256xf32>
    %422 = tpu.matmul %416, %265, %cst_154 {dimension_numbers = #tpu.dot_dimension_numbers<[1], [0], [0], [1], [0, 0, 1, 1], [], []>} : vector<8x64xf32>, vector<64x256xf32>, vector<8x256xf32> -> vector<8x256xf32>
    %423 = arith.addf %421, %422 : vector<8x256xf32>
    %424 = arith.negf %423 : vector<8x256xf32>
    %425 = math.exp %424 : vector<8x256xf32>
    %cst_155 = arith.constant 1.000000e+00 : f32
    %426 = vector.broadcast %cst_155 : f32 to vector<8x256xf32>
    %427 = arith.addf %426, %425 : vector<8x256xf32>
    %428 = arith.divf %426, %427 : vector<8x256xf32>
    %429 = vector.extract_strided_slice %423 {offsets = [0, 128], sizes = [8, 128], strides = [1, 1]} : vector<8x256xf32> to vector<8x128xf32>
    %430 = math.tanh %429 : vector<8x128xf32>
    %431 = vector.extract_strided_slice %428 {offsets = [0, 0], sizes = [8, 64], strides = [1, 1]} : vector<8x256xf32> to vector<8x64xf32>
    %432 = vector.extract_strided_slice %428 {offsets = [0, 64], sizes = [8, 64], strides = [1, 1]} : vector<8x256xf32> to vector<8x64xf32>
    %433 = vector.extract_strided_slice %430 {offsets = [0, 0], sizes = [8, 64], strides = [1, 1]} : vector<8x128xf32> to vector<8x64xf32>
    %434 = vector.extract_strided_slice %428 {offsets = [0, 192], sizes = [8, 64], strides = [1, 1]} : vector<8x256xf32> to vector<8x64xf32>
    %435 = arith.mulf %432, %414 : vector<8x64xf32>
    %436 = arith.mulf %431, %433 : vector<8x64xf32>
    %437 = arith.addf %435, %436 : vector<8x64xf32>
    %438 = math.tanh %437 : vector<8x64xf32>
    %439 = arith.mulf %434, %438 : vector<8x64xf32>
    %440 = vector.extract_strided_slice %439 {offsets = [0, 0], sizes = [8, 32], strides = [1, 1]} : vector<8x64xf32> to vector<8x32xf32>
    %c32_156 = arith.constant 32 : index
    %c0_157 = arith.constant 0 : index
    %441 = vector.load %arg23[%c32_156, %c0_157] : memref<64x64xf32, #tpu.memory_space<vmem>>, vector<8x32xf32>
    tpu.vector_store %arg23[%c32_156, %c0_157], %440 {strides = array<i32>} : memref<64x64xf32, #tpu.memory_space<vmem>>, vector<8x32xf32>,
    %442 = vector.extract_strided_slice %439 {offsets = [0, 32], sizes = [8, 32], strides = [1, 1]} : vector<8x64xf32> to vector<8x32xf32>
    %c24_158 = arith.constant 24 : index
    %c32_159 = arith.constant 32 : index
    %443 = vector.load %arg23[%c24_158, %c32_159] : memref<64x64xf32, #tpu.memory_space<vmem>>, vector<8x32xf32>
    tpu.vector_store %arg23[%c24_158, %c32_159], %442 {strides = array<i32>} : memref<64x64xf32, #tpu.memory_space<vmem>>, vector<8x32xf32>,
    %c40_160 = arith.constant 40 : index
    %c0_161 = arith.constant 0 : index
    %444 = vector.load %arg22[%c40_160, %c0_161] : memref<64x256xf32, #tpu.memory_space<vmem>>, vector<8x256xf32>
    %cst_162 = arith.constant dense<0.000000e+00> : vector<8x256xf32>
    %445 = tpu.matmul %439, %265, %cst_162 {dimension_numbers = #tpu.dot_dimension_numbers<[1], [0], [0], [1], [0, 0, 1, 1], [], []>} : vector<8x64xf32>, vector<64x256xf32>, vector<8x256xf32> -> vector<8x256xf32>
    %446 = arith.addf %444, %445 : vector<8x256xf32>
    %447 = arith.negf %446 : vector<8x256xf32>
    %448 = math.exp %447 : vector<8x256xf32>
    %cst_163 = arith.constant 1.000000e+00 : f32
    %449 = vector.broadcast %cst_163 : f32 to vector<8x256xf32>
    %450 = arith.addf %449, %448 : vector<8x256xf32>
    %451 = arith.divf %449, %450 : vector<8x256xf32>
    %452 = vector.extract_strided_slice %446 {offsets = [0, 128], sizes = [8, 128], strides = [1, 1]} : vector<8x256xf32> to vector<8x128xf32>
    %453 = math.tanh %452 : vector<8x128xf32>
    %454 = vector.extract_strided_slice %451 {offsets = [0, 0], sizes = [8, 64], strides = [1, 1]} : vector<8x256xf32> to vector<8x64xf32>
    %455 = vector.extract_strided_slice %451 {offsets = [0, 64], sizes = [8, 64], strides = [1, 1]} : vector<8x256xf32> to vector<8x64xf32>
    %456 = vector.extract_strided_slice %453 {offsets = [0, 0], sizes = [8, 64], strides = [1, 1]} : vector<8x128xf32> to vector<8x64xf32>
    %457 = vector.extract_strided_slice %451 {offsets = [0, 192], sizes = [8, 64], strides = [1, 1]} : vector<8x256xf32> to vector<8x64xf32>
    %458 = arith.mulf %455, %437 : vector<8x64xf32>
    %459 = arith.mulf %454, %456 : vector<8x64xf32>
    %460 = arith.addf %458, %459 : vector<8x64xf32>
    %461 = math.tanh %460 : vector<8x64xf32>
    %462 = arith.mulf %457, %461 : vector<8x64xf32>
    %463 = vector.extract_strided_slice %462 {offsets = [0, 0], sizes = [8, 32], strides = [1, 1]} : vector<8x64xf32> to vector<8x32xf32>
    %c40_164 = arith.constant 40 : index
    %c0_165 = arith.constant 0 : index
    %464 = vector.load %arg23[%c40_164, %c0_165] : memref<64x64xf32, #tpu.memory_space<vmem>>, vector<8x32xf32>
    tpu.vector_store %arg23[%c40_164, %c0_165], %463 {strides = array<i32>} : memref<64x64xf32, #tpu.memory_space<vmem>>, vector<8x32xf32>,
    %465 = vector.extract_strided_slice %462 {offsets = [0, 32], sizes = [8, 32], strides = [1, 1]} : vector<8x64xf32> to vector<8x32xf32>
    %c16_166 = arith.constant 16 : index
    %c32_167 = arith.constant 32 : index
    %466 = vector.load %arg23[%c16_166, %c32_167] : memref<64x64xf32, #tpu.memory_space<vmem>>, vector<8x32xf32>
    tpu.vector_store %arg23[%c16_166, %c32_167], %465 {strides = array<i32>} : memref<64x64xf32, #tpu.memory_space<vmem>>, vector<8x32xf32>,
    %c48_168 = arith.constant 48 : index
    %c0_169 = arith.constant 0 : index
    %467 = vector.load %arg22[%c48_168, %c0_169] : memref<64x256xf32, #tpu.memory_space<vmem>>, vector<8x256xf32>
    %cst_170 = arith.constant dense<0.000000e+00> : vector<8x256xf32>
    %468 = tpu.matmul %462, %265, %cst_170 {dimension_numbers = #tpu.dot_dimension_numbers<[1], [0], [0], [1], [0, 0, 1, 1], [], []>} : vector<8x64xf32>, vector<64x256xf32>, vector<8x256xf32> -> vector<8x256xf32>
    %469 = arith.addf %467, %468 : vector<8x256xf32>
    %470 = arith.negf %469 : vector<8x256xf32>
    %471 = math.exp %470 : vector<8x256xf32>
    %cst_171 = arith.constant 1.000000e+00 : f32
    %472 = vector.broadcast %cst_171 : f32 to vector<8x256xf32>
    %473 = arith.addf %472, %471 : vector<8x256xf32>
    %474 = arith.divf %472, %473 : vector<8x256xf32>
    %475 = vector.extract_strided_slice %469 {offsets = [0, 128], sizes = [8, 128], strides = [1, 1]} : vector<8x256xf32> to vector<8x128xf32>
    %476 = math.tanh %475 : vector<8x128xf32>
    %477 = vector.extract_strided_slice %474 {offsets = [0, 0], sizes = [8, 64], strides = [1, 1]} : vector<8x256xf32> to vector<8x64xf32>
    %478 = vector.extract_strided_slice %474 {offsets = [0, 64], sizes = [8, 64], strides = [1, 1]} : vector<8x256xf32> to vector<8x64xf32>
    %479 = vector.extract_strided_slice %476 {offsets = [0, 0], sizes = [8, 64], strides = [1, 1]} : vector<8x128xf32> to vector<8x64xf32>
    %480 = vector.extract_strided_slice %474 {offsets = [0, 192], sizes = [8, 64], strides = [1, 1]} : vector<8x256xf32> to vector<8x64xf32>
    %481 = arith.mulf %478, %460 : vector<8x64xf32>
    %482 = arith.mulf %477, %479 : vector<8x64xf32>
    %483 = arith.addf %481, %482 : vector<8x64xf32>
    %484 = math.tanh %483 : vector<8x64xf32>
    %485 = arith.mulf %480, %484 : vector<8x64xf32>
    %486 = vector.extract_strided_slice %485 {offsets = [0, 0], sizes = [8, 32], strides = [1, 1]} : vector<8x64xf32> to vector<8x32xf32>
    %c48_172 = arith.constant 48 : index
    %c0_173 = arith.constant 0 : index
    %487 = vector.load %arg23[%c48_172, %c0_173] : memref<64x64xf32, #tpu.memory_space<vmem>>, vector<8x32xf32>
    tpu.vector_store %arg23[%c48_172, %c0_173], %486 {strides = array<i32>} : memref<64x64xf32, #tpu.memory_space<vmem>>, vector<8x32xf32>,
    %488 = vector.extract_strided_slice %485 {offsets = [0, 32], sizes = [8, 32], strides = [1, 1]} : vector<8x64xf32> to vector<8x32xf32>
    %c8_174 = arith.constant 8 : index
    %c32_175 = arith.constant 32 : index
    %489 = vector.load %arg23[%c8_174, %c32_175] : memref<64x64xf32, #tpu.memory_space<vmem>>, vector<8x32xf32>
    tpu.vector_store %arg23[%c8_174, %c32_175], %488 {strides = array<i32>} : memref<64x64xf32, #tpu.memory_space<vmem>>, vector<8x32xf32>,
    %c56_176 = arith.constant 56 : index
    %c0_177 = arith.constant 0 : index
    %490 = vector.load %arg22[%c56_176, %c0_177] : memref<64x256xf32, #tpu.memory_space<vmem>>, vector<8x256xf32>
    %cst_178 = arith.constant dense<0.000000e+00> : vector<8x256xf32>
    %491 = tpu.matmul %485, %265, %cst_178 {dimension_numbers = #tpu.dot_dimension_numbers<[1], [0], [0], [1], [0, 0, 1, 1], [], []>} : vector<8x64xf32>, vector<64x256xf32>, vector<8x256xf32> -> vector<8x256xf32>
    %492 = arith.addf %490, %491 : vector<8x256xf32>
    %493 = arith.negf %492 : vector<8x256xf32>
    %494 = math.exp %493 : vector<8x256xf32>
    %cst_179 = arith.constant 1.000000e+00 : f32
    %495 = vector.broadcast %cst_179 : f32 to vector<8x256xf32>
    %496 = arith.addf %495, %494 : vector<8x256xf32>
    %497 = arith.divf %495, %496 : vector<8x256xf32>
    %498 = vector.extract_strided_slice %492 {offsets = [0, 128], sizes = [8, 128], strides = [1, 1]} : vector<8x256xf32> to vector<8x128xf32>
    %499 = math.tanh %498 : vector<8x128xf32>
    %500 = vector.extract_strided_slice %497 {offsets = [0, 0], sizes = [8, 64], strides = [1, 1]} : vector<8x256xf32> to vector<8x64xf32>
    %501 = vector.extract_strided_slice %497 {offsets = [0, 64], sizes = [8, 64], strides = [1, 1]} : vector<8x256xf32> to vector<8x64xf32>
    %502 = vector.extract_strided_slice %499 {offsets = [0, 0], sizes = [8, 64], strides = [1, 1]} : vector<8x128xf32> to vector<8x64xf32>
    %503 = vector.extract_strided_slice %497 {offsets = [0, 192], sizes = [8, 64], strides = [1, 1]} : vector<8x256xf32> to vector<8x64xf32>
    %504 = arith.mulf %501, %483 : vector<8x64xf32>
    %505 = arith.mulf %500, %502 : vector<8x64xf32>
    %506 = arith.addf %504, %505 : vector<8x64xf32>
    %507 = math.tanh %506 : vector<8x64xf32>
    %508 = arith.mulf %503, %507 : vector<8x64xf32>
    %509 = vector.extract_strided_slice %508 {offsets = [0, 0], sizes = [8, 32], strides = [1, 1]} : vector<8x64xf32> to vector<8x32xf32>
    %c56_180 = arith.constant 56 : index
    %c0_181 = arith.constant 0 : index
    %510 = vector.load %arg23[%c56_180, %c0_181] : memref<64x64xf32, #tpu.memory_space<vmem>>, vector<8x32xf32>
    tpu.vector_store %arg23[%c56_180, %c0_181], %509 {strides = array<i32>} : memref<64x64xf32, #tpu.memory_space<vmem>>, vector<8x32xf32>,
    %511 = vector.extract_strided_slice %508 {offsets = [0, 32], sizes = [8, 32], strides = [1, 1]} : vector<8x64xf32> to vector<8x32xf32>
    %c0_182 = arith.constant 0 : index
    %c32_183 = arith.constant 32 : index
    %512 = vector.load %arg23[%c0_182, %c32_183] : memref<64x64xf32, #tpu.memory_space<vmem>>, vector<8x32xf32>
    tpu.vector_store %arg23[%c0_182, %c32_183], %511 {strides = array<i32>} : memref<64x64xf32, #tpu.memory_space<vmem>>, vector<8x32xf32>,
    %c0_184 = arith.constant 0 : index
    %c0_185 = arith.constant 0 : index
    %513 = vector.load %arg23[%c0_184, %c0_185] : memref<64x64xf32, #tpu.memory_space<vmem>>, vector<64x64xf32>
    %c0_186 = arith.constant 0 : index
    %c0_187 = arith.constant 0 : index
    %514 = vector.load %arg11[%c0_186, %c0_187] : memref<64x64xf32, #tpu.memory_space<vmem>>, vector<64x64xf32>
    %515 = arith.truncf %513 : vector<64x64xf32> to vector<64x64xbf16>
    %516 = arith.truncf %514 : vector<64x64xf32> to vector<64x64xbf16>
    %cst_188 = arith.constant dense<0.000000e+00> : vector<64x64xf32>
    %517 = tpu.matmul %515, %516, %cst_188 {dimension_numbers = #tpu.dot_dimension_numbers<[1], [0], [0], [1], [0, 0, 1, 1], [], []>} : vector<64x64xbf16>, vector<64x64xbf16>, vector<64x64xf32> -> vector<64x64xf32>
    %518 = math.tanh %517 : vector<64x64xf32>
    %519 = vector.shape_cast %518 : vector<64x64xf32> to vector<8x8x64xf32>
    %c0_189 = arith.constant 0 : index
    %c0_190 = arith.constant 0 : index
    %520 = vector.load %arg12[%c0_189, %c0_190] : memref<1x64xf32, #tpu.memory_space<vmem>>, vector<1x64xf32>
    %521 = vector.shape_cast %520 : vector<1x64xf32> to vector<1x1x64xf32>
    %522 = vector.broadcast %521 : vector<1x1x64xf32> to vector<8x8x64xf32>
    %523 = arith.mulf %519, %522 : vector<8x8x64xf32>
    %cst_191 = arith.constant dense<0.000000e+00> : vector<8x8xf32>
    %524 = vector.multi_reduction <add>, %523, %cst_191 [2] : vector<8x8x64xf32> to vector<8x8xf32>
    %525 = vector.shape_cast %524 : vector<8x8xf32> to vector<8x8x1xf32>
    %cst_192 = arith.constant dense<0xFF800000> : vector<8x1xf32>
    %526 = vector.multi_reduction <maximumf>, %525, %cst_192 [0] : vector<8x8x1xf32> to vector<8x1xf32>
    %527 = vector.shape_cast %526 : vector<8x1xf32> to vector<1x8x1xf32>
    %528 = vector.broadcast %527 : vector<1x8x1xf32> to vector<8x8x1xf32>
    %529 = arith.subf %525, %528 : vector<8x8x1xf32>
    %530 = math.exp %529 : vector<8x8x1xf32>
    %cst_193 = arith.constant dense<0.000000e+00> : vector<8x1xf32>
    %531 = vector.multi_reduction <add>, %530, %cst_193 [0] : vector<8x8x1xf32> to vector<8x1xf32>
    %532 = vector.shape_cast %513 : vector<64x64xf32> to vector<8x8x64xf32>
    %533 = vector.broadcast %530 : vector<8x8x1xf32> to vector<8x8x64xf32>
    %534 = arith.mulf %532, %533 : vector<8x8x64xf32>
    %cst_194 = arith.constant dense<0.000000e+00> : vector<8x64xf32>
    %535 = vector.multi_reduction <add>, %534, %cst_194 [0] : vector<8x8x64xf32> to vector<8x64xf32>
    %536 = tpu.reciprocal %531 {approx = true} : vector<8x1xf32> -> vector<8x1xf32>
    %537 = vector.broadcast %536 : vector<8x1xf32> to vector<8x64xf32>
    %538 = arith.mulf %535, %537 : vector<8x64xf32>
    %cst_195 = arith.constant 5.000000e-01 : f32
    %539 = vector.broadcast %cst_195 : f32 to vector<8x64xf32>
    %540 = arith.mulf %539, %538 : vector<8x64xf32>
    %cst_196 = arith.constant 0.707106769 : f32
    %541 = vector.broadcast %cst_196 : f32 to vector<8x64xf32>
    %542 = arith.mulf %538, %541 : vector<8x64xf32>
    %543 = math.erf %542 : vector<8x64xf32>
    %cst_197 = arith.constant 1.000000e+00 : f32
    %544 = vector.broadcast %cst_197 : f32 to vector<8x64xf32>
    %545 = arith.addf %544, %543 : vector<8x64xf32>
    %546 = arith.mulf %540, %545 : vector<8x64xf32>
    %c0_198 = arith.constant 0 : index
    %c0_199 = arith.constant 0 : index
    %547 = vector.load %arg13[%c0_198, %c0_199] : memref<64x32xf32, #tpu.memory_space<vmem>>, vector<64x32xf32>
    %548 = arith.truncf %546 : vector<8x64xf32> to vector<8x64xbf16>
    %549 = arith.truncf %547 : vector<64x32xf32> to vector<64x32xbf16>
    %cst_200 = arith.constant dense<0.000000e+00> : vector<8x32xf32>
    %550 = tpu.matmul %548, %549, %cst_200 {dimension_numbers = #tpu.dot_dimension_numbers<[1], [0], [0], [1], [0, 0, 1, 1], [], []>} : vector<8x64xbf16>, vector<64x32xbf16>, vector<8x32xf32> -> vector<8x32xf32>
    %c0_201 = arith.constant 0 : index
    %c0_202 = arith.constant 0 : index
    %551 = vector.load %arg14[%c0_201, %c0_202] : memref<1x32xf32, #tpu.memory_space<vmem>>, vector<1x32xf32>
    %552 = vector.broadcast %551 : vector<1x32xf32> to vector<8x32xf32>
    %553 = arith.addf %550, %552 : vector<8x32xf32>
    %c0_203 = arith.constant 0 : index
    %c0_204 = arith.constant 0 : index
    %554 = vector.load %arg17[%c0_203, %c0_204] : memref<1x32xf32, #tpu.memory_space<vmem>>, vector<1x32xf32>
    %555 = vector.broadcast %554 : vector<1x32xf32> to vector<8x32xf32>
    %556 = arith.subf %553, %555 : vector<8x32xf32>
    %c0_205 = arith.constant 0 : index
    %c0_206 = arith.constant 0 : index
    %557 = vector.load %arg18[%c0_205, %c0_206] : memref<1x32xf32, #tpu.memory_space<vmem>>, vector<1x32xf32>
    %cst_207 = arith.constant 9.99999974E-6 : f32
    %558 = vector.broadcast %cst_207 : f32 to vector<1x32xf32>
    %559 = arith.addf %557, %558 : vector<1x32xf32>
    %560 = math.rsqrt %559 : vector<1x32xf32>
    %561 = vector.broadcast %560 : vector<1x32xf32> to vector<8x32xf32>
    %562 = arith.mulf %556, %561 : vector<8x32xf32>
    %c0_208 = arith.constant 0 : index
    %c0_209 = arith.constant 0 : index
    %563 = vector.load %arg15[%c0_208, %c0_209] : memref<1x32xf32, #tpu.memory_space<vmem>>, vector<1x32xf32>
    %564 = vector.broadcast %563 : vector<1x32xf32> to vector<8x32xf32>
    %565 = arith.mulf %562, %564 : vector<8x32xf32>
    %c0_210 = arith.constant 0 : index
    %c0_211 = arith.constant 0 : index
    %566 = vector.load %arg16[%c0_210, %c0_211] : memref<1x32xf32, #tpu.memory_space<vmem>>, vector<1x32xf32>
    %567 = vector.broadcast %566 : vector<1x32xf32> to vector<8x32xf32>
    %568 = arith.addf %565, %567 : vector<8x32xf32>
    %cst_212 = arith.constant 5.000000e-01 : f32
    %569 = vector.broadcast %cst_212 : f32 to vector<8x32xf32>
    %570 = arith.mulf %569, %568 : vector<8x32xf32>
    %cst_213 = arith.constant 0.707106769 : f32
    %571 = vector.broadcast %cst_213 : f32 to vector<8x32xf32>
    %572 = arith.mulf %568, %571 : vector<8x32xf32>
    %573 = math.erf %572 : vector<8x32xf32>
    %cst_214 = arith.constant 1.000000e+00 : f32
    %574 = vector.broadcast %cst_214 : f32 to vector<8x32xf32>
    %575 = arith.addf %574, %573 : vector<8x32xf32>
    %576 = arith.mulf %570, %575 : vector<8x32xf32>
    %c0_215 = arith.constant 0 : index
    %c0_216 = arith.constant 0 : index
    %577 = vector.load %arg19[%c0_215, %c0_216] : memref<32x128xf32, #tpu.memory_space<vmem>>, vector<32x128xf32>
    %578 = arith.truncf %576 : vector<8x32xf32> to vector<8x32xbf16>
    %579 = arith.truncf %577 : vector<32x128xf32> to vector<32x128xbf16>
    %cst_217 = arith.constant dense<0.000000e+00> : vector<8x128xf32>
    %580 = tpu.matmul %578, %579, %cst_217 {dimension_numbers = #tpu.dot_dimension_numbers<[1], [0], [0], [1], [0, 0, 1, 1], [], []>} : vector<8x32xbf16>, vector<32x128xbf16>, vector<8x128xf32> -> vector<8x128xf32>
    %c0_218 = arith.constant 0 : index
    %c0_219 = arith.constant 0 : index
    %581 = vector.load %arg20[%c0_218, %c0_219] : memref<1x128xf32, #tpu.memory_space<vmem>>, vector<1x128xf32>
    %582 = vector.broadcast %581 : vector<1x128xf32> to vector<8x128xf32>
    %583 = arith.addf %580, %582 : vector<8x128xf32>
    %c0_220 = arith.constant 0 : index
    %c0_221 = arith.constant 0 : index
    %584 = vector.load %arg21[%c0_220, %c0_221] : memref<8x128xf32, #tpu.memory_space<vmem>>, vector<8x128xf32>
    tpu.vector_store %arg21[%c0_220, %c0_221], %583 {strides = array<i32>} : memref<8x128xf32, #tpu.memory_space<vmem>>, vector<8x128xf32>,
    return
  }
}

</mosaic_0001>

<bundles_post_ra>
// kernel: taxon_forward.1
= control target key start
LH: loop header
LB: loop body
LE: loop exit
PB: predicated region body
PF: predicated region fallthrough
CT: control target
= control target key end

     0   :  { %s5046_s0 = inlined_call_operand.vmem [shape: s32[64,1], index: 0, kind: input, shape index: {}]   ;;  %s5047_s1 = inlined_call_operand.vmem [shape: f32[128,32], index: 1, kind: input, shape index: {}]   ;;  %s5048_s2 = inlined_call_operand.vmem [shape: f32[8,32], index: 2, kind: input, shape index: {}]   ;;  %s5049_s3 = inlined_call_operand.hbm [shape: f32[32,256], index: 3, kind: input, shape index: {}]   ;;  %s5050_s4 = inlined_call_operand.hbm [shape: f32[32,256], index: 4, kind: input, shape index: {}]   ;;  %s5051_s5 = inlined_call_operand.vmem [shape: f32[64,256], index: 5, kind: input, shape index: {}]   ;;  %s5052_s6 = inlined_call_operand.vmem [shape: f32[1,256], index: 6, kind: input, shape index: {}]   ;;  %s5053_s7 = inlined_call_operand.vmem [shape: f32[64,256], index: 7, kind: input, shape index: {}]   ;;  %s5054_s8 = inlined_call_operand.vmem [shape: f32[64,256], index: 8, kind: input, shape index: {}]   ;;  %s5055_s9 = inlined_call_operand.hbm [shape: f32[64,256], index: 9, kind: input, shape index: {}]   ;;  %s5056_s10 = inlined_call_operand.hbm [shape: f32[1,256], index: 10, kind: input, shape index: {}]   ;;  %s5057_s11 = inlined_call_operand.hbm [shape: f32[64,64], index: 11, kind: input, shape index: {}]   ;;  %s5058_s12 = inlined_call_operand.vmem [shape: f32[1,64], index: 12, kind: input, shape index: {}]   ;;  %s5059_s13 = inlined_call_operand.vmem [shape: f32[64,32], index: 13, kind: input, shape index: {}]   ;;  %s5060_s14 = inlined_call_operand.hbm [shape: f32[1,32], index: 14, kind: input, shape index: {}]   ;;  %s5061_s15 = inlined_call_operand.hbm [shape: f32[1,32], index: 15, kind: input, shape index: {}]   ;;  %s5062_s16 = inlined_call_operand.hbm [shape: f32[1,32], index: 16, kind: input, shape index: {}]   ;;  %s5063_s17 = inlined_call_operand.hbm [shape: f32[1,32], index: 17, kind: input, shape index: {}]   ;;  %s5064_s18 = inlined_call_operand.hbm [shape: f32[1,32], index: 18, kind: input, shape index: {}]   ;;  %s5065_s19 = inlined_call_operand.hbm [shape: f32[32,128], index: 19, kind: input, shape index: {}]   ;;  %s5066_s20 = inlined_call_operand.hbm [shape: f32[1,128], index: 20, kind: input, shape index: {}]   ;;  %s5067_s21 = inlined_call_operand.vmem [shape: f32[8,128], index: 21, kind: output, shape index: {}]  }
   0x1   :  { %5075 = sst [smem:[#allocation30_spill]] %s5046_s0 }
   0x2   :  { %5076 = sst [smem:[#allocation31_spill]] %s5047_s1 }
   0x3   :  { %5077 = sst [smem:[#allocation32_spill]] %s5048_s2 }
   0x4   :  { %5078 = sst [smem:[#allocation33_spill]] %s5049_s3 }
   0x5   :  { %5079 = sst [smem:[#allocation34_spill]] %s5050_s4 }
   0x6   :  { %5080 = sst [smem:[#allocation35_spill]] %s5051_s5 }
   0x7   :  { %26 = vsyncpa [#allocation5], 0 }
   0x8   :  { %27 = vsyncpa [#allocation7], 0 }
   0x9   :  { %28 = vsyncpa [#allocation10], 0 }
   0xa   :  { %29 = vsyncpa [#allocation13], 0 }
   0xb   :  { %30 = vsyncpa [#allocation16], 0 }
   0xc   :  { %31 = vsyncpa [#allocation19], 0 }
   0xd   :  { %32 = vsyncpa [#allocation22], 0  ;;  %s4030_s2 = smov [#allocation6]   ;;  %s4031_s26 = smov [#allocation9]  }
   0xe   :  { %s56_s25 = sshll.u32 %s4030_s2, 4  ;;  %s89_s27 = sshll.u32 %s4031_s26, 4  ;;  %s57_s25 = int_to_ptr.vmem [resolvable:$true] %s56_s25  ;;  %s90_s27 = int_to_ptr.vmem [resolvable:$true] %s89_s27 }
   0xf   :  { %s5081_s29 = sld [smem:[#allocation34_spill]] }
  0x15   :  { %s3752_s0 = scalar_lea.hbm %s5081_s29, 1024 }
  0x16   :  { %p3753_p0 = scmp.ne.s32.totalorder %s5081_s29, %s3752_s0  ;;  %p3756_p1 = scmp.lt.u32.totalorder %s3752_s0, %s5081_s29 }
  0x18   :  { %p3758_p2 = pnand %p3756_p1, %p3753_p0 }
  0x1a   :  { %3761 = shalt.err (!%p3758_p2)
}
  0x1b   :  { %s3762_s23 = scalar_lea.vmem %s57_s25, 1024  ;;  %p3767_p4 = scmp.lt.s32.totalorder %s57_s25, %s57_s25 }
  0x1c   :  { %p3763_p3 = scmp.ne.s32.totalorder %s57_s25, %s3762_s23  ;;  %p3768_p5 = scmp.lt.s32.totalorder %s3762_s23, %s3762_s23 }
  0x1e   :  { %p3769_p6 = por %p3768_p5, %p3767_p4 }
  0x20   :  { %p3770_p7 = pnand %p3769_p6, %p3763_p3 }
  0x22   :  { %3773 = shalt.err (!%p3770_p7)
}
  0x23   :  { %s5073_s1 = smov 256   ;;  %s4033_s24 = smov 16  }
  0x24   :  { %62 = dma.hbm_to_vmem [thread:$0]  %s5081_s29, 1024, %s57_s25, [#allocation7], %s5073_s1, %s5073_s1, %s4033_s24  }
  0x25   :  { %s3774_s0 = scalar_lea.hbm %s5056_s10, 32 }
  0x26   :  { %p3775_p8 = scmp.ne.s32.totalorder %s5056_s10, %s3774_s0  ;;  %p3778_p9 = scmp.lt.u32.totalorder %s3774_s0, %s5056_s10 }
  0x28   :  { %p3780_p10 = pnand %p3778_p9, %p3775_p8 }
  0x2a   :  { %3783 = shalt.err (!%p3780_p10)
}
  0x2b   :  { %s3784_s23 = scalar_lea.vmem %s90_s27, 32  ;;  %p3789_p12 = scmp.lt.s32.totalorder %s90_s27, %s90_s27 }
  0x2c   :  { %p3785_p11 = scmp.ne.s32.totalorder %s90_s27, %s3784_s23  ;;  %p3790_p13 = scmp.lt.s32.totalorder %s3784_s23, %s3784_s23 }
  0x2e   :  { %p3791_p0 = por %p3790_p13, %p3789_p12 }
  0x30   :  { %p3792_p1 = pnand %p3791_p0, %p3785_p11 }
  0x32   :  { %3795 = shalt.err (!%p3792_p1)
}
  0x33   :  { %92 = dma.hbm_to_vmem [thread:$0]  %s5056_s10, 32, %s90_s27, [#allocation10]  }
  0x34   :  { %s4034_s2 = smov [#allocation12]   ;;  %s4035_s3 = smov [#allocation15]  }
  0x35   :  { %s115_s26 = sshll.u32 %s4034_s2, 4  ;;  %s135_s28 = sshll.u32 %s4035_s3, 4  ;;  %s116_s26 = int_to_ptr.vmem [resolvable:$true] %s115_s26  ;;  %s136_s28 = int_to_ptr.vmem [resolvable:$true] %s135_s28 }
  0x36   :  { %s3796_s30 = scalar_lea.hbm %s5060_s14, 16 }
  0x37   :  { %p3797_p2 = scmp.ne.s32.totalorder %s5060_s14, %s3796_s30  ;;  %p3800_p3 = scmp.lt.u32.totalorder %s3796_s30, %s5060_s14 }
  0x39   :  { %p3802_p4 = pnand %p3800_p3, %p3797_p2 }
  0x3b   :  { %3805 = shalt.err (!%p3802_p4)
}
  0x3c   :  { %s3806_s10 = scalar_lea.vmem %s116_s26, 16  ;;  %s3810_s27 = scalar_lea.vmem %s116_s26, 32 }
  0x3d   :  { %p3807_p5 = scmp.ne.s32.totalorder %s116_s26, %s3806_s10  ;;  %p3811_p6 = scmp.lt.s32.totalorder %s116_s26, %s116_s26 }
  0x3e   :  { %p3812_p7 = scmp.lt.s32.totalorder %s3810_s27, %s3806_s10 }
  0x40   :  { %p3813_p8 = por %p3812_p7, %p3811_p6 }
  0x42   :  { %p3814_p9 = pnand %p3813_p8, %p3807_p5 }
  0x44   :  { %3817 = shalt.err (!%p3814_p9)
}
  0x45   :  { %118 = dma.hbm_to_vmem [thread:$0]  %s5060_s14, 16, %s116_s26, [#allocation13]  }
  0x46   :  { %s3818_s0 = scalar_lea.hbm %s5062_s16, 16 }
  0x47   :  { %p3819_p10 = scmp.ne.s32.totalorder %s5062_s16, %s3818_s0  ;;  %p3822_p11 = scmp.lt.u32.totalorder %s3818_s0, %s5062_s16 }
  0x49   :  { %p3824_p12 = pnand %p3822_p11, %p3819_p10 }
  0x4b   :  { %3827 = shalt.err (!%p3824_p12)
}
  0x4c   :  { %s3828_s22 = scalar_lea.vmem %s136_s28, 16  ;;  %s3832_s23 = scalar_lea.vmem %s136_s28, 32 }
  0x4d   :  { %p3829_p13 = scmp.ne.s32.totalorder %s136_s28, %s3828_s22  ;;  %p3833_p0 = scmp.lt.s32.totalorder %s136_s28, %s136_s28 }
  0x4e   :  { %p3834_p1 = scmp.lt.s32.totalorder %s3832_s23, %s3828_s22 }
  0x50   :  { %p3835_p2 = por %p3834_p1, %p3833_p0 }
  0x52   :  { %p3836_p3 = pnand %p3835_p2, %p3829_p13 }
  0x54   :  { %3839 = shalt.err (!%p3836_p3)
}
  0x55   :  { %138 = dma.hbm_to_vmem [thread:$0]  %s5062_s16, 16, %s136_s28, [#allocation16]  }
  0x56   :  { %s4036_s10 = smov [#allocation18]   ;;  %s4037_s25 = smov [#allocation4]  }
  0x57   :  { %s155_s27 = sshll.u32 %s4036_s10, 4  ;;  %s44_s29 = sshll.u32 %s4037_s25, 4  ;;  %s156_s27 = int_to_ptr.vmem [resolvable:$true] %s155_s27  ;;  %s4213_s29 = int_to_ptr.vmem [resolvable:$true] %s44_s29 }
  0x58   :  { %s3840_s0 = scalar_lea.hbm %s5064_s18, 16 }
  0x59   :  { %p3841_p4 = scmp.ne.s32.totalorder %s5064_s18, %s3840_s0  ;;  %p3844_p5 = scmp.lt.u32.totalorder %s3840_s0, %s5064_s18 }
  0x5b   :  { %p3846_p6 = pnand %p3844_p5, %p3841_p4 }
  0x5d   :  { %3849 = shalt.err (!%p3846_p6)
}
  0x5e   :  { %s3850_s16 = scalar_lea.vmem %s156_s27, 16  ;;  %s3854_s28 = scalar_lea.vmem %s156_s27, 32 }
  0x5f   :  { %p3851_p7 = scmp.ne.s32.totalorder %s156_s27, %s3850_s16  ;;  %p3855_p8 = scmp.lt.s32.totalorder %s156_s27, %s156_s27 }
  0x60   :  { %p3856_p9 = scmp.lt.s32.totalorder %s3854_s28, %s3850_s16 }
  0x62   :  { %p3857_p10 = por %p3856_p9, %p3855_p8 }
  0x64   :  { %p3858_p11 = pnand %p3857_p10, %p3851_p7 }
  0x66   :  { %3861 = shalt.err (!%p3858_p11)
}
  0x67   :  { %158 = dma.hbm_to_vmem [thread:$0]  %s5064_s18, 16, %s156_s27, [#allocation19]  }
  0x68   :  { %s5082_s10 = sld [smem:[#allocation33_spill]] }
  0x6e   :  { %s3862_s25 = scalar_lea.hbm %s5082_s10, 1024 }
  0x6f   :  { %p3863_p12 = scmp.ne.s32.totalorder %s5082_s10, %s3862_s25  ;;  %p3866_p13 = scmp.lt.u32.totalorder %s3862_s25, %s5082_s10 }
  0x71   :  { %p3868_p0 = pnand %p3866_p13, %p3863_p12 }
  0x73   :  { %3871 = shalt.err (!%p3868_p0)
}
  0x74   :  { %s3872_s4 = scalar_lea.vmem %s4213_s29, 1024  ;;  %p3877_p2 = scmp.lt.s32.totalorder %s4213_s29, %s4213_s29 }
  0x75   :  { %p3873_p1 = scmp.ne.s32.totalorder %s4213_s29, %s3872_s4  ;;  %p3878_p3 = scmp.lt.s32.totalorder %s3872_s4, %s3872_s4 }
  0x77   :  { %p3879_p4 = por %p3878_p3, %p3877_p2 }
  0x79   :  { %p3880_p5 = pnand %p3879_p4, %p3873_p1 }
  0x7b   :  { %3883 = shalt.err (!%p3880_p5)
}
  0x7c   :  { %s5083_s18 = smov 256   ;;  %s4038_s5 = smov [#allocation8]  }
  0x7d   :  { %50 = dma.hbm_to_vmem [thread:$0]  %s5082_s10, 1024, %s4213_s29, [#allocation5], %s5083_s18, %s5083_s18, %s4033_s24  }
  0x7e   :  { %s76_s16 = sshll.u32 %s4038_s5, 4  ;;  %s4039_s28 = smov [#allocation11]   ;;  %s77_s16 = int_to_ptr.vmem [resolvable:$true] %s76_s16 }
  0x7f   :  { %s98_s22 = sshll.u32 %s4039_s28, 4  ;;  %s3884_s26 = scalar_lea.hbm %s5055_s9, 2048  ;;  %s4247_s22 = int_to_ptr.vmem [resolvable:$true] %s98_s22 }
  0x80   :  { %p3885_p6 = scmp.ne.s32.totalorder %s5055_s9, %s3884_s26  ;;  %p3888_p7 = scmp.lt.u32.totalorder %s3884_s26, %s5055_s9 }
  0x82   :  { %p3890_p8 = pnand %p3888_p7, %p3885_p6 }
  0x84   :  { %3893 = shalt.err (!%p3890_p8)
}
  0x85   :  { %s3894_s29 = scalar_lea.vmem %s77_s16, 2048  ;;  %p3899_p10 = scmp.lt.s32.totalorder %s77_s16, %s77_s16 }
  0x86   :  { %p3895_p9 = scmp.ne.s32.totalorder %s77_s16, %s3894_s29  ;;  %p3900_p11 = scmp.lt.s32.totalorder %s3894_s29, %s3894_s29 }
  0x88   :  { %p3901_p12 = por %p3900_p11, %p3899_p10 }
  0x8a   :  { %p3902_p13 = pnand %p3901_p12, %p3895_p9 }
  0x8c   :  { %3905 = shalt.err (!%p3902_p13)
}
  0x8d   :  { %82 = dma.hbm_to_vmem [thread:$0]  %s5055_s9, 2048, %s77_s16, [#allocation7], %s5083_s18, %s5083_s18, %s4033_s24  }
  0x8e   :  { %s3906_s30 = scalar_lea.hbm %s5057_s11, 1024 }
  0x8f   :  { %p3907_p0 = scmp.ne.s32.totalorder %s5057_s11, %s3906_s30  ;;  %p3910_p1 = scmp.lt.u32.totalorder %s3906_s30, %s5057_s11 }
  0x91   :  { %p3912_p2 = pnand %p3910_p1, %p3907_p0 }
  0x93   :  { %3915 = shalt.err (!%p3912_p2)
}
  0x94   :  { %s3916_s26 = scalar_lea.vmem %s4247_s22, 1024  ;;  %p3921_p4 = scmp.lt.s32.totalorder %s4247_s22, %s4247_s22 }
  0x95   :  { %p3917_p3 = scmp.ne.s32.totalorder %s4247_s22, %s3916_s26  ;;  %p3922_p5 = scmp.lt.s32.totalorder %s3916_s26, %s3916_s26 }
  0x97   :  { %p3923_p6 = por %p3922_p5, %p3921_p4 }
  0x99   :  { %p3924_p7 = pnand %p3923_p6, %p3917_p3 }
  0x9b   :  { %3927 = shalt.err (!%p3924_p7)
}
  0x9c   :  { %s4040_s9 = smov 128   ;;  %s4041_s24 = smov 8  }
  0x9d   :  { %104 = dma.hbm_to_vmem [thread:$0]  %s5057_s11, 1024, %s4247_s22, [#allocation10], %s4040_s9, %s4040_s9, %s4041_s24  }
  0x9e   :  { %s4042_s25 = smov [#allocation14]   ;;  %s4043_s3 = smov [#allocation17]  }
  0x9f   :  { %s125_s2 = sshll.u32 %s4042_s25, 4  ;;  %s145_s0 = sshll.u32 %s4043_s3, 4  ;;  %s126_s2 = int_to_ptr.vmem [resolvable:$true] %s125_s2  ;;  %s146_s0 = int_to_ptr.vmem [resolvable:$true] %s145_s0 }
  0xa0   :  { %s3928_s1 = scalar_lea.hbm %s5061_s15, 16 }
  0xa1   :  { %p3929_p8 = scmp.ne.s32.totalorder %s5061_s15, %s3928_s1  ;;  %p3932_p9 = scmp.lt.u32.totalorder %s3928_s1, %s5061_s15 }
  0xa3   :  { %p3934_p10 = pnand %p3932_p9, %p3929_p8 }
  0xa5   :  { %3937 = shalt.err (!%p3934_p10)
}
  0xa6   :  { %s3938_s11 = scalar_lea.vmem %s126_s2, 16  ;;  %s3942_s22 = scalar_lea.vmem %s126_s2, 32 }
  0xa7   :  { %p3939_p11 = scmp.ne.s32.totalorder %s126_s2, %s3938_s11  ;;  %p3943_p12 = scmp.lt.s32.totalorder %s126_s2, %s126_s2 }
  0xa8   :  { %p3944_p13 = scmp.lt.s32.totalorder %s3942_s22, %s3938_s11 }
  0xaa   :  { %p3945_p0 = por %p3944_p13, %p3943_p12 }
  0xac   :  { %p3946_p1 = pnand %p3945_p0, %p3939_p11 }
  0xae   :  { %3949 = shalt.err (!%p3946_p1)
}
  0xaf   :  { %128 = dma.hbm_to_vmem [thread:$0]  %s5061_s15, 16, %s126_s2, [#allocation13]  }
  0xb0   :  { %s3950_s18 = scalar_lea.hbm %s5063_s17, 16 }
  0xb1   :  { %p3951_p2 = scmp.ne.s32.totalorder %s5063_s17, %s3950_s18  ;;  %p3954_p3 = scmp.lt.u32.totalorder %s3950_s18, %s5063_s17 }
  0xb3   :  { %p3956_p4 = pnand %p3954_p3, %p3951_p2 }
  0xb5   :  { %3959 = shalt.err (!%p3956_p4)
}
  0xb6   :  { %s3960_s10 = scalar_lea.vmem %s146_s0, 16  ;;  %s3964_s1 = scalar_lea.vmem %s146_s0, 32 }
  0xb7   :  { %p3961_p5 = scmp.ne.s32.totalorder %s146_s0, %s3960_s10  ;;  %p3965_p6 = scmp.lt.s32.totalorder %s146_s0, %s146_s0 }
  0xb8   :  { %p3966_p7 = scmp.lt.s32.totalorder %s3964_s1, %s3960_s10 }
  0xba   :  { %p3967_p8 = por %p3966_p7, %p3965_p6 }
  0xbc   :  { %p3968_p9 = pnand %p3967_p8, %p3961_p5 }
  0xbe   :  { %3971 = shalt.err (!%p3968_p9)
}
  0xbf   :  { %148 = dma.hbm_to_vmem [thread:$0]  %s5063_s17, 16, %s146_s0, [#allocation16]  }
  0xc0   :  { %s4044_s4 = smov [#allocation20]   ;;  %s4045_s30 = smov [#allocation21]  }
  0xc1   :  { %s164_s27 = sshll.u32 %s4044_s4, 4  ;;  %s177_s5 = sshll.u32 %s4045_s30, 4  ;;  %s165_s27 = int_to_ptr.vmem [resolvable:$true] %s164_s27  ;;  %s178_s5 = int_to_ptr.vmem [resolvable:$true] %s177_s5 }
  0xc2   :  { %s3972_s28 = scalar_lea.hbm %s5065_s19, 512 }
  0xc3   :  { %p3973_p10 = scmp.ne.s32.totalorder %s5065_s19, %s3972_s28  ;;  %p3976_p11 = scmp.lt.u32.totalorder %s3972_s28, %s5065_s19 }
  0xc5   :  { %p3978_p12 = pnand %p3976_p11, %p3973_p10 }
  0xc7   :  { %3981 = shalt.err (!%p3978_p12)
}
  0xc8   :  { %s3982_s17 = scalar_lea.vmem %s165_s27, 512  ;;  %p3987_p0 = scmp.lt.s32.totalorder %s165_s27, %s165_s27 }
  0xc9   :  { %p3983_p13 = scmp.ne.s32.totalorder %s165_s27, %s3982_s17  ;;  %p3988_p1 = scmp.lt.s32.totalorder %s3982_s17, %s3982_s17 }
  0xcb   :  { %p3989_p2 = por %p3988_p1, %p3987_p0 }
  0xcd   :  { %p3990_p3 = pnand %p3989_p2, %p3983_p13 }
  0xcf   :  { %3993 = shalt.err (!%p3990_p3)
}
  0xd0   :  { %170 = dma.hbm_to_vmem [thread:$0]  %s5065_s19, 512, %s165_s27, [#allocation19], %s4040_s9, %s4040_s9, %s4041_s24  }
  0xd1   :  { %s3994_s29 = scalar_lea.hbm %s5066_s20, 16 }
  0xd2   :  { %p3995_p4 = scmp.ne.s32.totalorder %s5066_s20, %s3994_s29  ;;  %p3998_p5 = scmp.lt.u32.totalorder %s3994_s29, %s5066_s20 }
  0xd4   :  { %p4000_p6 = pnand %p3998_p5, %p3995_p4 }
  0xd6   :  { %4003 = shalt.err (!%p4000_p6)
}
  0xd7   :  { %s4004_s4 = scalar_lea.vmem %s178_s5, 16  ;;  %s4008_s30 = scalar_lea.vmem %s178_s5, 32 }
  0xd8   :  { %p4005_p7 = scmp.ne.s32.totalorder %s178_s5, %s4004_s4  ;;  %p4009_p8 = scmp.lt.s32.totalorder %s178_s5, %s178_s5 }
  0xd9   :  { %p4010_p9 = scmp.lt.s32.totalorder %s4008_s30, %s4004_s4 }
  0xdb   :  { %p4011_p10 = por %p4010_p9, %p4009_p8 }
  0xdd   :  { %p4012_p11 = pnand %p4011_p10, %p4005_p7 }
  0xdf   :  { %4015 = shalt.err (!%p4012_p11)
}
  0xe0   :  { %180 = dma.hbm_to_vmem [thread:$0]  %s5066_s20, 16, %s178_s5, [#allocation22]  }
  0xe1   :  { %4016 = dma.done.wait [#allocation5], 1024  }
  0xe2   :  { %4017 = vsyncadd [#allocation5], 4294966272 }
  0xe3   :  { %4018 = dma.done.wait [#allocation7], 3072  }
  0xe4   :  { %4019 = vsyncadd [#allocation7], 4294964224 }
  0xe5   :  { %4020 = dma.done.wait [#allocation10], 1056  }
  0xe6   :  { %4021 = vsyncadd [#allocation10], 4294966240 }
  0xe7   :  { %4022 = dma.done.wait [#allocation13], 32  }
  0xe8   :  { %4023 = vsyncadd [#allocation13], 4294967264 }
  0xe9   :  { %4024 = dma.done.wait [#allocation16], 32  }
  0xea   :  { %4025 = vsyncadd [#allocation16], 4294967264 }
  0xeb   :  { %4026 = dma.done.wait [#allocation19], 528  }
  0xec   :  { %4027 = vsyncadd [#allocation19], 4294966768 }
  0xed   :  { %4028 = dma.done.wait [#allocation22], 16  }
  0xee   :  { %4029 = vsyncadd [#allocation22], 4294967280  ;;  %v4046_v0 = vmov 0   ;;  %s5084_s27 = sld [smem:[#allocation30_spill]]  ;;  %s5085_s17 = sld [smem:[#allocation31_spill]]  ;;  %v485_v26 = vld [vmem:[#allocation4 + $0x8] sm:$0xff]  ;;  %v226_v36 = vlaneseq }
  0xef   :  { %3518 = vset.pattern.permute.xlu1 %v4046_v0  ;;  %3517 = vset.pattern.permute.xlu0 %v4046_v0  ;;  %v487_v27 = vld [vmem:[#allocation4 + $0x18] sm:$0xff]  ;;  %v4047_v42 = vmov 1.0|1.0   ;;  %v484_v47 = vld [vmem:[#allocation4] sm:$0xff]  ;;  %v486_v48 = vld [vmem:[#allocation4 + $0x10] sm:$0xff]  ;;  %s5086_s5 = sld [smem:[#allocation35_spill]] }
  0xf0   :  { %557 = vmatprep.mubr.bf16.mxu1 %v4046_v0  ;;  %v497_v28 = vpack.c.bf16 %v487_v27, %v485_v26  ;;  %v227_v39 = vand.u32 127, %v226_v36  ;;  %v496_v49 = vpack.c.bf16 %v486_v48, %v484_v47  ;;  %v489_v50 = vld [vmem:[#allocation4 + $0x28] sm:$0xff]  ;;  %v491_v51 = vld [vmem:[#allocation4 + $0x38] sm:$0xff]  ;;  %v488_v53 = vld [vmem:[#allocation4 + $0x20] sm:$0xff]  ;;  %s5087_s0 = sld [smem:[#allocation32_spill]]  ;;  %vm512_vm12 = vcmask 261120  }
  0xf1   :  { %v499_v52 = vpack.c.bf16 %v491_v51, %v489_v50  ;;  %v490_v54 = vld [vmem:[#allocation4 + $0x30] sm:$0xff]  ;;  %v599_v56 = vld [vmem:[#allocation6 + $0x8] sm:$0xff]  ;;  %v601_v57 = vld [vmem:[#allocation6 + $0x18] sm:$0xff]  ;;  %vm821_vm13 = vcmask 523520   ;;  %vm717_vm14 = vcmask 523264   ;;  %vm4051_vm15 = vmmov 0  }
  0xf2   :  { %525 = vmatprep.subr.bf16.mxu1 %v497_v28  ;;  %v498_v55 = vpack.c.bf16 %v490_v54, %v488_v53  ;;  %v607_v58 = vpack.c.bf16 %v601_v57, %v599_v56  ;;  %v600_v47 = vld [vmem:[#allocation6 + $0x10] sm:$0xff]  ;;  %v603_v53 = vld [vmem:[#allocation6 + $0x28] sm:$0xff]  ;;  %v605_v54 = vld [vmem:[#allocation6 + $0x38] sm:$0xff] }
  0xf3   :  { %526 = vmatpush1.bf16.msra.mxu1 %v496_v49 }
  0xf4   :  { %v220_v1 = vld [vmem:[%s5084_s27 + $0x10] sm:$0xff]  ;;  %v218_v2 = vld [vmem:[%s5084_s27] sm:$0xff]  ;;  %v221_v3 = vld [vmem:[%s5084_s27 + $0x18] sm:$0xff]  ;;  %527 = vmatprep.subr.bf16.mxu1 %v499_v52 }
  0xf5   :  { %235 = vperm.xlu1 %3518, %v220_v1   ;;  %229 = vperm.xlu0 %3517, %v218_v2   ;;  %v219_v4 = vld [vmem:[%s5084_s27 + $0x8] sm:$0xff]  ;;  %v260_v5 = vld [vmem:[%s5085_s17] sm:$0xff]  ;;  %v262_v7 = vld [vmem:[%s5085_s17 + $0x10] sm:$0xff] }
  0xf6   :  { %v261_v6 = vld [vmem:[%s5085_s17 + $0x8] sm:$0xff]  ;;  %v263_v8 = vld [vmem:[%s5085_s17 + $0x18] sm:$0xff]  ;;  %v264_v11 = vld [vmem:[%s5085_s17 + $0x20] sm:$0xff] }
  0xf7   :  { %v296_v9 = vpack.c.bf16 %v261_v6, %v260_v5  ;;  %v297_v10 = vpack.c.bf16 %v263_v8, %v262_v7  ;;  %v265_v12 = vld [vmem:[%s5085_s17 + $0x28] sm:$0xff]  ;;  %v222_v14 = vld [vmem:[%s5084_s27 + $0x20] sm:$0xff]  ;;  %v266_v16 = vld [vmem:[%s5085_s17 + $0x30] sm:$0xff]  ;;  %528 = vmatpush1.bf16.msra.mxu1 %v498_v55 }
  0xf8   :  { %v223_v13 = vld [vmem:[%s5084_s27 + $0x28] sm:$0xff]  ;;  %v298_v15 = vpack.c.bf16 %v265_v12, %v264_v11  ;;  %v267_v17 = vld [vmem:[%s5085_s17 + $0x38] sm:$0xff]  ;;  %v224_v19 = vld [vmem:[%s5084_s27 + $0x30] sm:$0xff]  ;;  %610 = vmatprep.subr.bf16.mxu1 %v607_v58 }
  0xf9   :  { %238 = vperm.xlu1 %3518, %v221_v3   ;;  %232 = vperm.xlu0 %3517, %v219_v4   ;;  %v225_v18 = vld [vmem:[%s5084_s27 + $0x38] sm:$0xff]  ;;  %v299_v20 = vpack.c.bf16 %v267_v17, %v266_v16  ;;  %v268_v21 = vld [vmem:[%s5085_s17 + $0x40] sm:$0xff]  ;;  %v269_v22 = vld [vmem:[%s5085_s17 + $0x48] sm:$0xff] }
  0xfa   :  { %3179 = vmatprep.subr.bf16.mxu0 %v296_v9  ;;  %v300_v23 = vpack.c.bf16 %v269_v22, %v268_v21  ;;  %v270_v24 = vld [vmem:[%s5085_s17 + $0x50] sm:$0xff]  ;;  %v271_v25 = vld [vmem:[%s5085_s17 + $0x58] sm:$0xff]  ;;  %v272_v30 = vld [vmem:[%s5085_s17 + $0x60] sm:$0xff]  ;;  %v4049_v21 = vmov 1966171168  }
  0xfb   :  { %3180 = vmatpush3.bf16.msra.mxu0 %v296_v9  ;;  %v301_v29 = vpack.c.bf16 %v271_v25, %v270_v24  ;;  %v273_v31 = vld [vmem:[%s5085_s17 + $0x68] sm:$0xff]  ;;  %v274_v33 = vld [vmem:[%s5085_s17 + $0x70] sm:$0xff]  ;;  %v275_v34 = vld [vmem:[%s5085_s17 + $0x78] sm:$0xff]  ;;  %v373_v22 = vunpack.c.l.s4 %v4049_v21  ;;  %v4496_v24 = vshrl.u32 %v226_v36, 7 }
  0xfc   :  { %3181 = vmatprep.subr.bf16.mxu0 %v297_v10  ;;  %v302_v32 = vpack.c.bf16 %v273_v31, %v272_v30  ;;  %v303_v35 = vpack.c.bf16 %v275_v34, %v274_v33  ;;  %v469_v59 = vld [vmem:[%s5086_s5 + $0x8] sm:$0xff]  ;;  %v471_v60 = vld [vmem:[%s5086_s5 + $0x18] sm:$0xff]  ;;  %v468_v61 = vld [vmem:[%s5086_s5] sm:$0xff] }
  0xfd   :  { %244 = vperm.xlu1 %3518, %v223_v13   ;;  %241 = vperm.xlu0 %3517, %v222_v14   ;;  %v4420_v62 = vpack.c.bf16 %v471_v60, %v469_v59  ;;  %v470_v63 = vld [vmem:[%s5086_s5 + $0x10] sm:$0xff]  ;;  %v473_v1 = vld [vmem:[%s5086_s5 + $0x28] sm:$0xff]  ;;  %v475_v2 = vld [vmem:[%s5086_s5 + $0x38] sm:$0xff]  ;;  %v4503_v34 = vsub.s32 0, %v4496_v24  ;;  %v609_v60 = vpack.c.bf16 %v605_v54, %v603_v53 }
  0xfe   :  { %v4431_v3 = vpack.c.bf16 %v470_v63, %v468_v61  ;;  %v4433_v4 = vpack.c.bf16 %v475_v2, %v473_v1  ;;  %v472_v5 = vld [vmem:[%s5086_s5 + $0x20] sm:$0xff]  ;;  %v474_v6 = vld [vmem:[%s5086_s5 + $0x30] sm:$0xff]  ;;  %v477_v8 = vld [vmem:[%s5086_s5 + $0x48] sm:$0xff] }
  0xff   :  { %3182 = vmatpush3.bf16.msra.mxu0 %v297_v10  ;;  %v4444_v7 = vpack.c.bf16 %v474_v6, %v472_v5  ;;  %v479_v9 = vld [vmem:[%s5086_s5 + $0x58] sm:$0xff]  ;;  %v476_v10 = vld [vmem:[%s5086_s5 + $0x40] sm:$0xff]  ;;  %v478_v12 = vld [vmem:[%s5086_s5 + $0x50] sm:$0xff] }
 0x100   :  { %3183 = vmatprep.subr.bf16.mxu0 %v298_v15  ;;  %v4456_v11 = vpack.c.bf16 %v479_v9, %v477_v8  ;;  %v481_v13 = vld [vmem:[%s5086_s5 + $0x68] sm:$0xff]  ;;  %v483_v14 = vld [vmem:[%s5086_s5 + $0x78] sm:$0xff]  ;;  %v480_v17 = vld [vmem:[%s5086_s5 + $0x60] sm:$0xff] }
 0x101   :  { %250 = vperm.xlu1 %3518, %v225_v18   ;;  %247 = vperm.xlu0 %3517, %v224_v19   ;;  %v4469_v16 = vpack.c.bf16 %v483_v14, %v481_v13  ;;  %v482_v18 = vld [vmem:[%s5086_s5 + $0x70] sm:$0xff]  ;;  %v369_v26 = vld [vmem:[%s5087_s0] sm:$0xff] }
 0x102   :  { %v4480_v19 = vpack.c.bf16 %v482_v18, %v480_v17  ;;  %v602_v61 = vld [vmem:[#allocation6 + $0x20] sm:$0xff]  ;;  %v604_v63 = vld [vmem:[#allocation6 + $0x30] sm:$0xff] }
 0x103   :  { %3184 = vmatpush3.bf16.msra.mxu0 %v298_v15  ;;  %v4467_v15 = vpack.c.bf16 %v478_v12, %v476_v10  ;;  %v608_v10 = vpack.c.bf16 %v604_v63, %v602_v61 }
 0x104   :  { %3185 = vmatprep.subr.bf16.mxu0 %v299_v20 }
 0x107   :  { %3186 = vmatpush3.bf16.msra.mxu0 %v299_v20  ;;  %v4048_v20 = vmov 0.0  }
 0x108   :  { %3187 = vmatprep.subr.bf16.mxu0 %v300_v23 }
 0x10b   :  { %3188 = vmatpush3.bf16.msra.mxu0 %v300_v23  ;;  %v374_v23 = vunpack.c.0.s8 %v373_v22 }
 0x10c   :  { %3189 = vmatprep.subr.bf16.mxu0 %v301_v29 }
 0x10d   :  { %v377_v25 = vsub.s32 %v374_v23, %v4496_v24 }
 0x10f   :  { %3190 = vmatpush3.bf16.msra.mxu0 %v301_v29  ;;  %v378_v27 = vrot.slane %v369_v26, %v377_v25  ;;  %v371_v29 = vcombine.high %v369_v26, %v369_v26 }
 0x110   :  { %3191 = vmatprep.subr.bf16.mxu0 %v302_v32 }
 0x111   :  { %v386_v28 = vcombine.high %v378_v27, %v378_v27  ;;  %v394_v30 = vrot.slane %v378_v27, %v377_v25  ;;  %v508_v27 = vsub.s32 1, %v4496_v24 }
 0x113   :  { %3192 = vmatpush3.bf16.msra.mxu0 %v302_v32  ;;  %v408_v31 = vrot.slane %v386_v28, %v377_v25  ;;  %v385_v32 = vrot.slane %v371_v29, %v377_v25  ;;  %v416_v33 = vcombine.high %v394_v30, %v394_v30  ;;  %v500_v28 = vld [vmem:[%s5052_s6] sm:$0x3]  ;;  %s4050_s6 = smov 64  }
 0x114   :  { %3193 = vmatprep.subr.bf16.mxu0 %v303_v35 }
 0x115   :  { %v431_v36 = vrot.slane %v416_v33, %v4503_v34 }
 0x117   :  { %3194 = vmatpush3.bf16.msra.mxu0 %v303_v35  ;;  %v418_v35 = vcombine.high %v408_v31, %v408_v31 }
 0x118   :  { %3240 = vmatprep.subr.bf16.mxu0 %v4420_v62 }
 0x174   :  { %v236_v37 = vpop.permute.xlu1 %235  ;;  %v230_v38 = vpop.permute.xlu0 %229 }
 0x175   :  { %vm254_vm0 = vcmp.eq.s32.totalorder %v227_v39, %v236_v37  ;;  %vm252_vm3 = vcmp.eq.s32.totalorder %v227_v39, %v230_v38  ;;  %v387_v37 = vcombine.high %v385_v32, %v385_v32  ;;  %v435_v38 = vrot.slane %v418_v35, %v4503_v34 }
 0x178   :  { %v239_v40 = vpop.permute.xlu1 %238  ;;  %v233_v41 = vpop.permute.xlu0 %232 }
 0x179   :  { %vm255_vm1 = vcmp.eq.s32.totalorder %v227_v39, %v239_v40  ;;  %vm253_vm2 = vcmp.eq.s32.totalorder %v227_v39, %v233_v41  ;;  %v415_v40 = vrot.slane %v387_v37, %v377_v25 }
 0x17a   :  { %vm3071_vm4 = vmpackc.low %vm255_vm1, %vm254_vm0 }
 0x17b   :  { %vm3069_vm5 = vmpackc.low %vm253_vm2, %vm252_vm3  ;;  %v419_v52 = vcombine.high %v415_v40, %v415_v40  ;;  %v443_v8 = vrot.slane %v415_v40, %v4503_v34 }
 0x17c   :  { %3195 = vmatprep.mubr.msk.bf16.mxu0 %vm3069_vm5, %v4047_v42  ;;  %v245_v43 = vpop.permute.xlu1 %244  ;;  %v242_v44 = vpop.permute.xlu0 %241 }
 0x17d   :  { %vm257_vm6 = vcmp.eq.s32.totalorder %v227_v39, %v245_v43  ;;  %3196 = vmatmul.mubr.msk.bf16.vlgmr.msra.gmra.mrb[0].mxu0 %vm3071_vm4, %v4047_v42  ;;  %vm256_vm7 = vcmp.eq.s32.totalorder %v227_v39, %v242_v44  ;;  %v427_v43 = vrot.slane %v408_v31, %v4503_v34  ;;  %v451_v2 = vrot.slane %v419_v52, %v4503_v34 }
 0x17e   :  { %vm3073_vm8 = vmpackc.low %vm257_vm6, %vm256_vm7  ;;  %3242 = vmatpush1.bf16.msra.mxu0 %v4431_v3 }
 0x17f   :  { %3199 = vmatprep.mubr.msk.bf16.mxu0 %vm3073_vm8, %v4047_v42  ;;  %3244 = vmatprep.subr.bf16.mxu0 %v4433_v4 }
 0x180   :  { %v251_v45 = vpop.permute.xlu1 %250  ;;  %v248_v46 = vpop.permute.xlu0 %247 }
 0x181   :  { %vm259_vm9 = vcmp.eq.s32.totalorder %v227_v39, %v251_v45  ;;  %vm258_vm10 = vcmp.eq.s32.totalorder %v227_v39, %v248_v46  ;;  %v401_v39 = vrot.slane %v385_v32, %v377_v25  ;;  %v598_v46 = vld [vmem:[#allocation6] sm:$0xff]  ;;  %v509_v32 = vrot.slane %v500_v28, %v508_v27 }
 0x182   :  { %vm3075_vm11 = vmpackc.low %vm259_vm9, %vm258_vm10  ;;  %3246 = vmatpush1.bf16.msra.mxu0 %v4444_v7  ;;  %v606_v58 = vpack.c.bf16 %v600_v47, %v598_v46 }
 0x183   :  { %3248 = vmatprep.subr.bf16.mxu0 %v4456_v11  ;;  %v417_v51 = vcombine.high %v401_v39, %v401_v39  ;;  %v439_v6 = vrot.slane %v401_v39, %v4503_v34 }
 0x185   :  { %3200 = vmatmul.mubr.msk.bf16.gmra.mrb[4].mxu0 %vm3075_vm11, %v4047_v42  ;;  %v423_v42 = vrot.slane %v394_v30, %v4503_v34  ;;  %v447_v1 = vrot.slane %v417_v51, %v4503_v34  ;;  %v505_v30 = vrot.slane %v500_v28, %v4503_v34 }
 0x186   :  { %3250 = vmatpush1.bf16.msra.mxu0 %v4467_v15  ;;  %785 = vmatprep.mubr.f32.mxu0 %v4048_v20 }
 0x187   :  { %3252 = vmatprep.subr.bf16.mxu0 %v4469_v16 }
 0x18a   :  { %3254 = vmatpush1.bf16.msra.mxu0 %v4480_v19 }
 0x18b   :  { %3256 = vmatprep.subr.bf16.mxu0 %v4420_v62 }
 0x18d   :  { %786 = vmatmul.mubr.f32.vlgmr.msra.gmra.mrb[8].mxu0 %v4048_v20 }
 0x18e   :  { %3258 = vmatpush1.bf16.msra.mxu0 %v4431_v3  ;;  %891 = vmatprep.mubr.f32.mxu0 %v4048_v20 }
 0x18f   :  { %3260 = vmatprep.subr.bf16.mxu0 %v4433_v4 }
 0x192   :  { %3262 = vmatpush1.bf16.msra.mxu0 %v4444_v7 }
 0x193   :  { %3264 = vmatprep.subr.bf16.mxu0 %v4456_v11 }
 0x196   :  { %3266 = vmatpush1.bf16.msra.mxu0 %v4467_v15 }
 0x197   :  { %3268 = vmatprep.subr.bf16.mxu0 %v4469_v16 }
 0x19a   :  { %3270 = vmatpush1.bf16.msra.mxu0 %v4480_v19 }
 0x19b   :  { %3288 = vmatprep.subr.bf16.mxu0 %v4420_v62 }
 0x250   :  { %v3197_v41 = vpop.f32.mrb[0].mxu0 }
 0x251   :  { %v338_v44 = vpop.f32.mrb[1].mxu0  ;;  %v462_v48 = vadd.f32 %v3197_v41, %v431_v36 }
 0x252   :  { %v3198_v45 = vpop.f32.mrb[2].mxu0  ;;  %v460_v55 = vadd.f32 %v423_v42, %v338_v44 }
 0x253   :  { %v463_v49 = vadd.f32 %v3198_v45, %v435_v38  ;;  %v341_v50 = vpop.f32.mrb[3].mxu0 }
 0x254   :  { %v461_v56 = vadd.f32 %v427_v43, %v341_v50 }
 0x255   :  { %v493_v57 = vpack.c.bf16 %v463_v49, %v462_v48 }
 0x256   :  { %v492_v59 = vpack.c.bf16 %v461_v56, %v460_v55 }
 0x258   :  { %v3201_v5 = vpop.f32.mrb[4].mxu0  ;;  %3077 = vmatmul.mubr.msk.bf16.vlgmr.msra.gmra.mrb[0].mxu1 %vm512_vm12, %v492_v59 }
 0x259   :  { %611 = vmatpush1.bf16.msra.mxu1 %v606_v58  ;;  %v354_v9 = vpop.f32.mrb[5].mxu0  ;;  %567 = vmatprep.mubr.bf16.mxu1 %v4046_v0  ;;  %v466_v13 = vadd.f32 %v3201_v5, %v447_v1 }
 0x25a   :  { %v3202_v12 = vpop.f32.mrb[6].mxu0  ;;  %612 = vmatprep.subr.bf16.mxu1 %v609_v60  ;;  %v464_v18 = vadd.f32 %v439_v6, %v354_v9 }
 0x25b   :  { %v467_v14 = vadd.f32 %v3202_v12, %v451_v2  ;;  %v357_v17 = vpop.f32.mrb[7].mxu0 }
 0x25c   :  { %v465_v21 = vadd.f32 %v443_v8, %v357_v17 }
 0x25d   :  { %v495_v22 = vpack.c.bf16 %v467_v14, %v466_v13  ;;  %613 = vmatpush1.bf16.msra.mxu1 %v608_v10 }
 0x25e   :  { %v494_v23 = vpack.c.bf16 %v465_v21, %v464_v18  ;;  %3272 = vmatprep.subr.bf16.mxu1 %v4420_v62 }
 0x260   :  { %3078 = vmatmul.mubr.msk.bf16.gmra.mrb[4].mxu1 %vm512_vm12, %v493_v57  ;;  %v4538_v25 = vpop.f32.mrb[8].mxu0 }
 0x261   :  { %577 = vmatprep.mubr.bf16.mxu1 %v4046_v0  ;;  %v4540_v26 = vpop.f32.mrb[9].mxu0 }
 0x268   :  { %3079 = vmatmul.mubr.msk.bf16.gmra.mrb[8].mxu1 %vm512_vm12, %v494_v23 }
 0x269   :  { %587 = vmatprep.mubr.bf16.mxu1 %v4046_v0 }
 0x270   :  { %3080 = vmatmul.mubr.msk.bf16.gmra.mrb[12].mxu1 %vm512_vm12, %v495_v22 }
 0x271   :  { %642 = vmatprep.mubr.bf16.mxu1 %v4046_v0 }
 0x278   :  { %3081 = vmatmul.mubr.msk.bf16.vlgmr.msra.gmra.mrb[16].mxu1 %vm512_vm12, %v492_v59 }
 0x279   :  { %652 = vmatprep.mubr.bf16.mxu1 %v4046_v0  ;;  %3274 = vmatpush1.bf16.msra.mxu1 %v4431_v3 }
 0x27a   :  { %3276 = vmatprep.subr.bf16.mxu1 %v4433_v4 }
 0x27d   :  { %3278 = vmatpush1.bf16.msra.mxu1 %v4444_v7 }
 0x27e   :  { %3280 = vmatprep.subr.bf16.mxu1 %v4456_v11 }
 0x280   :  { %3082 = vmatmul.mubr.msk.bf16.gmra.mrb[20].mxu1 %vm512_vm12, %v493_v57 }
 0x281   :  { %662 = vmatprep.mubr.bf16.mxu1 %v4046_v0  ;;  %3282 = vmatpush1.bf16.msra.mxu1 %v4467_v15 }
 0x282   :  { %3284 = vmatprep.subr.bf16.mxu1 %v4469_v16 }
 0x285   :  { %3286 = vmatpush1.bf16.msra.mxu1 %v4480_v19 }
 0x286   :  { %3304 = vmatprep.subr.bf16.mxu1 %v4420_v62 }
 0x288   :  { %3083 = vmatmul.mubr.msk.bf16.gmra.mrb[24].mxu1 %vm512_vm12, %v494_v23 }
 0x289   :  { %672 = vmatprep.mubr.bf16.mxu1 %v4046_v0 }
 0x290   :  { %3084 = vmatmul.mubr.msk.bf16.gmra.mrb[28].mxu1 %vm512_vm12, %v495_v22 }
 0x291   :  { %996 = vmatprep.mubr.f32.mxu1 %v4048_v20 }
 0x32b   :  { %v559_v29 = vpop.f32.mrb[0].mxu1 }
 0x32c   :  { %v561_v31 = vpop.f32.mrb[1].mxu1 }
 0x32d   :  { %v563_v33 = vpop.f32.mrb[2].mxu1 }
 0x32e   :  { %v564_v35 = vadd.f32 %v563_v33, %v505_v30  ;;  %v565_v37 = vpop.f32.mrb[3].mxu1 }
 0x32f   :  { %v566_v36 = vadd.f32 %v565_v37, %v509_v32 }
 0x333   :  { %v569_v38 = vpop.f32.mrb[4].mxu1 }
 0x334   :  { %v570_v39 = vadd.f32 %v569_v38, %v505_v30  ;;  %v571_v40 = vpop.f32.mrb[5].mxu1 }
 0x335   :  { %v572_v41 = vadd.f32 %v571_v40, %v509_v32  ;;  %v573_v42 = vpop.f32.mrb[6].mxu1 }
 0x336   :  { %v574_v43 = vadd.f32 %v573_v42, %v505_v30  ;;  %v575_v44 = vpop.f32.mrb[7].mxu1 }
 0x337   :  { %v576_v45 = vadd.f32 %v575_v44, %v509_v32 }
 0x33b   :  { %v579_v46 = vpop.f32.mrb[8].mxu1 }
 0x33c   :  { %v580_v47 = vadd.f32 %v579_v46, %v505_v30  ;;  %v581_v48 = vpop.f32.mrb[9].mxu1 }
 0x33d   :  { %v582_v49 = vadd.f32 %v581_v48, %v509_v32  ;;  %v583_v50 = vpop.f32.mrb[10].mxu1 }
 0x33e   :  { %v584_v51 = vadd.f32 %v583_v50, %v505_v30  ;;  %v585_v52 = vpop.f32.mrb[11].mxu1  ;;  %v560_v50 = vadd.f32 %v559_v29, %v505_v30 }
 0x33f   :  { %v586_v53 = vadd.f32 %v585_v52, %v509_v32  ;;  %v562_v52 = vadd.f32 %v561_v31, %v509_v32 }
 0x343   :  { %v589_v54 = vpop.f32.mrb[12].mxu1 }
 0x344   :  { %v590_v55 = vadd.f32 %v589_v54, %v505_v30  ;;  %v591_v56 = vpop.f32.mrb[13].mxu1 }
 0x345   :  { %v592_v57 = vadd.f32 %v591_v56, %v509_v32  ;;  %v593_v58 = vpop.f32.mrb[14].mxu1 }
 0x346   :  { %v594_v59 = vadd.f32 %v593_v58, %v505_v30  ;;  %v595_v60 = vpop.f32.mrb[15].mxu1 }
 0x347   :  { %v596_v61 = vadd.f32 %v595_v60, %v509_v32 }
 0x34b   :  { %v644_v63 = vpop.f32.mrb[16].mxu1 }
 0x34c   :  { %v4549_v1 = vadd.f32 %v644_v63, %v594_v59  ;;  %v646_v2 = vpop.f32.mrb[17].mxu1 }
 0x34d   :  { %v4551_v5 = vadd.f32 %v646_v2, %v596_v61  ;;  %v648_v6 = vpop.f32.mrb[18].mxu1 }
 0x34e   :  { %v4553_v8 = vadd.f32 %v648_v6, %v590_v55  ;;  %v650_v9 = vpop.f32.mrb[19].mxu1 }
 0x34f   :  { %v4555_v10 = vadd.f32 %v650_v9, %v592_v57 }
 0x353   :  { %v654_v12 = vpop.f32.mrb[20].mxu1 }
 0x354   :  { %v4557_v13 = vadd.f32 %v654_v12, %v584_v51  ;;  %v656_v14 = vpop.f32.mrb[21].mxu1 }
 0x355   :  { %v4559_v17 = vadd.f32 %v656_v14, %v586_v53  ;;  %v658_v18 = vpop.f32.mrb[22].mxu1 }
 0x356   :  { %v4561_v21 = vadd.f32 %v658_v18, %v580_v47  ;;  %v660_v22 = vpop.f32.mrb[23].mxu1 }
 0x357   :  { %v4563_v23 = vadd.f32 %v660_v22, %v582_v49 }
 0x35b   :  { %v664_v28 = vpop.f32.mrb[24].mxu1 }
 0x35c   :  { %v4565_v33 = vadd.f32 %v664_v28, %v574_v43  ;;  %v666_v37 = vpop.f32.mrb[25].mxu1 }
 0x35d   :  { %v4567_v38 = vadd.f32 %v666_v37, %v576_v45  ;;  %v668_v40 = vpop.f32.mrb[26].mxu1 }
 0x35e   :  { %v4569_v42 = vadd.f32 %v668_v40, %v570_v39  ;;  %v670_v44 = vpop.f32.mrb[27].mxu1 }
 0x35f   :  { %v4571_v46 = vadd.f32 %v670_v44, %v572_v41 }
 0x363   :  { %v674_v48 = vpop.f32.mrb[28].mxu1 }
 0x364   :  { %v687_v51 = vadd.f32 %v674_v48, %v564_v35  ;;  %v676_v47 = vpop.f32.mrb[29].mxu1 }
 0x365   :  { %v688_v53 = vadd.f32 %v676_v47, %v566_v36  ;;  %v678_v49 = vpop.f32.mrb[30].mxu1 }
 0x366   :  { %v683_v54 = vadd.f32 %v678_v49, %v560_v50  ;;  %v680_v55 = vpop.f32.mrb[31].mxu1 }
 0x367   :  { %v684_v43 = vadd.f32 %v680_v55, %v562_v52 }
 0x368   :  { %v792_v56 = vadd.f32 %v4538_v25, %v683_v54 }
 0x369   :  { %v793_v45 = vadd.f32 %v4540_v26, %v684_v43 }
 0x36a   :  { %v3085_v57 = vmul.f32 -1.442695, %v792_v56 }
 0x36b   :  { %v3086_v31 = vmul.f32 -1.442695, %v793_v45 }
 0x36c   :  { %3520 = vpow2.f32 %v3085_v57 }
 0x36d   :  { %3522 = vtanh.f32 %v793_v45 }
 0x376   :  { %v3521_v39 = vpop.eup %3520 }
 0x377   :  { %v800_v58 = vadd.f32 1.0, %v3521_v39  ;;  %v3523_v41 = vpop.eup %3522 }
 0x379   :  { %3524 = vrcp.f32 %v800_v58 }
 0x37a   :  { %3526 = vpow2.f32 %v3086_v31 }
 0x383   :  { %v3525_v29 = vpop.eup %3524 }
 0x384   :  { %v808_v30 = vmul.f32 %v3525_v29, %v3523_v41  ;;  %v3527_v32 = vpop.eup %3526  ;;  %v807_v36 = vmul.f32 0.0, %v3525_v29 }
 0x385   :  { %v801_v35 = vadd.f32 1.0, %v3527_v32 }
 0x386   :  { %810 = vrot.lane.b32.xlu0 %v808_v30, %s4050_s6 }
 0x387   :  { %3528 = vrcp.f32 %v801_v35 }
 0x391   :  { %v3529_v26 = vpop.eup %3528 }
 0x3f8   :  { %v811_v25 = vpop.permute.xlu0 %810 }
 0x3f9   :  { %v813_v59 = vadd.f32 %v811_v25, %v807_v36 }
 0x3fb   :  { %3530 = vtanh.f32 %v813_v59 }
 0x405   :  { %v3531_v60 = vpop.eup %3530 }
 0x406   :  { %v815_v61 = vmul.f32 %v3531_v60, %v3529_v26 }
 0x408   :  { %817 = vrot.lane.b32.xlu1 %v815_v61, %s4050_s6 }
 0x47a   :  { %v818_v63 = vpop.permute.xlu1 %817 }
 0x47b   :  { %820 = vst.msk [vmem:[#allocation3] sm:$0xff] %vm512_vm12, %v818_v63  ;;  %3087 = vmatmul.mubr.msk.f32.vlgmr.msra.gmra.mrb[10].mxu0 %vm717_vm14, %v818_v63 }
 0x47c   :  { %822 = vst.msk [vmem:[#allocation3 + $0x38] sm:$0xff] %vm821_vm13, %v818_v63  ;;  %3290 = vmatpush1.bf16.msra.mxu0 %v4431_v3  ;;  %1101 = vmatprep.mubr.f32.mxu0 %v4048_v20 }
 0x47d   :  { %3292 = vmatprep.subr.bf16.mxu0 %v4433_v4 }
 0x480   :  { %3294 = vmatpush1.bf16.msra.mxu0 %v4444_v7 }
 0x481   :  { %3296 = vmatprep.subr.bf16.mxu0 %v4456_v11 }
 0x484   :  { %3298 = vmatpush1.bf16.msra.mxu0 %v4467_v15 }
 0x485   :  { %3300 = vmatprep.subr.bf16.mxu0 %v4469_v16 }
 0x488   :  { %3302 = vmatpush1.bf16.msra.mxu0 %v4480_v19 }
 0x489   :  { %3320 = vmatprep.subr.bf16.mxu0 %v4420_v62 }
 0x54e   :  { %v893_v2 = vpop.f32.mrb[10].mxu0 }
 0x54f   :  { %v898_v6 = vadd.f32 %v893_v2, %v687_v51  ;;  %v895_v9 = vpop.f32.mrb[11].mxu0 }
 0x550   :  { %v899_v12 = vadd.f32 %v895_v9, %v688_v53 }
 0x551   :  { %v3088_v14 = vmul.f32 -1.442695, %v898_v6 }
 0x552   :  { %v3089_v44 = vmul.f32 -1.442695, %v899_v12 }
 0x553   :  { %3532 = vpow2.f32 %v3088_v14 }
 0x554   :  { %3534 = vtanh.f32 %v899_v12 }
 0x55d   :  { %v3533_v18 = vpop.eup %3532 }
 0x55e   :  { %v906_v22 = vadd.f32 1.0, %v3533_v18  ;;  %v3535_v28 = vpop.eup %3534 }
 0x560   :  { %3536 = vrcp.f32 %v906_v22 }
 0x561   :  { %3538 = vpow2.f32 %v3089_v44 }
 0x56a   :  { %v3537_v37 = vpop.eup %3536 }
 0x56b   :  { %v914_v40 = vmul.f32 %v3537_v37, %v3535_v28  ;;  %v3539_v48 = vpop.eup %3538  ;;  %v913_v47 = vmul.f32 %v3537_v37, %v813_v59 }
 0x56c   :  { %v907_v50 = vadd.f32 1.0, %v3539_v48 }
 0x56d   :  { %916 = vrot.lane.b32.xlu0 %v914_v40, %s4050_s6 }
 0x56e   :  { %3540 = vrcp.f32 %v907_v50 }
 0x578   :  { %v3541_v53 = vpop.eup %3540 }
 0x5df   :  { %v917_v52 = vpop.permute.xlu0 %916 }
 0x5e0   :  { %v919_v51 = vadd.f32 %v917_v52, %v913_v47 }
 0x5e2   :  { %3542 = vtanh.f32 %v919_v51 }
 0x5ec   :  { %v3543_v49 = vpop.eup %3542 }
 0x5ed   :  { %v921_v54 = vmul.f32 %v3543_v49, %v3541_v53 }
 0x5ef   :  { %923 = vrot.lane.b32.xlu1 %v921_v54, %s4050_s6 }
 0x661   :  { %v924_v55 = vpop.permute.xlu1 %923 }
 0x662   :  { %926 = vst.msk [vmem:[#allocation3 + $0x8] sm:$0xff] %vm512_vm12, %v924_v55  ;;  %3090 = vmatmul.mubr.msk.f32.vlgmr.msra.gmra.mrb[32].mxu1 %vm717_vm14, %v924_v55 }
 0x663   :  { %927 = vst.msk [vmem:[#allocation3 + $0x30] sm:$0xff] %vm821_vm13, %v924_v55  ;;  %3306 = vmatpush1.bf16.msra.mxu1 %v4431_v3  ;;  %1206 = vmatprep.mubr.f32.mxu1 %v4048_v20 }
 0x664   :  { %3308 = vmatprep.subr.bf16.mxu1 %v4433_v4 }
 0x667   :  { %3310 = vmatpush1.bf16.msra.mxu1 %v4444_v7 }
 0x668   :  { %3312 = vmatprep.subr.bf16.mxu1 %v4456_v11 }
 0x66b   :  { %3314 = vmatpush1.bf16.msra.mxu1 %v4467_v15 }
 0x66c   :  { %3316 = vmatprep.subr.bf16.mxu1 %v4469_v16 }
 0x66f   :  { %3318 = vmatpush1.bf16.msra.mxu1 %v4480_v19 }
 0x670   :  { %3336 = vmatprep.subr.bf16.mxu1 %v4420_v62 }
 0x735   :  { %v998_v43 = vpop.f32.mrb[32].mxu1 }
 0x736   :  { %v1003_v56 = vadd.f32 %v998_v43, %v4569_v42  ;;  %v1000_v45 = vpop.f32.mrb[33].mxu1 }
 0x737   :  { %v1004_v57 = vadd.f32 %v1000_v45, %v4571_v46 }
 0x738   :  { %v3091_v39 = vmul.f32 -1.442695, %v1003_v56 }
 0x739   :  { %v3092_v32 = vmul.f32 -1.442695, %v1004_v57 }
 0x73a   :  { %3544 = vpow2.f32 %v3091_v39 }
 0x73b   :  { %3546 = vtanh.f32 %v1004_v57 }
 0x744   :  { %v3545_v58 = vpop.eup %3544 }
 0x745   :  { %v1011_v41 = vadd.f32 1.0, %v3545_v58  ;;  %v3547_v29 = vpop.eup %3546 }
 0x747   :  { %3548 = vrcp.f32 %v1011_v41 }
 0x748   :  { %3550 = vpow2.f32 %v3092_v32 }
 0x751   :  { %v3549_v30 = vpop.eup %3548 }
 0x752   :  { %v1019_v31 = vmul.f32 %v3549_v30, %v3547_v29  ;;  %v3551_v35 = vpop.eup %3550  ;;  %v1018_v25 = vmul.f32 %v3549_v30, %v919_v51 }
 0x753   :  { %v1012_v36 = vadd.f32 1.0, %v3551_v35 }
 0x754   :  { %1021 = vrot.lane.b32.xlu0 %v1019_v31, %s4050_s6 }
 0x755   :  { %3552 = vrcp.f32 %v1012_v36 }
 0x75f   :  { %v3553_v46 = vpop.eup %3552 }
 0x7c6   :  { %v1022_v42 = vpop.permute.xlu0 %1021 }
 0x7c7   :  { %v1024_v59 = vadd.f32 %v1022_v42, %v1018_v25 }
 0x7c9   :  { %3554 = vtanh.f32 %v1024_v59 }
 0x7d3   :  { %v3555_v26 = vpop.eup %3554 }
 0x7d4   :  { %v1026_v60 = vmul.f32 %v3555_v26, %v3553_v46 }
 0x7d6   :  { %1028 = vrot.lane.b32.xlu1 %v1026_v60, %s4050_s6 }
 0x848   :  { %v1029_v61 = vpop.permute.xlu1 %1028 }
 0x849   :  { %1031 = vst.msk [vmem:[#allocation3 + $0x10] sm:$0xff] %vm512_vm12, %v1029_v61  ;;  %3093 = vmatmul.mubr.msk.f32.vlgmr.msra.gmra.mrb[12].mxu0 %vm717_vm14, %v1029_v61 }
 0x84a   :  { %1032 = vst.msk [vmem:[#allocation3 + $0x28] sm:$0xff] %vm821_vm13, %v1029_v61  ;;  %3322 = vmatpush1.bf16.msra.mxu0 %v4431_v3  ;;  %1311 = vmatprep.mubr.f32.mxu0 %v4048_v20 }
 0x84b   :  { %3324 = vmatprep.subr.bf16.mxu0 %v4433_v4 }
 0x84e   :  { %3326 = vmatpush1.bf16.msra.mxu0 %v4444_v7 }
 0x84f   :  { %3328 = vmatprep.subr.bf16.mxu0 %v4456_v11 }
 0x852   :  { %3330 = vmatpush1.bf16.msra.mxu0 %v4467_v15 }
 0x853   :  { %3332 = vmatprep.subr.bf16.mxu0 %v4469_v16 }
 0x856   :  { %3334 = vmatpush1.bf16.msra.mxu0 %v4480_v19 }
 0x857   :  { %3352 = vmatprep.subr.bf16.mxu0 %v4420_v62 }
 0x91c   :  { %v1103_v63 = vpop.f32.mrb[12].mxu0 }
 0x91d   :  { %v1108_v2 = vadd.f32 %v1103_v63, %v4565_v33  ;;  %v1105_v6 = vpop.f32.mrb[13].mxu0 }
 0x91e   :  { %v1109_v9 = vadd.f32 %v1105_v6, %v4567_v38 }
 0x91f   :  { %v3094_v12 = vmul.f32 -1.442695, %v1108_v2 }
 0x920   :  { %v3095_v40 = vmul.f32 -1.442695, %v1109_v9 }
 0x921   :  { %3556 = vpow2.f32 %v3094_v12 }
 0x922   :  { %3558 = vtanh.f32 %v1109_v9 }
 0x92b   :  { %v3557_v14 = vpop.eup %3556 }
 0x92c   :  { %v1116_v18 = vadd.f32 1.0, %v3557_v14  ;;  %v3559_v22 = vpop.eup %3558 }
 0x92e   :  { %3560 = vrcp.f32 %v1116_v18 }
 0x92f   :  { %3562 = vpow2.f32 %v3095_v40 }
 0x938   :  { %v3561_v28 = vpop.eup %3560 }
 0x939   :  { %v1124_v37 = vmul.f32 %v3561_v28, %v3559_v22  ;;  %v3563_v62 = vpop.eup %3562  ;;  %v1123_v48 = vmul.f32 %v3561_v28, %v1024_v59 }
 0x93a   :  { %v1117_v44 = vadd.f32 1.0, %v3563_v62 }
 0x93b   :  { %1126 = vrot.lane.b32.xlu0 %v1124_v37, %s4050_s6 }
 0x93c   :  { %3564 = vrcp.f32 %v1117_v44 }
 0x946   :  { %v3565_v38 = vpop.eup %3564 }
 0x9ad   :  { %v1127_v33 = vpop.permute.xlu0 %1126 }
 0x9ae   :  { %v1129_v50 = vadd.f32 %v1127_v33, %v1123_v48 }
 0x9b0   :  { %3566 = vtanh.f32 %v1129_v50 }
 0x9ba   :  { %v3567_v47 = vpop.eup %3566 }
 0x9bb   :  { %v1131_v52 = vmul.f32 %v3567_v47, %v3565_v38 }
 0x9bd   :  { %1133 = vrot.lane.b32.xlu1 %v1131_v52, %s4050_s6 }
 0xa2f   :  { %v1134_v51 = vpop.permute.xlu1 %1133 }
 0xa30   :  { %1136 = vst.msk [vmem:[#allocation3 + $0x18] sm:$0xff] %vm512_vm12, %v1134_v51  ;;  %3096 = vmatmul.mubr.msk.f32.vlgmr.msra.gmra.mrb[34].mxu1 %vm717_vm14, %v1134_v51 }
 0xa31   :  { %1137 = vst.msk [vmem:[#allocation3 + $0x20] sm:$0xff] %vm821_vm13, %v1134_v51  ;;  %3338 = vmatpush1.bf16.msra.mxu1 %v4431_v3  ;;  %1416 = vmatprep.mubr.f32.mxu1 %v4048_v20 }
 0xa32   :  { %3340 = vmatprep.subr.bf16.mxu1 %v4433_v4 }
 0xa35   :  { %3342 = vmatpush1.bf16.msra.mxu1 %v4444_v7 }
 0xa36   :  { %3344 = vmatprep.subr.bf16.mxu1 %v4456_v11 }
 0xa39   :  { %3346 = vmatpush1.bf16.msra.mxu1 %v4467_v15 }
 0xa3a   :  { %3348 = vmatprep.subr.bf16.mxu1 %v4469_v16 }
 0xa3d   :  { %3350 = vmatpush1.bf16.msra.mxu1 %v4480_v19 }
 0xb03   :  { %v1208_v53 = vpop.f32.mrb[34].mxu1 }
 0xb04   :  { %v1213_v49 = vadd.f32 %v1208_v53, %v4561_v21  ;;  %v1210_v54 = vpop.f32.mrb[35].mxu1 }
 0xb05   :  { %v1214_v55 = vadd.f32 %v1210_v54, %v4563_v23 }
 0xb06   :  { %v3097_v43 = vmul.f32 -1.442695, %v1213_v49 }
 0xb07   :  { %v3098_v41 = vmul.f32 -1.442695, %v1214_v55 }
 0xb08   :  { %3568 = vpow2.f32 %v3097_v43 }
 0xb09   :  { %3570 = vtanh.f32 %v1214_v55 }
 0xb12   :  { %v3569_v56 = vpop.eup %3568 }
 0xb13   :  { %v1221_v45 = vadd.f32 1.0, %v3569_v56  ;;  %v3571_v57 = vpop.eup %3570 }
 0xb15   :  { %3572 = vrcp.f32 %v1221_v45 }
 0xb16   :  { %3574 = vpow2.f32 %v3098_v41 }
 0xb1f   :  { %v3573_v39 = vpop.eup %3572 }
 0xb20   :  { %v1229_v58 = vmul.f32 %v3573_v39, %v3571_v57  ;;  %v3575_v29 = vpop.eup %3574  ;;  %v1228_v31 = vmul.f32 %v3573_v39, %v1129_v50 }
 0xb21   :  { %v1222_v30 = vadd.f32 1.0, %v3575_v29 }
 0xb22   :  { %1231 = vrot.lane.b32.xlu0 %v1229_v58, %s4050_s6 }
 0xb23   :  { %3576 = vrcp.f32 %v1222_v30 }
 0xb2d   :  { %v3577_v23 = vpop.eup %3576 }
 0xb94   :  { %v1232_v21 = vpop.permute.xlu0 %1231 }
 0xb95   :  { %v1234_v32 = vadd.f32 %v1232_v21, %v1228_v31  ;;  %v1583_v31 = vld [vmem:[%s5053_s7 + $0x8] sm:$0xff] }
 0xb97   :  { %3578 = vtanh.f32 %v1234_v32 }
 0xba1   :  { %v3579_v35 = vpop.eup %3578 }
 0xba2   :  { %v1236_v36 = vmul.f32 %v3579_v35, %v3577_v23  ;;  %v1708_v23 = vld [vmem:[%s5054_s8 + $0x8] sm:$0xff]  ;;  %v1710_v35 = vld [vmem:[%s5054_s8 + $0x18] sm:$0xff] }
 0xba4   :  { %1238 = vrot.lane.b32.xlu1 %v1236_v36, %s4050_s6 }
 0xc16   :  { %v1239_v25 = vpop.permute.xlu1 %1238 }
 0xc17   :  { %1241 = vst.msk [vmem:[#allocation3 + $0x20] sm:$0xff] %vm512_vm12, %v1239_v25  ;;  %3099 = vmatmul.mubr.msk.f32.vlgmr.msra.gmra.mrb[14].mxu0 %vm717_vm14, %v1239_v25 }
 0xc18   :  { %1242 = vst.msk [vmem:[#allocation3 + $0x18] sm:$0xff] %vm821_vm13, %v1239_v25  ;;  %3354 = vmatpush1.bf16.msra.mxu0 %v4431_v3  ;;  %1521 = vmatprep.mubr.f32.mxu0 %v4048_v20  ;;  %v1724_v25 = vpack.c.bf16 %v1710_v35, %v1708_v23  ;;  %v1573_v23 = vld [vmem:[#allocation8 + $0x38] sm:$0xff] }
 0xc19   :  { %3356 = vmatprep.subr.bf16.mxu0 %v4433_v4 }
 0xc1c   :  { %3358 = vmatpush1.bf16.msra.mxu0 %v4444_v7 }
 0xc1d   :  { %3360 = vmatprep.subr.bf16.mxu0 %v4456_v11 }
 0xc20   :  { %3362 = vmatpush1.bf16.msra.mxu0 %v4467_v15 }
 0xc21   :  { %3364 = vmatprep.subr.bf16.mxu0 %v4469_v16 }
 0xc24   :  { %3366 = vmatpush1.bf16.msra.mxu0 %v4480_v19 }
 0xc25   :  { %1731 = vmatprep.subr.bf16.mxu0 %v1724_v25 }
 0xcea   :  { %v1313_v42 = vpop.f32.mrb[14].mxu0 }
 0xceb   :  { %v1318_v59 = vadd.f32 %v1313_v42, %v4557_v13  ;;  %v1315_v46 = vpop.f32.mrb[15].mxu0  ;;  %v1707_v42 = vld [vmem:[%s5054_s8] sm:$0xff] }
 0xcec   :  { %v1319_v3 = vadd.f32 %v1315_v46, %v4559_v17  ;;  %v1587_v46 = vld [vmem:[%s5053_s7 + $0x28] sm:$0xff] }
 0xced   :  { %v3100_v26 = vmul.f32 -1.442695, %v1318_v59  ;;  %v1709_v59 = vld [vmem:[%s5054_s8 + $0x10] sm:$0xff] }
 0xcee   :  { %v3101_v15 = vmul.f32 -1.442695, %v1319_v3 }
 0xcef   :  { %3580 = vpow2.f32 %v3100_v26  ;;  %v1589_v26 = vld [vmem:[%s5053_s7 + $0x38] sm:$0xff] }
 0xcf0   :  { %3582 = vtanh.f32 %v1319_v3  ;;  %v1723_v3 = vpack.c.bf16 %v1709_v59, %v1707_v42 }
 0xcf9   :  { %v3581_v60 = vpop.eup %3580 }
 0xcfa   :  { %v1326_v4 = vadd.f32 1.0, %v3581_v60  ;;  %v3583_v7 = vpop.eup %3582  ;;  %v1586_v60 = vld [vmem:[%s5053_s7 + $0x20] sm:$0xff] }
 0xcfc   :  { %3584 = vrcp.f32 %v1326_v4  ;;  %v1588_v4 = vld [vmem:[%s5053_s7 + $0x30] sm:$0xff] }
 0xcfd   :  { %3586 = vpow2.f32 %v3101_v15  ;;  %v1714_v15 = vld [vmem:[%s5054_s8 + $0x38] sm:$0xff] }
 0xd06   :  { %v3585_v11 = vpop.eup %3584 }
 0xd07   :  { %v1334_v61 = vmul.f32 %v3585_v11, %v3583_v7  ;;  %v3587_v16 = vpop.eup %3586  ;;  %v1333_v63 = vmul.f32 %v3585_v11, %v1234_v32  ;;  %v1584_v32 = vld [vmem:[%s5053_s7 + $0x10] sm:$0xff]  ;;  %v1605_v7 = vpack.c.bf16 %v1589_v26, %v1587_v46  ;;  %v1604_v11 = vpack.c.bf16 %v1588_v4, %v1586_v60  ;;  %v1570_v46 = vld [vmem:[#allocation8 + $0x20] sm:$0xff]  ;;  %v1575_v26 = vld [vmem:[#allocation8 + $0x48] sm:$0xff] }
 0xd08   :  { %v1327_v19 = vadd.f32 1.0, %v3587_v16  ;;  %v1711_v16 = vld [vmem:[%s5054_s8 + $0x20] sm:$0xff]  ;;  %v1577_v60 = vld [vmem:[#allocation8 + $0x58] sm:$0xff] }
 0xd09   :  { %1336 = vrot.lane.b32.xlu0 %v1334_v61, %s4050_s6  ;;  %v1712_v61 = vld [vmem:[%s5054_s8 + $0x28] sm:$0xff] }
 0xd0a   :  { %3588 = vrcp.f32 %v1327_v19  ;;  %v1726_v19 = vpack.c.bf16 %v1714_v15, %v1712_v61  ;;  %v1574_v61 = vld [vmem:[#allocation8 + $0x40] sm:$0xff]  ;;  %v1576_v15 = vld [vmem:[#allocation8 + $0x50] sm:$0xff] }
 0xd14   :  { %v3589_v17 = vpop.eup %3588 }
 0xd7b   :  { %v1337_v13 = vpop.permute.xlu0 %1336 }
 0xd7c   :  { %v1339_v2 = vadd.f32 %v1337_v13, %v1333_v63  ;;  %v1713_v63 = vld [vmem:[%s5054_s8 + $0x30] sm:$0xff] }
 0xd7d   :  { %v1725_v13 = vpack.c.bf16 %v1713_v63, %v1711_v16  ;;  %v1579_v16 = vld [vmem:[#allocation8 + $0x68] sm:$0xff]  ;;  %v1561_v63 = vld [vmem:[#allocation3 + $0x18] sm:$0xff] }
 0xd7e   :  { %3590 = vtanh.f32 %v1339_v2 }
 0xd88   :  { %v3591_v6 = vpop.eup %3590 }
 0xd89   :  { %v1341_v9 = vmul.f32 %v3591_v6, %v3589_v17 }
 0xd8b   :  { %1343 = vrot.lane.b32.xlu1 %v1341_v9, %s4050_s6 }
 0xdfd   :  { %v1344_v12 = vpop.permute.xlu1 %1343 }
 0xdfe   :  { %1346 = vst.msk [vmem:[#allocation3 + $0x28] sm:$0xff] %vm512_vm12, %v1344_v12  ;;  %3102 = vmatmul.mubr.msk.f32.vlgmr.msra.gmra.mrb[36].mxu1 %vm717_vm14, %v1344_v12 }
 0xdff   :  { %1347 = vst.msk [vmem:[#allocation3 + $0x10] sm:$0xff] %vm821_vm13, %v1344_v12  ;;  %1666 = vmatprep.mubr.bf16.mxu1 %v4046_v0 }
 0xed1   :  { %v1418_v14 = vpop.f32.mrb[36].mxu1 }
 0xed2   :  { %v1423_v18 = vadd.f32 %v1418_v14, %v4553_v8  ;;  %v1420_v22 = vpop.f32.mrb[37].mxu1 }
 0xed3   :  { %v1424_v28 = vadd.f32 %v1420_v22, %v4555_v10  ;;  %v1593_v22 = vld [vmem:[%s5053_s7 + $0x58] sm:$0xff] }
 0xed4   :  { %v3103_v37 = vmul.f32 -1.442695, %v1423_v18  ;;  %v1591_v18 = vld [vmem:[%s5053_s7 + $0x48] sm:$0xff] }
 0xed5   :  { %v3104_v50 = vmul.f32 -1.442695, %v1424_v28 }
 0xed6   :  { %3592 = vpow2.f32 %v3103_v37  ;;  %v1607_v37 = vpack.c.bf16 %v1593_v22, %v1591_v18  ;;  %v1562_v18 = vld [vmem:[#allocation3 + $0x20] sm:$0xff] }
 0xed7   :  { %3594 = vtanh.f32 %v1424_v28  ;;  %v1716_v28 = vld [vmem:[%s5054_s8 + $0x48] sm:$0xff] }
 0xee0   :  { %v3593_v40 = vpop.eup %3592 }
 0xee1   :  { %v1431_v62 = vadd.f32 1.0, %v3593_v40  ;;  %v3595_v44 = vpop.eup %3594  ;;  %v1590_v40 = vld [vmem:[%s5053_s7 + $0x40] sm:$0xff] }
 0xee3   :  { %3596 = vrcp.f32 %v1431_v62  ;;  %v1592_v62 = vld [vmem:[%s5053_s7 + $0x50] sm:$0xff] }
 0xee4   :  { %3598 = vpow2.f32 %v3104_v50  ;;  %v1715_v50 = vld [vmem:[%s5054_s8 + $0x40] sm:$0xff] }
 0xeed   :  { %v3597_v48 = vpop.eup %3596 }
 0xeee   :  { %v1439_v33 = vmul.f32 %v3597_v48, %v3595_v44  ;;  %v3599_v38 = vpop.eup %3598  ;;  %v1438_v52 = vmul.f32 %v3597_v48, %v1339_v2  ;;  %v1718_v44 = vld [vmem:[%s5054_s8 + $0x58] sm:$0xff]  ;;  %v1606_v48 = vpack.c.bf16 %v1592_v62, %v1590_v40 }
 0xeef   :  { %v1432_v47 = vadd.f32 1.0, %v3599_v38  ;;  %v1717_v38 = vld [vmem:[%s5054_s8 + $0x50] sm:$0xff] }
 0xef0   :  { %1441 = vrot.lane.b32.xlu0 %v1439_v33, %s4050_s6  ;;  %v1728_v33 = vpack.c.bf16 %v1718_v44, %v1716_v28 }
 0xef1   :  { %3600 = vrcp.f32 %v1432_v47  ;;  %v1595_v47 = vld [vmem:[%s5053_s7 + $0x68] sm:$0xff] }
 0xefb   :  { %v3601_v10 = vpop.eup %3600 }
 0xf62   :  { %v1442_v8 = vpop.permute.xlu0 %1441 }
 0xf63   :  { %v1444_v51 = vadd.f32 %v1442_v8, %v1438_v52  ;;  %v1727_v52 = vpack.c.bf16 %v1717_v38, %v1715_v50  ;;  %v1597_v8 = vld [vmem:[%s5053_s7 + $0x78] sm:$0xff] }
 0xf65   :  { %3602 = vtanh.f32 %v1444_v51 }
 0xf6f   :  { %v3603_v53 = vpop.eup %3602 }
 0xf70   :  { %v1446_v49 = vmul.f32 %v3603_v53, %v3601_v10  ;;  %v1596_v10 = vld [vmem:[%s5053_s7 + $0x70] sm:$0xff]  ;;  %v1609_v53 = vpack.c.bf16 %v1597_v8, %v1595_v47 }
 0xf72   :  { %1448 = vrot.lane.b32.xlu1 %v1446_v49, %s4050_s6 }
 0xfe4   :  { %v1449_v54 = vpop.permute.xlu1 %1448 }
 0xfe5   :  { %1451 = vst.msk [vmem:[#allocation3 + $0x30] sm:$0xff] %vm512_vm12, %v1449_v54  ;;  %3105 = vmatmul.mubr.msk.f32.vlgmr.msra.gmra.mrb[16].mxu0 %vm717_vm14, %v1449_v54 }
 0xfe6   :  { %1452 = vst.msk [vmem:[#allocation3 + $0x8] sm:$0xff] %vm821_vm13, %v1449_v54  ;;  %1763 = vmatprep.mubr.bf16.mxu0 %v4046_v0  ;;  %1732 = vmatpush1.bf16.msra.mxu0 %v1723_v3  ;;  %v1720_v54 = vld [vmem:[%s5054_s8 + $0x68] sm:$0xff]  ;;  %v1572_v3 = vld [vmem:[#allocation8 + $0x30] sm:$0xff] }
 0xfe7   :  { %1733 = vmatprep.subr.bf16.mxu0 %v1726_v19  ;;  %v4779_v4 = vpack.c.bf16 %v1572_v3, %v1570_v46  ;;  %v1581_v19 = vld [vmem:[#allocation8 + $0x78] sm:$0xff] }
 0xfea   :  { %1734 = vmatpush1.bf16.msra.mxu0 %v1725_v13 }
 0xfeb   :  { %1735 = vmatprep.subr.bf16.mxu0 %v1728_v33 }
 0xfee   :  { %1736 = vmatpush1.bf16.msra.mxu0 %v1727_v52 }
0x10b8   :  { %v1523_v55 = vpop.f32.mrb[16].mxu0 }
0x10b9   :  { %v1528_v43 = vadd.f32 %v1523_v55, %v4549_v1  ;;  %v1525_v56 = vpop.f32.mrb[17].mxu0  ;;  %v1585_v1 = vld [vmem:[%s5053_s7 + $0x18] sm:$0xff] }
0x10ba   :  { %v1529_v45 = vadd.f32 %v1525_v56, %v4551_v5  ;;  %v1582_v5 = vld [vmem:[%s5053_s7] sm:$0xff]  ;;  %v1603_v21 = vpack.c.bf16 %v1585_v1, %v1583_v31  ;;  %v1722_v55 = vld [vmem:[%s5054_s8 + $0x78] sm:$0xff] }
0x10bb   :  { %v3106_v57 = vmul.f32 -1.442695, %v1528_v43  ;;  %v1602_v36 = vpack.c.bf16 %v1584_v32, %v1582_v5  ;;  %v1719_v43 = vld [vmem:[%s5054_s8 + $0x60] sm:$0xff]  ;;  %v1730_v56 = vpack.c.bf16 %v1722_v55, %v1720_v54  ;;  %v1571_v32 = vld [vmem:[#allocation8 + $0x28] sm:$0xff] }
0x10bc   :  { %1634 = vmatprep.subr.bf16.mxu1 %v1603_v21  ;;  %v3107_v2 = vmul.f32 -1.442695, %v1529_v45  ;;  %v1566_v5 = vld [vmem:[#allocation8] sm:$0xff]  ;;  %v1568_v21 = vld [vmem:[#allocation8 + $0x10] sm:$0xff]  ;;  %v4773_v59 = vpack.c.bf16 %v1573_v23, %v1571_v32 }
0x10bd   :  { %3604 = vpow2.f32 %v3106_v57  ;;  %1635 = vmatpush1.bf16.msra.mxu1 %v1602_v36  ;;  %v1567_v57 = vld [vmem:[#allocation8 + $0x8] sm:$0xff]  ;;  %1737 = vmatprep.subr.bf16.mxu0 %v1730_v56  ;;  %v4771_v25 = vpack.c.bf16 %v1568_v21, %v1566_v5 }
0x10be   :  { %3606 = vtanh.f32 %v1529_v45  ;;  %1636 = vmatprep.subr.bf16.mxu1 %v1605_v7  ;;  %v1721_v45 = vld [vmem:[%s5054_s8 + $0x70] sm:$0xff]  ;;  %v1559_v36 = vld [vmem:[#allocation3 + $0x8] sm:$0xff]  ;;  %v4783_v7 = vpack.c.bf16 %v1577_v60, %v1575_v26 }
0x10c1   :  { %1637 = vmatpush1.bf16.msra.mxu1 %v1604_v11  ;;  %v1560_v11 = vld [vmem:[#allocation3 + $0x10] sm:$0xff] }
0x10c2   :  { %1638 = vmatprep.subr.bf16.mxu1 %v1607_v37  ;;  %v1599_v13 = vpack.c.bf16 %v1561_v63, %v1560_v11  ;;  %v1564_v37 = vld [vmem:[#allocation3 + $0x30] sm:$0xff] }
0x10c5   :  { %1639 = vmatpush1.bf16.msra.mxu1 %v1606_v48 }
0x10c6   :  { %1640 = vmatprep.subr.bf16.mxu1 %v1609_v53 }
0x10c7   :  { %v3605_v39 = vpop.eup %3604 }
0x10c8   :  { %v1536_v58 = vadd.f32 1.0, %v3605_v39  ;;  %v3607_v41 = vpop.eup %3606  ;;  %v1569_v39 = vld [vmem:[#allocation8 + $0x18] sm:$0xff] }
0x10ca   :  { %3608 = vrcp.f32 %v1536_v58  ;;  %v1729_v58 = vpack.c.bf16 %v1721_v45, %v1719_v43 }
0x10cb   :  { %3610 = vpow2.f32 %v3107_v2  ;;  %v4789_v2 = vpack.c.bf16 %v1576_v15, %v1574_v61 }
0x10cc   :  { %1738 = vmatpush1.bf16.msra.mxu0 %v1729_v58 }
0x10d4   :  { %v3609_v29 = vpop.eup %3608 }
0x10d5   :  { %v1544_v30 = vmul.f32 %v3609_v29, %v3607_v41  ;;  %v3611_v17 = vpop.eup %3610  ;;  %v1543_v9 = vmul.f32 %v3609_v29, %v1444_v51  ;;  %v1594_v51 = vld [vmem:[%s5053_s7 + $0x60] sm:$0xff]  ;;  %v4764_v41 = vpack.c.bf16 %v1569_v39, %v1567_v57 }
0x10d6   :  { %v1537_v6 = vadd.f32 1.0, %v3611_v17  ;;  %v1608_v49 = vpack.c.bf16 %v1596_v10, %v1594_v51  ;;  %v4791_v17 = vpack.c.bf16 %v1581_v19, %v1579_v16 }
0x10d7   :  { %1546 = vrot.lane.b32.xlu0 %v1544_v30, %s4050_s6  ;;  %3384 = vmatprep.subr.bf16.mxu0 %v4764_v41 }
0x10d8   :  { %3612 = vrcp.f32 %v1537_v6  ;;  %1641 = vmatpush1.bf16.msra.mxu1 %v1608_v49  ;;  %v1578_v6 = vld [vmem:[#allocation8 + $0x60] sm:$0xff] }
0x10d9   :  { %3368 = vmatprep.subr.bf16.mxu1 %v4764_v41 }
0x10e2   :  { %v3613_v29 = vpop.eup %3612 }
0x1149   :  { %v1547_v12 = vpop.permute.xlu0 %1546 }
0x114a   :  { %v1549_v14 = vadd.f32 %v1547_v12, %v1543_v9  ;;  %v1580_v9 = vld [vmem:[#allocation8 + $0x70] sm:$0xff] }
0x114b   :  { %v4799_v12 = vpack.c.bf16 %v1580_v9, %v1578_v6 }
0x114c   :  { %3614 = vtanh.f32 %v1549_v14  ;;  %v1563_v14 = vld [vmem:[#allocation3 + $0x28] sm:$0xff] }
0x114d   :  { %v1600_v22 = vpack.c.bf16 %v1563_v14, %v1562_v18 }
0x1156   :  { %v3615_v30 = vpop.eup %3614 }
0x1157   :  { %v1551_v31 = vmul.f32 %v3615_v30, %v3613_v29 }
0x1159   :  { %1553 = vrot.lane.b32.xlu1 %v1551_v31, %s4050_s6 }
0x11cb   :  { %v1554_v1 = vpop.permute.xlu1 %1553 }
0x11cc   :  { %1556 = vst.msk [vmem:[#allocation3 + $0x38] sm:$0xff] %vm512_vm12, %v1554_v1 }
0x11cd   :  { %1557 = vst.msk [vmem:[#allocation3] sm:$0xff] %vm821_vm13, %v1554_v1 }
0x11d3   :  { %v1565_v28 = vld [vmem:[#allocation3 + $0x38] sm:$0xff] }
0x11d4   :  { %v1558_v35 = vld [vmem:[#allocation3] sm:$0xff]  ;;  %v1601_v40 = vpack.c.bf16 %v1565_v28, %v1564_v37 }
0x11d5   :  { %v1598_v42 = vpack.c.bf16 %v1559_v36, %v1558_v35 }
0x11d7   :  { %3108 = vmatmul.mubr.msk.bf16.vlgmr.msra.gmra.mrb[40].mxu1 %vm717_vm14, %v1598_v42  ;;  %3112 = vmatmul.mubr.msk.bf16.vlgmr.msra.gmra.mrb[20].mxu0 %vm717_vm14, %v1598_v42 }
0x11d8   :  { %3370 = vmatpush1.bf16.msra.mxu1 %v4771_v25  ;;  %1676 = vmatprep.mubr.bf16.mxu1 %v4046_v0 }
0x11d9   :  { %1773 = vmatprep.mubr.bf16.mxu0 %v4046_v0  ;;  %3372 = vmatprep.subr.bf16.mxu1 %v4773_v59 }
0x11da   :  { %3386 = vmatpush1.bf16.msra.mxu0 %v4771_v25 }
0x11db   :  { %3388 = vmatprep.subr.bf16.mxu0 %v4773_v59 }
0x11dc   :  { %3374 = vmatpush1.bf16.msra.mxu1 %v4779_v4 }
0x11dd   :  { %3376 = vmatprep.subr.bf16.mxu1 %v4783_v7 }
0x11de   :  { %3390 = vmatpush1.bf16.msra.mxu0 %v4779_v4 }
0x11df   :  { %3109 = vmatmul.mubr.msk.bf16.gmra.mrb[44].mxu1 %vm717_vm14, %v1599_v13  ;;  %3113 = vmatmul.mubr.msk.bf16.gmra.mrb[24].mxu0 %vm717_vm14, %v1599_v13 }
0x11e0   :  { %1686 = vmatprep.mubr.bf16.mxu1 %v4046_v0  ;;  %1783 = vmatprep.mubr.bf16.mxu0 %v4046_v0 }
0x11e1   :  { %3378 = vmatpush1.bf16.msra.mxu1 %v4789_v2  ;;  %3392 = vmatprep.subr.bf16.mxu0 %v4783_v7 }
0x11e2   :  { %3380 = vmatprep.subr.bf16.mxu1 %v4791_v17  ;;  %3394 = vmatpush1.bf16.msra.mxu0 %v4789_v2 }
0x11e3   :  { %3396 = vmatprep.subr.bf16.mxu0 %v4791_v17 }
0x11e5   :  { %3382 = vmatpush1.bf16.msra.mxu1 %v4799_v12 }
0x11e6   :  { %3398 = vmatpush1.bf16.msra.mxu0 %v4799_v12  ;;  %3400 = vmatprep.subr.bf16.mxu1 %v4764_v41 }
0x11e7   :  { %3110 = vmatmul.mubr.msk.bf16.gmra.mrb[48].mxu1 %vm717_vm14, %v1600_v22  ;;  %3114 = vmatmul.mubr.msk.bf16.gmra.mrb[28].mxu0 %vm717_vm14, %v1600_v22 }
0x11e8   :  { %1696 = vmatprep.mubr.bf16.mxu1 %v4046_v0  ;;  %1793 = vmatprep.mubr.bf16.mxu0 %v4046_v0  ;;  %v1610_v0 = vld [vmem:[#allocation9] sm:$0x3] }
0x11e9   :  { %3416 = vmatprep.subr.bf16.mxu0 %v4764_v41  ;;  %v1615_v48 = vrot.slane %v1610_v0, %v4503_v34  ;;  %v1619_v38 = vrot.slane %v1610_v0, %v508_v27 }
0x11ef   :  { %3111 = vmatmul.mubr.msk.bf16.gmra.mrb[52].mxu1 %vm717_vm14, %v1601_v40  ;;  %3115 = vmatmul.mubr.msk.bf16.gmra.mrb[32].mxu0 %vm717_vm14, %v1601_v40 }
0x11f0   :  { %1902 = vmatprep.mubr.f32.mxu1 %v4048_v20  ;;  %2007 = vmatprep.mubr.f32.mxu0 %v4048_v20 }
0x11f7   :  { %1903 = vmatmul.mubr.f32.vlgmr.msra.gmra.mrb[38].mxu1 %v4048_v20 }
0x11f8   :  { %3402 = vmatpush1.bf16.msra.mxu1 %v4771_v25  ;;  %2112 = vmatprep.mubr.f32.mxu1 %v4048_v20 }
0x11f9   :  { %3404 = vmatprep.subr.bf16.mxu1 %v4773_v59 }
0x11fc   :  { %3406 = vmatpush1.bf16.msra.mxu1 %v4779_v4 }
0x11fd   :  { %3408 = vmatprep.subr.bf16.mxu1 %v4783_v7 }
0x1200   :  { %3410 = vmatpush1.bf16.msra.mxu1 %v4789_v2 }
0x1201   :  { %3412 = vmatprep.subr.bf16.mxu1 %v4791_v17 }
0x1204   :  { %3414 = vmatpush1.bf16.msra.mxu1 %v4799_v12 }
0x1205   :  { %3432 = vmatprep.subr.bf16.mxu1 %v4764_v41 }
0x12aa   :  { %v1668_v62 = vpop.f32.mrb[40].mxu1  ;;  %v4827_v44 = vpop.f32.mrb[20].mxu0 }
0x12ab   :  { %v1670_v33 = vpop.f32.mrb[41].mxu1  ;;  %v1767_v50 = vpop.f32.mrb[21].mxu0  ;;  %v1669_v9 = vadd.f32 %v1668_v62, %v1615_v48 }
0x12ac   :  { %v1672_v47 = vpop.f32.mrb[42].mxu1  ;;  %v1769_v52 = vpop.f32.mrb[22].mxu0  ;;  %v1671_v37 = vadd.f32 %v1670_v33, %v1619_v38 }
0x12ad   :  { %v1673_v8 = vadd.f32 %v1672_v47, %v1615_v48  ;;  %v1674_v51 = vpop.f32.mrb[43].mxu1  ;;  %v1771_v10 = vpop.f32.mrb[23].mxu0 }
0x12ae   :  { %v1675_v53 = vadd.f32 %v1674_v51, %v1619_v38 }
0x12b2   :  { %v1678_v49 = vpop.f32.mrb[44].mxu1  ;;  %v1775_v54 = vpop.f32.mrb[24].mxu0 }
0x12b3   :  { %v1679_v55 = vadd.f32 %v1678_v49, %v1615_v48  ;;  %v1680_v43 = vpop.f32.mrb[45].mxu1  ;;  %v1777_v56 = vpop.f32.mrb[25].mxu0 }
0x12b4   :  { %v1681_v45 = vadd.f32 %v1680_v43, %v1619_v38  ;;  %v1682_v57 = vpop.f32.mrb[46].mxu1  ;;  %v1779_v39 = vpop.f32.mrb[26].mxu0 }
0x12b5   :  { %v1683_v58 = vadd.f32 %v1682_v57, %v1615_v48  ;;  %v1684_v29 = vpop.f32.mrb[47].mxu1  ;;  %v1781_v30 = vpop.f32.mrb[27].mxu0 }
0x12b6   :  { %v1685_v31 = vadd.f32 %v1684_v29, %v1619_v38 }
0x12ba   :  { %v1688_v24 = vpop.f32.mrb[48].mxu1  ;;  %v1785_v27 = vpop.f32.mrb[28].mxu0 }
0x12bb   :  { %v1689_v1 = vadd.f32 %v1688_v24, %v1615_v48  ;;  %v4832_v5 = vadd.f32 %v1785_v27, %v1683_v58  ;;  %v1690_v21 = vpop.f32.mrb[49].mxu1  ;;  %v1787_v32 = vpop.f32.mrb[29].mxu0 }
0x12bc   :  { %v1691_v23 = vadd.f32 %v1690_v21, %v1619_v38  ;;  %v4834_v35 = vadd.f32 %v1787_v32, %v1685_v31  ;;  %v1692_v36 = vpop.f32.mrb[50].mxu1  ;;  %v1789_v42 = vpop.f32.mrb[30].mxu0 }
0x12bd   :  { %v1693_v46 = vadd.f32 %v1692_v36, %v1615_v48  ;;  %v4836_v3 = vadd.f32 %v1789_v42, %v1679_v55  ;;  %v1694_v26 = vpop.f32.mrb[51].mxu1  ;;  %v1791_v60 = vpop.f32.mrb[31].mxu0  ;;  %v4838_v11 = vadd.f32 %v1779_v39, %v1689_v1 }
0x12be   :  { %v1695_v61 = vadd.f32 %v1694_v26, %v1619_v38  ;;  %v4840_v15 = vadd.f32 %v1791_v60, %v1681_v45  ;;  %v4842_v16 = vadd.f32 %v1781_v30, %v1691_v23 }
0x12bf   :  { %v4844_v19 = vadd.f32 %v1775_v54, %v1693_v46 }
0x12c0   :  { %v4846_v63 = vadd.f32 %v1777_v56, %v1695_v61 }
0x12c2   :  { %v1698_v13 = vpop.f32.mrb[52].mxu1  ;;  %v1795_v6 = vpop.f32.mrb[32].mxu0 }
0x12c3   :  { %v1699_v14 = vadd.f32 %v1698_v13, %v1615_v48  ;;  %v1808_v18 = vadd.f32 %v1795_v6, %v1673_v8  ;;  %v1700_v22 = vpop.f32.mrb[53].mxu1  ;;  %v1797_v28 = vpop.f32.mrb[33].mxu0 }
0x12c4   :  { %v1701_v40 = vadd.f32 %v1700_v22, %v1619_v38  ;;  %v1809_v0 = vadd.f32 %v1797_v28, %v1675_v53  ;;  %v1702_v47 = vpop.f32.mrb[54].mxu1  ;;  %v1799_v51 = vpop.f32.mrb[34].mxu0 }
0x12c5   :  { %v1703_v49 = vadd.f32 %v1702_v47, %v1615_v48  ;;  %v1804_v55 = vadd.f32 %v1799_v51, %v1669_v9  ;;  %v1704_v43 = vpop.f32.mrb[55].mxu1  ;;  %v1801_v45 = vpop.f32.mrb[35].mxu0  ;;  %v4848_v54 = vadd.f32 %v1769_v52, %v1699_v14 }
0x12c6   :  { %v1705_v56 = vadd.f32 %v1704_v43, %v1619_v38  ;;  %v1805_v57 = vadd.f32 %v1801_v45, %v1671_v37  ;;  %v4850_v39 = vadd.f32 %v1771_v10, %v1701_v40 }
0x12c7   :  { %v4853_v62 = vadd.f32 %v4827_v44, %v1703_v49 }
0x12c8   :  { %v4855_v8 = vadd.f32 %v1767_v50, %v1705_v56 }
0x12ca   :  { %v1904_v33 = vpop.f32.mrb[38].mxu1 }
0x12cb   :  { %v1909_v58 = vadd.f32 %v1904_v33, %v1804_v55  ;;  %v1906_v53 = vpop.f32.mrb[39].mxu1 }
0x12cc   :  { %v1910_v29 = vadd.f32 %v1906_v53, %v1805_v57 }
0x12cd   :  { %v3116_v30 = vmul.f32 -1.442695, %v1909_v58 }
0x12ce   :  { %v3117_v10 = vmul.f32 -1.442695, %v1910_v29 }
0x12cf   :  { %3616 = vpow2.f32 %v3116_v30 }
0x12d0   :  { %3618 = vtanh.f32 %v1910_v29 }
0x12d9   :  { %v3617_v48 = vpop.eup %3616 }
0x12da   :  { %v1917_v31 = vadd.f32 1.0, %v3617_v48  ;;  %v3619_v52 = vpop.eup %3618 }
0x12dc   :  { %3620 = vrcp.f32 %v1917_v31 }
0x12dd   :  { %3622 = vpow2.f32 %v3117_v10 }
0x12e6   :  { %v3621_v38 = vpop.eup %3620 }
0x12e7   :  { %v1925_v24 = vmul.f32 %v3621_v38, %v3619_v52  ;;  %v3623_v44 = vpop.eup %3622  ;;  %v1924_v27 = vmul.f32 0.0, %v3621_v38 }
0x12e8   :  { %v1918_v50 = vadd.f32 1.0, %v3623_v44 }
0x12e9   :  { %1927 = vrot.lane.b32.xlu0 %v1925_v24, %s4050_s6 }
0x12ea   :  { %3624 = vrcp.f32 %v1918_v50 }
0x12f4   :  { %v3625_v32 = vpop.eup %3624 }
0x135b   :  { %v1928_v1 = vpop.permute.xlu0 %1927 }
0x135c   :  { %v1930_v21 = vadd.f32 %v1928_v1, %v1924_v27 }
0x135e   :  { %3626 = vtanh.f32 %v1930_v21 }
0x1368   :  { %v3627_v23 = vpop.eup %3626 }
0x1369   :  { %v1932_v36 = vmul.f32 %v3627_v23, %v3625_v32 }
0x136b   :  { %1934 = vrot.lane.b32.xlu1 %v1932_v36, %s4050_s6 }
0x13dd   :  { %v1935_v42 = vpop.permute.xlu1 %1934 }
0x13de   :  { %1937 = vst.msk [vmem:[#allocation3] sm:$0xff] %vm512_vm12, %v1935_v42  ;;  %3118 = vmatmul.mubr.msk.f32.vlgmr.msra.gmra.mrb[18].mxu0 %vm717_vm14, %v1935_v42 }
0x13df   :  { %1938 = vst.msk [vmem:[#allocation3 + $0x38] sm:$0xff] %vm821_vm13, %v1935_v42  ;;  %3418 = vmatpush1.bf16.msra.mxu0 %v4771_v25  ;;  %2217 = vmatprep.mubr.f32.mxu0 %v4048_v20 }
0x13e0   :  { %3420 = vmatprep.subr.bf16.mxu0 %v4773_v59 }
0x13e3   :  { %3422 = vmatpush1.bf16.msra.mxu0 %v4779_v4 }
0x13e4   :  { %3424 = vmatprep.subr.bf16.mxu0 %v4783_v7 }
0x13e7   :  { %3426 = vmatpush1.bf16.msra.mxu0 %v4789_v2 }
0x13e8   :  { %3428 = vmatprep.subr.bf16.mxu0 %v4791_v17 }
0x13eb   :  { %3430 = vmatpush1.bf16.msra.mxu0 %v4799_v12 }
0x13ec   :  { %3448 = vmatprep.subr.bf16.mxu0 %v4764_v41 }
0x14b1   :  { %v2009_v46 = vpop.f32.mrb[18].mxu0 }
0x14b2   :  { %v2014_v26 = vadd.f32 %v2009_v46, %v1808_v18  ;;  %v2011_v60 = vpop.f32.mrb[19].mxu0 }
0x14b3   :  { %v2015_v61 = vadd.f32 %v2011_v60, %v1809_v0 }
0x14b4   :  { %v3119_v13 = vmul.f32 -1.442695, %v2014_v26 }
0x14b5   :  { %v3120_v37 = vmul.f32 -1.442695, %v2015_v61 }
0x14b6   :  { %3628 = vpow2.f32 %v3119_v13 }
0x14b7   :  { %3630 = vtanh.f32 %v2015_v61 }
0x14c0   :  { %v3629_v6 = vpop.eup %3628 }
0x14c1   :  { %v2022_v9 = vadd.f32 1.0, %v3629_v6  ;;  %v3631_v14 = vpop.eup %3630 }
0x14c3   :  { %3632 = vrcp.f32 %v2022_v9 }
0x14c4   :  { %3634 = vpow2.f32 %v3120_v37 }
0x14cd   :  { %v3633_v22 = vpop.eup %3632 }
0x14ce   :  { %v2030_v28 = vmul.f32 %v3633_v22, %v3631_v14  ;;  %v3635_v40 = vpop.eup %3634  ;;  %v2029_v51 = vmul.f32 %v3633_v22, %v1930_v21 }
0x14cf   :  { %v2023_v47 = vadd.f32 1.0, %v3635_v40 }
0x14d0   :  { %2032 = vrot.lane.b32.xlu0 %v2030_v28, %s4050_s6 }
0x14d1   :  { %3636 = vrcp.f32 %v2023_v47 }
0x14db   :  { %v3637_v0 = vpop.eup %3636 }
0x1542   :  { %v2033_v49 = vpop.permute.xlu0 %2032 }
0x1543   :  { %v2035_v18 = vadd.f32 %v2033_v49, %v2029_v51 }
0x1545   :  { %3638 = vtanh.f32 %v2035_v18 }
0x154f   :  { %v3639_v55 = vpop.eup %3638 }
0x1550   :  { %v2037_v43 = vmul.f32 %v3639_v55, %v3637_v0 }
0x1552   :  { %2039 = vrot.lane.b32.xlu1 %v2037_v43, %s4050_s6 }
0x15c4   :  { %v2040_v45 = vpop.permute.xlu1 %2039 }
0x15c5   :  { %2042 = vst.msk [vmem:[#allocation3 + $0x8] sm:$0xff] %vm512_vm12, %v2040_v45  ;;  %3121 = vmatmul.mubr.msk.f32.vlgmr.msra.gmra.mrb[56].mxu1 %vm717_vm14, %v2040_v45 }
0x15c6   :  { %2043 = vst.msk [vmem:[#allocation3 + $0x30] sm:$0xff] %vm821_vm13, %v2040_v45  ;;  %3434 = vmatpush1.bf16.msra.mxu1 %v4771_v25  ;;  %2322 = vmatprep.mubr.f32.mxu1 %v4048_v20 }
0x15c7   :  { %3436 = vmatprep.subr.bf16.mxu1 %v4773_v59 }
0x15ca   :  { %3438 = vmatpush1.bf16.msra.mxu1 %v4779_v4 }
0x15cb   :  { %3440 = vmatprep.subr.bf16.mxu1 %v4783_v7 }
0x15ce   :  { %3442 = vmatpush1.bf16.msra.mxu1 %v4789_v2 }
0x15cf   :  { %3444 = vmatprep.subr.bf16.mxu1 %v4791_v17 }
0x15d2   :  { %3446 = vmatpush1.bf16.msra.mxu1 %v4799_v12 }
0x15d3   :  { %3464 = vmatprep.subr.bf16.mxu1 %v4764_v41 }
0x1698   :  { %v2114_v56 = vpop.f32.mrb[56].mxu1 }
0x1699   :  { %v2119_v57 = vadd.f32 %v2114_v56, %v4836_v3  ;;  %v2116_v33 = vpop.f32.mrb[57].mxu1 }
0x169a   :  { %v2120_v58 = vadd.f32 %v2116_v33, %v4840_v15 }
0x169b   :  { %v3122_v53 = vmul.f32 -1.442695, %v2119_v57 }
0x169c   :  { %v3123_v38 = vmul.f32 -1.442695, %v2120_v58 }
0x169d   :  { %3640 = vpow2.f32 %v3122_v53 }
0x169e   :  { %3642 = vtanh.f32 %v2120_v58 }
0x16a7   :  { %v3641_v29 = vpop.eup %3640 }
0x16a8   :  { %v2127_v30 = vadd.f32 1.0, %v3641_v29  ;;  %v3643_v48 = vpop.eup %3642 }
0x16aa   :  { %3644 = vrcp.f32 %v2127_v30 }
0x16ab   :  { %3646 = vpow2.f32 %v3123_v38 }
0x16b4   :  { %v3645_v31 = vpop.eup %3644 }
0x16b5   :  { %v2135_v52 = vmul.f32 %v3645_v31, %v3643_v48  ;;  %v3647_v24 = vpop.eup %3646  ;;  %v2134_v44 = vmul.f32 %v3645_v31, %v2035_v18 }
0x16b6   :  { %v2128_v10 = vadd.f32 1.0, %v3647_v24 }
0x16b7   :  { %2137 = vrot.lane.b32.xlu0 %v2135_v52, %s4050_s6 }
0x16b8   :  { %3648 = vrcp.f32 %v2128_v10 }
0x16c2   :  { %v3649_v15 = vpop.eup %3648 }
0x1729   :  { %v2138_v3 = vpop.permute.xlu0 %2137 }
0x172a   :  { %v2140_v50 = vadd.f32 %v2138_v3, %v2134_v44 }
0x172c   :  { %3650 = vtanh.f32 %v2140_v50 }
0x1736   :  { %v3651_v27 = vpop.eup %3650 }
0x1737   :  { %v2142_v1 = vmul.f32 %v3651_v27, %v3649_v15 }
0x1739   :  { %2144 = vrot.lane.b32.xlu1 %v2142_v1, %s4050_s6 }
0x17ab   :  { %v2145_v21 = vpop.permute.xlu1 %2144 }
0x17ac   :  { %2147 = vst.msk [vmem:[#allocation3 + $0x10] sm:$0xff] %vm512_vm12, %v2145_v21  ;;  %3124 = vmatmul.mubr.msk.f32.vlgmr.msra.gmra.mrb[36].mxu0 %vm717_vm14, %v2145_v21 }
0x17ad   :  { %2148 = vst.msk [vmem:[#allocation3 + $0x28] sm:$0xff] %vm821_vm13, %v2145_v21  ;;  %3450 = vmatpush1.bf16.msra.mxu0 %v4771_v25  ;;  %2427 = vmatprep.mubr.f32.mxu0 %v4048_v20 }
0x17ae   :  { %3452 = vmatprep.subr.bf16.mxu0 %v4773_v59 }
0x17b1   :  { %3454 = vmatpush1.bf16.msra.mxu0 %v4779_v4 }
0x17b2   :  { %3456 = vmatprep.subr.bf16.mxu0 %v4783_v7 }
0x17b5   :  { %3458 = vmatpush1.bf16.msra.mxu0 %v4789_v2 }
0x17b6   :  { %3460 = vmatprep.subr.bf16.mxu0 %v4791_v17 }
0x17b9   :  { %3462 = vmatpush1.bf16.msra.mxu0 %v4799_v12 }
0x17ba   :  { %3480 = vmatprep.subr.bf16.mxu0 %v4764_v41 }
0x187f   :  { %v2219_v32 = vpop.f32.mrb[36].mxu0 }
0x1880   :  { %v2224_v23 = vadd.f32 %v2219_v32, %v4832_v5  ;;  %v2221_v36 = vpop.f32.mrb[37].mxu0 }
0x1881   :  { %v2225_v42 = vadd.f32 %v2221_v36, %v4834_v35 }
0x1882   :  { %v3125_v46 = vmul.f32 -1.442695, %v2224_v23 }
0x1883   :  { %v3126_v9 = vmul.f32 -1.442695, %v2225_v42 }
0x1884   :  { %3652 = vpow2.f32 %v3125_v46 }
0x1885   :  { %3654 = vtanh.f32 %v2225_v42 }
0x188e   :  { %v3653_v26 = vpop.eup %3652 }
0x188f   :  { %v2232_v60 = vadd.f32 1.0, %v3653_v26  ;;  %v3655_v61 = vpop.eup %3654 }
0x1891   :  { %3656 = vrcp.f32 %v2232_v60 }
0x1892   :  { %3658 = vpow2.f32 %v3126_v9 }
0x189b   :  { %v3657_v13 = vpop.eup %3656 }
0x189c   :  { %v2240_v6 = vmul.f32 %v3657_v13, %v3655_v61  ;;  %v3659_v41 = vpop.eup %3658  ;;  %v2239_v22 = vmul.f32 %v3657_v13, %v2140_v50 }
0x189d   :  { %v2233_v14 = vadd.f32 1.0, %v3659_v41 }
0x189e   :  { %2242 = vrot.lane.b32.xlu0 %v2240_v6, %s4050_s6 }
0x189f   :  { %3660 = vrcp.f32 %v2233_v14 }
0x18a9   :  { %v3661_v35 = vpop.eup %3660 }
0x1910   :  { %v2243_v5 = vpop.permute.xlu0 %2242 }
0x1911   :  { %v2245_v28 = vadd.f32 %v2243_v5, %v2239_v22 }
0x1913   :  { %3662 = vtanh.f32 %v2245_v28 }
0x191d   :  { %v3663_v37 = vpop.eup %3662 }
0x191e   :  { %v2247_v40 = vmul.f32 %v3663_v37, %v3661_v35 }
0x1920   :  { %2249 = vrot.lane.b32.xlu1 %v2247_v40, %s4050_s6 }
0x1992   :  { %v2250_v47 = vpop.permute.xlu1 %2249 }
0x1993   :  { %2252 = vst.msk [vmem:[#allocation3 + $0x18] sm:$0xff] %vm512_vm12, %v2250_v47  ;;  %3127 = vmatmul.mubr.msk.f32.vlgmr.msra.gmra.mrb[58].mxu1 %vm717_vm14, %v2250_v47 }
0x1994   :  { %2253 = vst.msk [vmem:[#allocation3 + $0x20] sm:$0xff] %vm821_vm13, %v2250_v47  ;;  %3466 = vmatpush1.bf16.msra.mxu1 %v4771_v25  ;;  %2532 = vmatprep.mubr.f32.mxu1 %v4048_v20 }
0x1995   :  { %3468 = vmatprep.subr.bf16.mxu1 %v4773_v59 }
0x1998   :  { %3470 = vmatpush1.bf16.msra.mxu1 %v4779_v4 }
0x1999   :  { %3472 = vmatprep.subr.bf16.mxu1 %v4783_v7 }
0x199c   :  { %3474 = vmatpush1.bf16.msra.mxu1 %v4789_v2 }
0x199d   :  { %3476 = vmatprep.subr.bf16.mxu1 %v4791_v17 }
0x19a0   :  { %3478 = vmatpush1.bf16.msra.mxu1 %v4799_v12 }
0x1a66   :  { %v2324_v51 = vpop.f32.mrb[58].mxu1 }
0x1a67   :  { %v2329_v49 = vadd.f32 %v2324_v51, %v4838_v11  ;;  %v2326_v18 = vpop.f32.mrb[59].mxu1 }
0x1a68   :  { %v2330_v0 = vadd.f32 %v2326_v18, %v4842_v16 }
0x1a69   :  { %v3128_v55 = vmul.f32 -1.442695, %v2329_v49 }
0x1a6a   :  { %v3129_v58 = vmul.f32 -1.442695, %v2330_v0 }
0x1a6b   :  { %3664 = vpow2.f32 %v3128_v55 }
0x1a6c   :  { %3666 = vtanh.f32 %v2330_v0 }
0x1a75   :  { %v3665_v43 = vpop.eup %3664 }
0x1a76   :  { %v2337_v45 = vadd.f32 1.0, %v3665_v43  ;;  %v3667_v56 = vpop.eup %3666 }
0x1a78   :  { %3668 = vrcp.f32 %v2337_v45 }
0x1a79   :  { %3670 = vpow2.f32 %v3129_v58  ;;  %v2682_v58 = vld [vmem:[#allocation11] sm:$0xff] }
0x1a82   :  { %v3669_v57 = vpop.eup %3668 }
0x1a83   :  { %v2345_v33 = vmul.f32 %v3669_v57, %v3667_v56  ;;  %v3671_v53 = vpop.eup %3670  ;;  %v2344_v30 = vmul.f32 %v3669_v57, %v2245_v28 }
0x1a84   :  { %v2338_v29 = vadd.f32 1.0, %v3671_v53  ;;  %v2683_v53 = vld [vmem:[#allocation11 + $0x8] sm:$0xff] }
0x1a85   :  { %2347 = vrot.lane.b32.xlu0 %v2345_v33, %s4050_s6 }
0x1a86   :  { %3672 = vrcp.f32 %v2338_v29  ;;  %v2684_v29 = vld [vmem:[#allocation11 + $0x10] sm:$0xff] }
0x1a90   :  { %v3673_v16 = vpop.eup %3672 }
0x1af7   :  { %v2348_v11 = vpop.permute.xlu0 %2347 }
0x1af8   :  { %v2350_v48 = vadd.f32 %v2348_v11, %v2344_v30  ;;  %v2694_v30 = vpack.c.bf16 %v2683_v53, %v2682_v58  ;;  %v2685_v11 = vld [vmem:[#allocation11 + $0x18] sm:$0xff] }
0x1afa   :  { %3674 = vtanh.f32 %v2350_v48  ;;  %3203 = vmatprep.subr.bf16.mxu1 %v2694_v30 }
0x1b04   :  { %v3675_v31 = vpop.eup %3674 }
0x1b05   :  { %v2352_v52 = vmul.f32 %v3675_v31, %v3673_v16 }
0x1b07   :  { %2354 = vrot.lane.b32.xlu1 %v2352_v52, %s4050_s6 }
0x1b79   :  { %v2355_v38 = vpop.permute.xlu1 %2354 }
0x1b7a   :  { %2357 = vst.msk [vmem:[#allocation3 + $0x20] sm:$0xff] %vm512_vm12, %v2355_v38  ;;  %3130 = vmatmul.mubr.msk.f32.vlgmr.msra.gmra.mrb[38].mxu0 %vm717_vm14, %v2355_v38 }
0x1b7b   :  { %2358 = vst.msk [vmem:[#allocation3 + $0x18] sm:$0xff] %vm821_vm13, %v2355_v38  ;;  %3482 = vmatpush1.bf16.msra.mxu0 %v4771_v25  ;;  %2637 = vmatprep.mubr.f32.mxu0 %v4048_v20 }
0x1b7c   :  { %3484 = vmatprep.subr.bf16.mxu0 %v4773_v59 }
0x1b7f   :  { %3486 = vmatpush1.bf16.msra.mxu0 %v4779_v4 }
0x1b80   :  { %3488 = vmatprep.subr.bf16.mxu0 %v4783_v7 }
0x1b83   :  { %3490 = vmatpush1.bf16.msra.mxu0 %v4789_v2 }
0x1b84   :  { %3492 = vmatprep.subr.bf16.mxu0 %v4791_v17 }
0x1b87   :  { %3494 = vmatpush1.bf16.msra.mxu0 %v4799_v12 }
0x1b88   :  { %3219 = vmatprep.subr.bf16.mxu0 %v4048_v20 }
0x1c4d   :  { %v2429_v24 = vpop.f32.mrb[38].mxu0 }
0x1c4e   :  { %v2434_v10 = vadd.f32 %v2429_v24, %v4844_v19  ;;  %v2431_v25 = vpop.f32.mrb[39].mxu0  ;;  %v2686_v24 = vld [vmem:[#allocation11 + $0x20] sm:$0xff] }
0x1c4f   :  { %v2435_v44 = vadd.f32 %v2431_v25, %v4846_v63  ;;  %v2688_v25 = vld [vmem:[#allocation11 + $0x30] sm:$0xff] }
0x1c50   :  { %v3131_v3 = vmul.f32 -1.442695, %v2434_v10  ;;  %v2687_v10 = vld [vmem:[#allocation11 + $0x28] sm:$0xff] }
0x1c51   :  { %v3132_v17 = vmul.f32 -1.442695, %v2435_v44 }
0x1c52   :  { %3676 = vpow2.f32 %v3131_v3  ;;  %v2689_v3 = vld [vmem:[#allocation11 + $0x38] sm:$0xff] }
0x1c53   :  { %3678 = vtanh.f32 %v2435_v44  ;;  %v2696_v44 = vpack.c.bf16 %v2687_v10, %v2686_v24  ;;  %v2895_v24 = vld [vmem:[%s5059_s13 + $0x28] sm:$0xff] }
0x1c5c   :  { %v3677_v59 = vpop.eup %3676 }
0x1c5d   :  { %v2442_v4 = vadd.f32 1.0, %v3677_v59  ;;  %v3679_v7 = vpop.eup %3678  ;;  %v2697_v59 = vpack.c.bf16 %v2689_v3, %v2688_v25  ;;  %v2896_v25 = vld [vmem:[%s5059_s13 + $0x30] sm:$0xff] }
0x1c5f   :  { %3680 = vrcp.f32 %v2442_v4 }
0x1c60   :  { %3682 = vpow2.f32 %v3132_v17 }
0x1c69   :  { %v3681_v2 = vpop.eup %3680 }
0x1c6a   :  { %v2450_v50 = vmul.f32 %v3681_v2, %v3679_v7  ;;  %v3683_v12 = vpop.eup %3682  ;;  %v2449_v27 = vmul.f32 %v3681_v2, %v2350_v48 }
0x1c6b   :  { %v2443_v15 = vadd.f32 1.0, %v3683_v12 }
0x1c6c   :  { %2452 = vrot.lane.b32.xlu0 %v2450_v50, %s4050_s6 }
0x1c6d   :  { %3684 = vrcp.f32 %v2443_v15 }
0x1c77   :  { %v3685_v63 = vpop.eup %3684 }
0x1cde   :  { %v2453_v19 = vpop.permute.xlu0 %2452 }
0x1cdf   :  { %v2455_v1 = vadd.f32 %v2453_v19, %v2449_v27 }
0x1ce1   :  { %3686 = vtanh.f32 %v2455_v1 }
0x1ceb   :  { %v3687_v21 = vpop.eup %3686 }
0x1cec   :  { %v2457_v32 = vmul.f32 %v3687_v21, %v3685_v63  ;;  %v4966_v21 = vld [vmem:[#allocation3 + $0x20] sm:$0xff] }
0x1cee   :  { %2459 = vrot.lane.b32.xlu1 %v2457_v32, %s4050_s6 }
0x1d60   :  { %v2460_v23 = vpop.permute.xlu1 %2459 }
0x1d61   :  { %2462 = vst.msk [vmem:[#allocation3 + $0x28] sm:$0xff] %vm512_vm12, %v2460_v23  ;;  %3133 = vmatmul.mubr.msk.f32.vlgmr.msra.gmra.mrb[60].mxu1 %vm717_vm14, %v2460_v23 }
0x1d62   :  { %2463 = vst.msk [vmem:[#allocation3 + $0x10] sm:$0xff] %vm821_vm13, %v2460_v23  ;;  %3204 = vmatpush3.bf16.msra.mxu1 %v2694_v30 }
0x1d68   :  { %v4958_v27 = vld [vmem:[#allocation3 + $0x28] sm:$0xff] }
0x1d69   :  { %v4952_v17 = vld [vmem:[#allocation3 + $0x10] sm:$0xff]  ;;  %v2692_v32 = vpack.c.bf16 %v4958_v27, %v4966_v21 }
0x1e34   :  { %v2534_v36 = vpop.f32.mrb[60].mxu1 }
0x1e35   :  { %v2539_v42 = vadd.f32 %v2534_v36, %v4848_v54  ;;  %v2536_v46 = vpop.f32.mrb[61].mxu1 }
0x1e36   :  { %v2540_v26 = vadd.f32 %v2536_v46, %v4850_v39 }
0x1e37   :  { %v3134_v60 = vmul.f32 -1.442695, %v2539_v42 }
0x1e38   :  { %v3135_v14 = vmul.f32 -1.442695, %v2540_v26 }
0x1e39   :  { %3688 = vpow2.f32 %v3134_v60 }
0x1e3a   :  { %3690 = vtanh.f32 %v2540_v26 }
0x1e43   :  { %v3689_v61 = vpop.eup %3688 }
0x1e44   :  { %v2547_v13 = vadd.f32 1.0, %v3689_v61  ;;  %v3691_v6 = vpop.eup %3690 }
0x1e46   :  { %3692 = vrcp.f32 %v2547_v13 }
0x1e47   :  { %3694 = vpow2.f32 %v3135_v14 }
0x1e50   :  { %v3693_v9 = vpop.eup %3692 }
0x1e51   :  { %v2555_v41 = vmul.f32 %v3693_v9, %v3691_v6  ;;  %v3695_v22 = vpop.eup %3694  ;;  %v2554_v28 = vmul.f32 %v3693_v9, %v2455_v1  ;;  %v4962_v1 = vld [vmem:[#allocation3 + $0x18] sm:$0xff]  ;;  %v3143_v9 = vld [vmem:[%s5058_s12] ss:$0 sm:$0xff] }
0x1e52   :  { %v2548_v5 = vadd.f32 1.0, %v3695_v22  ;;  %v2691_v63 = vpack.c.bf16 %v4962_v1, %v4952_v17 }
0x1e53   :  { %2557 = vrot.lane.b32.xlu0 %v2555_v41, %s4050_s6 }
0x1e54   :  { %3696 = vrcp.f32 %v2548_v5 }
0x1e5e   :  { %v3697_v39 = vpop.eup %3696 }
0x1ec5   :  { %v2558_v54 = vpop.permute.xlu0 %2557 }
0x1ec6   :  { %v2560_v35 = vadd.f32 %v2558_v54, %v2554_v28 }
0x1ec8   :  { %3698 = vtanh.f32 %v2560_v35 }
0x1ed2   :  { %v3699_v37 = vpop.eup %3698 }
0x1ed3   :  { %v2562_v40 = vmul.f32 %v3699_v37, %v3697_v39 }
0x1ed5   :  { %2564 = vrot.lane.b32.xlu1 %v2562_v40, %s4050_s6 }
0x1f47   :  { %v2565_v47 = vpop.permute.xlu1 %2564 }
0x1f48   :  { %2567 = vst.msk [vmem:[#allocation3 + $0x30] sm:$0xff] %vm512_vm12, %v2565_v47  ;;  %3136 = vmatmul.mubr.msk.f32.vlgmr.msra.gmra.mrb[40].mxu0 %vm717_vm14, %v2565_v47 }
0x1f49   :  { %2568 = vst.msk [vmem:[#allocation3 + $0x8] sm:$0xff] %vm821_vm13, %v2565_v47  ;;  %3227 = vmatprep.mubr.msk.bf16.mxu0 %vm4051_vm15, %v4048_v20 }
0x1f4f   :  { %v4975_v36 = vld [vmem:[#allocation3 + $0x30] sm:$0xff] }
0x1f50   :  { %v4956_v15 = vld [vmem:[#allocation3 + $0x8] sm:$0xff] }
0x201b   :  { %v2639_v51 = vpop.f32.mrb[40].mxu0 }
0x201c   :  { %v2644_v49 = vadd.f32 %v2639_v51, %v4853_v62  ;;  %v2641_v18 = vpop.f32.mrb[41].mxu0  ;;  %v2695_v62 = vpack.c.bf16 %v2685_v11, %v2684_v29 }
0x201d   :  { %v2645_v0 = vadd.f32 %v2641_v18, %v4855_v8 }
0x201e   :  { %v3137_v55 = vmul.f32 -1.442695, %v2644_v49  ;;  %3205 = vmatprep.subr.bf16.mxu1 %v2695_v62 }
0x201f   :  { %3206 = vmatpush3.bf16.msra.mxu1 %v2695_v62  ;;  %v3138_v8 = vmul.f32 -1.442695, %v2645_v0  ;;  %v2890_v62 = vld [vmem:[%s5059_s13] sm:$0xff] }
0x2020   :  { %3700 = vpow2.f32 %v3137_v55  ;;  %3207 = vmatprep.subr.bf16.mxu1 %v2696_v44 }
0x2021   :  { %3702 = vtanh.f32 %v2645_v0 }
0x2023   :  { %3208 = vmatpush3.bf16.msra.mxu1 %v2696_v44  ;;  %v2897_v44 = vld [vmem:[%s5059_s13 + $0x38] sm:$0xff] }
0x2024   :  { %3209 = vmatprep.subr.bf16.mxu1 %v2697_v59  ;;  %v2902_v3 = vpack.c.bf16 %v2897_v44, %v2896_v25 }
0x2027   :  { %3210 = vmatpush3.bf16.msra.mxu1 %v2697_v59 }
0x202a   :  { %v3701_v43 = vpop.eup %3700 }
0x202b   :  { %v2652_v45 = vadd.f32 1.0, %v3701_v43  ;;  %v3703_v56 = vpop.eup %3702 }
0x202d   :  { %3704 = vrcp.f32 %v2652_v45 }
0x202e   :  { %3706 = vpow2.f32 %v3138_v8  ;;  %v2891_v8 = vld [vmem:[%s5059_s13 + $0x8] sm:$0xff] }
0x2037   :  { %v3705_v57 = vpop.eup %3704 }
0x2038   :  { %v2660_v33 = vmul.f32 %v3705_v57, %v3703_v56  ;;  %v3707_v48 = vpop.eup %3706  ;;  %v2659_v31 = vmul.f32 %v3705_v57, %v2560_v35 }
0x2039   :  { %v2653_v16 = vadd.f32 1.0, %v3707_v48  ;;  %v2892_v48 = vld [vmem:[%s5059_s13 + $0x10] sm:$0xff] }
0x203a   :  { %2662 = vrot.lane.b32.xlu0 %v2660_v33, %s4050_s6 }
0x203b   :  { %3708 = vrcp.f32 %v2653_v16  ;;  %v2899_v16 = vpack.c.bf16 %v2891_v8, %v2890_v62 }
0x203d   :  { %3220 = vmatpush3.bf16.msra.mxu0 %v2899_v16 }
0x203e   :  { %3221 = vmatprep.subr.bf16.mxu0 %v4048_v20 }
0x2045   :  { %v3709_v4 = vpop.eup %3708 }
0x20ac   :  { %v2663_v52 = vpop.permute.xlu0 %2662 }
0x20ad   :  { %v2665_v38 = vadd.f32 %v2663_v52, %v2659_v31  ;;  %v2893_v31 = vld [vmem:[%s5059_s13 + $0x18] sm:$0xff] }
0x20ae   :  { %v2900_v52 = vpack.c.bf16 %v2893_v31, %v2892_v48 }
0x20af   :  { %3710 = vtanh.f32 %v2665_v38  ;;  %v2894_v38 = vld [vmem:[%s5059_s13 + $0x20] sm:$0xff] }
0x20b0   :  { %3222 = vmatpush3.bf16.msra.mxu0 %v2900_v52  ;;  %v2901_v10 = vpack.c.bf16 %v2895_v24, %v2894_v38 }
0x20b1   :  { %3223 = vmatprep.subr.bf16.mxu0 %v4048_v20 }
0x20b4   :  { %3224 = vmatpush3.bf16.msra.mxu0 %v2901_v10 }
0x20b5   :  { %3225 = vmatprep.subr.bf16.mxu0 %v4048_v20 }
0x20b8   :  { %3226 = vmatpush3.bf16.msra.mxu0 %v2902_v3 }
0x20b9   :  { %v3711_v7 = vpop.eup %3710  ;;  %3231 = vmatprep.subr.bf16.mxu0 %v4048_v20 }
0x20ba   :  { %v2667_v2 = vmul.f32 %v3711_v7, %v3709_v4 }
0x20bc   :  { %2669 = vrot.lane.b32.xlu1 %v2667_v2, %s4050_s6 }
0x212e   :  { %v2670_v50 = vpop.permute.xlu1 %2669 }
0x212f   :  { %2672 = vst.msk [vmem:[#allocation3 + $0x38] sm:$0xff] %vm512_vm12, %v2670_v50 }
0x2130   :  { %2673 = vst.msk [vmem:[#allocation3] sm:$0xff] %vm821_vm13, %v2670_v50 }
0x2136   :  { %v4973_v23 = vld [vmem:[#allocation3 + $0x38] sm:$0xff] }
0x2137   :  { %v4954_v12 = vld [vmem:[#allocation3] sm:$0xff]  ;;  %v2693_v42 = vpack.c.bf16 %v4973_v23, %v4975_v36 }
0x2138   :  { %v2690_v19 = vpack.c.bf16 %v4956_v15, %v4954_v12 }
0x213a   :  { %3211 = vmatprep.mubr.msk.bf16.mxu1 %vm717_vm14, %v2690_v19 }
0x213b   :  { %3212 = vmatmul.mubr.msk.bf16.vlgmr.msra.gmra.mrb[64].mxu1 %vm717_vm14, %v2691_v63 }
0x213c   :  { %3215 = vmatprep.mubr.msk.bf16.mxu1 %vm717_vm14, %v2692_v32 }
0x2143   :  { %3216 = vmatmul.mubr.msk.bf16.gmra.mrb[68].mxu1 %vm717_vm14, %v2693_v42 }
0x220e   :  { %v3213_v46 = vpop.f32.mrb[64].mxu1 }
0x220f   :  { %3712 = vtanh.f32 %v3213_v46  ;;  %v2744_v26 = vpop.f32.mrb[65].mxu1 }
0x2210   :  { %3714 = vtanh.f32 %v2744_v26  ;;  %v3214_v60 = vpop.f32.mrb[66].mxu1 }
0x2211   :  { %v2747_v61 = vpop.f32.mrb[67].mxu1 }
0x2212   :  { %3716 = vtanh.f32 %v2747_v61 }
0x2213   :  { %3718 = vtanh.f32 %v3214_v60 }
0x2216   :  { %v3217_v13 = vpop.f32.mrb[68].mxu1 }
0x2217   :  { %3720 = vtanh.f32 %v3217_v13  ;;  %v2760_v6 = vpop.f32.mrb[69].mxu1 }
0x2218   :  { %3722 = vtanh.f32 %v2760_v6  ;;  %v3218_v41 = vpop.f32.mrb[70].mxu1 }
0x2219   :  { %v3713_v14 = vpop.eup %3712  ;;  %v2763_v22 = vpop.f32.mrb[71].mxu1 }
0x221a   :  { %v3715_v5 = vpop.eup %3714  ;;  %3724 = vtanh.f32 %v2763_v22  ;;  %v2792_v28 = vmul.f32 %v3713_v14, %v3143_v9 }
0x221b   :  { %3726 = vtanh.f32 %v3218_v41  ;;  %v2790_v39 = vmul.f32 %v3715_v5, %v3143_v9 }
0x221c   :  { %v3717_v54 = vpop.eup %3716  ;;  %v2804_v35 = vsel %vm717_vm14, %v2792_v28, 0.0 }
0x221d   :  { %v3719_v37 = vpop.eup %3718  ;;  %2805 = vadd.xlane.f32.xlu0 %v2804_v35  ;;  %v2791_v40 = vmul.f32 %v3717_v54, %v3143_v9  ;;  %v2798_v51 = vsel %vm717_vm14, %v2790_v39, 0.0 }
0x221e   :  { %v2793_v49 = vmul.f32 %v3719_v37, %v3143_v9 }
0x221f   :  { %v2801_v47 = vsel %vm717_vm14, %v2791_v40, 0.0 }
0x2220   :  { %2802 = vadd.xlane.f32.xlu1 %v2801_v47  ;;  %v2807_v45 = vsel %vm717_vm14, %v2793_v49, 0.0 }
0x2221   :  { %v3721_v18 = vpop.eup %3720  ;;  %2799 = vadd.xlane.f32.xlu0 %v2798_v51 }
0x2222   :  { %v3723_v0 = vpop.eup %3722  ;;  %v2796_v58 = vmul.f32 %v3721_v18, %v3143_v9 }
0x2223   :  { %v2794_v55 = vmul.f32 %v3723_v0, %v3143_v9 }
0x2224   :  { %v3725_v43 = vpop.eup %3724  ;;  %v2816_v30 = vsel %vm717_vm14, %v2796_v58, 0.0 }
0x2225   :  { %v3727_v56 = vpop.eup %3726  ;;  %2808 = vadd.xlane.f32.xlu0 %v2807_v45  ;;  %v2810_v57 = vsel %vm717_vm14, %v2794_v55, 0.0  ;;  %v2795_v33 = vmul.f32 %v3725_v43, %v3143_v9 }
0x2226   :  { %2811 = vadd.xlane.f32.xlu1 %v2810_v57  ;;  %v2797_v29 = vmul.f32 %v3727_v56, %v3143_v9 }
0x2227   :  { %v2813_v53 = vsel %vm717_vm14, %v2795_v33, 0.0 }
0x2228   :  { %v2819_v11 = vsel %vm717_vm14, %v2797_v29, 0.0 }
0x2229   :  { %2814 = vadd.xlane.f32.xlu0 %v2813_v53 }
0x222a   :  { %2817 = vadd.xlane.f32.xlu1 %v2816_v30 }
0x222d   :  { %2820 = vadd.xlane.f32.xlu0 %v2819_v11 }
0x22aa   :  { %v2806_v59 = vpop.xlane.xlu0 %2805 }
0x22ad   :  { %v2803_v7 = vpop.xlane.xlu1 %2802 }
0x22ae   :  { %v2800_v4 = vpop.xlane.xlu0 %2799 }
0x22b2   :  { %v2809_v2 = vpop.xlane.xlu0 %2808 }
0x22b3   :  { %v2812_v50 = vpop.xlane.xlu1 %2811 }
0x22b4   :  { %v2822_v46 = vmax.f32 %v2800_v4, %v2812_v50 }
0x22b6   :  { %v2815_v19 = vpop.xlane.xlu0 %2814 }
0x22b7   :  { %v2818_v63 = vpop.xlane.xlu1 %2817  ;;  %v2823_v32 = vmax.f32 %v2803_v7, %v2815_v19 }
0x22b8   :  { %v2824_v26 = vmax.f32 %v2806_v59, %v2818_v63 }
0x22b9   :  { %v2826_v61 = vmax.f32 %v2822_v46, %v2823_v32 }
0x22ba   :  { %v2821_v42 = vpop.xlane.xlu0 %2820 }
0x22bb   :  { %v2825_v60 = vmax.f32 %v2809_v2, %v2821_v42 }
0x22bd   :  { %v2827_v13 = vmax.f32 %v2824_v26, %v2825_v60 }
0x22bf   :  { %v2828_v6 = vmax.f32 %v2826_v61, %v2827_v13 }
0x22c1   :  { %v2829_v9 = vsub.f32 %v2800_v4, %v2828_v6  ;;  %v2830_v41 = vsub.f32 %v2803_v7, %v2828_v6  ;;  %v2831_v14 = vsub.f32 %v2806_v59, %v2828_v6  ;;  %v2832_v22 = vsub.f32 %v2809_v2, %v2828_v6 }
0x22c2   :  { %v2833_v5 = vsub.f32 %v2812_v50, %v2828_v6  ;;  %v2834_v37 = vsub.f32 %v2815_v19, %v2828_v6  ;;  %v2835_v47 = vsub.f32 %v2818_v63, %v2828_v6  ;;  %v2836_v51 = vsub.f32 %v2821_v42, %v2828_v6 }
0x22c3   :  { %v2837_v28 = vmul.f32 1.442695, %v2829_v9  ;;  %v2839_v54 = vmul.f32 1.442695, %v2830_v41  ;;  %v2841_v35 = vmul.f32 1.442695, %v2831_v14 }
0x22c4   :  { %v2843_v39 = vmul.f32 1.442695, %v2832_v22  ;;  %v2845_v40 = vmul.f32 1.442695, %v2833_v5  ;;  %v2847_v49 = vmul.f32 1.442695, %v2834_v37 }
0x22c5   :  { %3728 = vpow2.f32 %v2837_v28  ;;  %v2849_v18 = vmul.f32 1.442695, %v2835_v47  ;;  %v2851_v0 = vmul.f32 1.442695, %v2836_v51  ;;  %v2993_v41 = vld [vmem:[#allocation20 + $0x8] sm:$0xff]  ;;  %v2994_v14 = vld [vmem:[#allocation20 + $0x10] sm:$0xff] }
0x22c6   :  { %3730 = vpow2.f32 %v2839_v54  ;;  %v2995_v5 = vld [vmem:[#allocation20 + $0x18] sm:$0xff]  ;;  %v3144_v37 = vld [vmem:[#allocation12] ss:$0 sm:$0xff] }
0x22c7   :  { %3732 = vpow2.f32 %v2841_v35  ;;  %v2998_v28 = vpack.c.bf16 %v2995_v5, %v2994_v14  ;;  %v2961_v54 = vld [vmem:[#allocation18] sm:$0x1]  ;;  %v3146_v47 = vld [vmem:[#allocation17] ss:$0 sm:$0xff] }
0x22c8   :  { %3734 = vpow2.f32 %v2843_v39  ;;  %v2962_v35 = vadd.f32 1e-05, %v2961_v54 }
0x22c9   :  { %3736 = vpow2.f32 %v2845_v40 }
0x22ca   :  { %3738 = vpow2.f32 %v2847_v49 }
0x22cb   :  { %3740 = vpow2.f32 %v2849_v18 }
0x22cc   :  { %3742 = vpow2.f32 %v2851_v0 }
0x22cf   :  { %v3729_v55 = vpop.eup %3728 }
0x22d0   :  { %v3731_v43 = vpop.eup %3730  ;;  %v2860_v45 = vmul.f32 %v3729_v55, %v4954_v12 }
0x22d1   :  { %v3733_v56 = vpop.eup %3732  ;;  %v2853_v57 = vadd.f32 %v3731_v43, %v3729_v55  ;;  %v2861_v33 = vmul.f32 %v3731_v43, %v4956_v15 }
0x22d2   :  { %v3735_v58 = vpop.eup %3734  ;;  %v2862_v53 = vmul.f32 %v3733_v56, %v4952_v17  ;;  %v2868_v29 = vsel %vm717_vm14, %v2860_v45, 0.0  ;;  %v3147_v45 = vld [vmem:[#allocation14] ss:$0 sm:$0xff] }
0x22d3   :  { %v2854_v30 = vadd.f32 %v3733_v56, %v2853_v57  ;;  %v2863_v11 = vmul.f32 %v3735_v58, %v4962_v1  ;;  %v2869_v62 = vsel %vm717_vm14, %v2861_v33, 0.0  ;;  %v3737_v8 = vpop.eup %3736  ;;  %v3148_v57 = vld [vmem:[#allocation15] ss:$0 sm:$0xff] }
0x22d4   :  { %v2870_v48 = vadd.f32 %v2869_v62, %v2868_v29  ;;  %v2871_v12 = vsel %vm717_vm14, %v2862_v53, 0.0  ;;  %v2864_v15 = vmul.f32 %v3737_v8, %v4966_v21  ;;  %v3739_v24 = vpop.eup %3738 }
0x22d5   :  { %v2855_v16 = vadd.f32 %v3735_v58, %v2854_v30  ;;  %v2873_v38 = vsel %vm717_vm14, %v2863_v11, 0.0  ;;  %v3741_v25 = vpop.eup %3740  ;;  %v2865_v1 = vmul.f32 %v3739_v24, %v4958_v27 }
0x22d6   :  { %v2872_v31 = vadd.f32 %v2871_v12, %v2870_v48  ;;  %v2875_v3 = vsel %vm717_vm14, %v2864_v15, 0.0  ;;  %v3743_v59 = vpop.eup %3742  ;;  %v2866_v2 = vmul.f32 %v3741_v25, %v4975_v36 }
0x22d7   :  { %v2856_v52 = vadd.f32 %v3737_v8, %v2855_v16  ;;  %v2877_v50 = vsel %vm717_vm14, %v2865_v1, 0.0  ;;  %v2867_v19 = vmul.f32 %v3743_v59, %v4973_v23  ;;  %v2992_v23 = vld [vmem:[#allocation20] sm:$0xff] }
0x22d8   :  { %v2874_v17 = vadd.f32 %v2873_v38, %v2872_v31  ;;  %v2879_v63 = vsel %vm717_vm14, %v2866_v2, 0.0  ;;  %v2997_v22 = vpack.c.bf16 %v2993_v41, %v2992_v23  ;;  %v3149_v8 = vld [vmem:[#allocation21] ss:$0 sm:$0xff] }
0x22d9   :  { %v2857_v10 = vadd.f32 %v3739_v24, %v2856_v52  ;;  %v2881_v42 = vsel %vm717_vm14, %v2867_v19, 0.0 }
0x22da   :  { %v2876_v4 = vadd.f32 %v2875_v3, %v2874_v17 }
0x22db   :  { %v2858_v44 = vadd.f32 %v3741_v25, %v2857_v10 }
0x22dc   :  { %v2878_v21 = vadd.f32 %v2877_v50, %v2876_v4 }
0x22dd   :  { %v2859_v7 = vadd.f32 %v3743_v59, %v2858_v44 }
0x22de   :  { %v2880_v32 = vadd.f32 %v2879_v63, %v2878_v21 }
0x22df   :  { %3744 = vrcp.f32 %v2859_v7 }
0x22e0   :  { %v2882_v46 = vadd.f32 %v2881_v42, %v2880_v32 }
0x22e9   :  { %v3745_v27 = vpop.eup %3744 }
0x22ea   :  { %v2884_v26 = vmul.f32 %v3745_v27, %v2882_v46 }
0x22ec   :  { %v2886_v60 = vmul.f32 0.70710677, %v2884_v26  ;;  %v2885_v13 = vmul.f32 0.5, %v2884_v26 }
0x22ee   :  { %3746 = verf.f32 %v2886_v60 }
0x22ef   :  { %3748 = vrsqrt.f32 %v2962_v35 }
0x22f8   :  { %v3747_v61 = vpop.eup %3746 }
0x22f9   :  { %v2888_v6 = vadd.f32 1.0, %v3747_v61  ;;  %v3749_v39 = vpop.eup %3748 }
0x22fa   :  { %v2968_v49 = vrot.slane %v3749_v39, %v4503_v34 }
0x22fb   :  { %v2889_v36 = vmul.f32 %v2888_v6, %v2885_v13 }
0x22fd   :  { %v2898_v9 = vpack.c.bf16 %v2889_v36, %v2889_v36 }
0x22ff   :  { %3228 = vmatmul.mubr.msk.bf16.vlgmr.msra.gmra.mrb[44].mxu0 %vm717_vm14, %v2898_v9 }
0x2300   :  { %3235 = vmatprep.mubr.msk.bf16.mxu0 %vm4051_vm15, %v4048_v20  ;;  %3232 = vmatpush3.bf16.msra.mxu0 %v2997_v22 }
0x2301   :  { %3233 = vmatprep.subr.bf16.mxu0 %v4048_v20 }
0x2304   :  { %3234 = vmatpush3.bf16.msra.mxu0 %v2998_v28 }
0x23d2   :  { %v2947_v40 = vpop.f32.mrb[44].mxu0 }
0x23d3   :  { %v2948_v51 = vadd.f32 %v3144_v37, %v2947_v40  ;;  %v3229_v18 = vpop.f32.mrb[45].mxu0 }
0x23d4   :  { %v2950_v0 = vpop.f32.mrb[46].mxu0 }
0x23d5   :  { %v2960_v55 = vsub.f32 %v2948_v51, %v3146_v47  ;;  %v3230_v43 = vpop.f32.mrb[47].mxu0 }
0x23d7   :  { %v2970_v56 = vmul.f32 %v2968_v49, %v2960_v55 }
0x23d9   :  { %v2978_v33 = vmul.f32 %v3147_v45, %v2970_v56 }
0x23db   :  { %v2986_v20 = vadd.f32 %v3148_v57, %v2978_v33 }
0x23dd   :  { %v2988_v58 = vmul.f32 0.70710677, %v2986_v20  ;;  %v2987_v29 = vmul.f32 0.5, %v2986_v20 }
0x23df   :  { %3750 = verf.f32 %v2988_v58 }
0x23e9   :  { %v3751_v53 = vpop.eup %3750 }
0x23ea   :  { %v2990_v30 = vadd.f32 1.0, %v3751_v53 }
0x23ec   :  { %v2991_v11 = vmul.f32 %v2990_v30, %v2987_v29 }
0x23ee   :  { %v2996_v62 = vpack.c.bf16 %v2991_v11, %v2991_v11 }
0x23f0   :  { %3236 = vmatmul.mubr.msk.bf16.vlgmr.msra.gmra.mrb[48].mxu0 %vm512_vm12, %v2996_v62 }
0x24c3   :  { %v3043_v34 = vpop.f32.mrb[48].mxu0 }
0x24c4   :  { %v3044_v48 = vadd.f32 %v3149_v8, %v3043_v34  ;;  %v3237_v16 = vpop.f32.mrb[49].mxu0 }
0x24c5   :  { %v3046_v12 = vpop.f32.mrb[50].mxu0 }
0x24c6   :  { %3049 = vst [vmem:[%s5067_s21] sm:$0xff] %v3044_v48  ;;  %v3238_v31 = vpop.f32.mrb[51].mxu0 }
0x24c7   :  { %3054 = vsyncpa [#allocation5], 1 }
0x24c8   :  { %3055 = vsyncpa [#allocation7], 1 }
0x24c9   :  { %3056 = vsyncpa [#allocation10], 1 }
0x24ca   :  { %3057 = vsyncpa [#allocation13], 1 }
0x24cb   :  { %3058 = vsyncpa [#allocation16], 1 }
0x24cc   :  { %3059 = vsyncpa [#allocation19], 1 }
0x24cd   :  { %3060 = vsyncpa [#allocation22], 1 }

</bundles_post_ra>
